<compile_context>
chip_gen: v7x
topology: tpu7x:2x2x1
jax: 0.10.0
libtpu: 0.0.40
codegen_flags: <defaults>
</compile_context>

<pallas_src>
import functools
import numpy as np
import jax
import jax.numpy as jnp
from jax import lax
from jax.experimental import pallas as pl
from jax.experimental.pallas import tpu as pltpu


# ---------------------------------------------------------------------------
# Fused Pallas kernel: 6 x (GEMM + bias + Leaky-LIF) per grid step.
# grid = (batch_blocks, T); membranes persist in VMEM scratch across T.
# ---------------------------------------------------------------------------
def _sae_fused_kernel(x_ref,
                      w1, b1, w2, b2, w3, b3, w4, b4, w5, b5, w6, b6,
                      spk_rec_ref, spk_out_ref,
                      m1, m2, m3, m4, m5, m6,
                      *, beta, threshold):
    t = pl.program_id(1)

    @pl.when(t == 0)
    def _init():
        for m in (m1, m2, m3, m4, m5, m6):
            m[...] = jnp.zeros_like(m)

    def gemm_lif(spk_in, w_ref, b_ref, mem_ref):
        # current injection: bf16 operands on the MXU, f32 accumulation.
        cur = jnp.dot(spk_in.astype(w_ref.dtype), w_ref[...],
                      preferred_element_type=jnp.float32) + b_ref[...]
        # snnTorch Leaky (init_hidden=True, reset_mechanism="subtract"):
        #   reset  = H(mem_prev - vth)   (== previous spike; same strict '>')
        #   mem    = beta*mem_prev + cur - reset*vth
        #   spk    = H(mem - vth)
        mem_prev = mem_ref[...]
        reset = (mem_prev > threshold).astype(jnp.float32)
        mem_new = beta * mem_prev + cur - reset * threshold
        mem_ref[...] = mem_new
        return (mem_new > threshold).astype(jnp.float32)

    spk0 = x_ref[0]                              # (Bblk, depth*size*size)
    spk1 = gemm_lif(spk0, w1, b1, m1)            # conv1          -> lif_conv1
    spk2 = gemm_lif(spk1, w2, b2, m2)            # conv2          -> lif_conv2
    spk_rec = gemm_lif(spk2, w3, b3, m3)         # ff_in          -> lif_rec
    spk4 = gemm_lif(spk_rec, w4, b4, m4)         # ff_out         -> lif_ff_out
    spk5 = gemm_lif(spk4, w5, b5, m5)            # deconv2        -> lif_deconv2
    spk6 = gemm_lif(spk5, w6, b6, m6)            # reconstruction -> lif_reconstruction

    spk_rec_ref[0] = spk_rec
    spk_out_ref[0] = spk6


# ---------------------------------------------------------------------------
# Wrapper-side (pure JAX, runs once): conv / convT -> dense matrices in
# PyTorch's (c, y, x) flatten order, matching nn.Conv2d / nn.ConvTranspose2d /
# Tensor.view semantics.
# ---------------------------------------------------------------------------
def conv_dense(w, H, W):
    """Conv2d (valid, stride 1) as a dense matrix.
    w: (Cout, Cin, kh, kw) -> M: (Cin*H*W, Cout*OH*OW),
    M[(ci,y,x),(co,oy,ox)] = w[co,ci,y-oy,x-ox] where in range."""
    Cout, Cin, kh, kw = w.shape
    OH, OW = H - kh + 1, W - kw + 1
    Ey = jnp.stack([jnp.eye(H, OH, k=-ky, dtype=w.dtype) for ky in range(kh)])
    Ex = jnp.stack([jnp.eye(W, OW, k=-kx, dtype=w.dtype) for kx in range(kw)])
    M6 = jnp.einsum("ocij,iyp,jxq->cyxopq", w, Ey, Ex)
    return M6.reshape(Cin * H * W, Cout * OH * OW)


def convT_dense(wt, H, W):
    """ConvTranspose2d (stride 1, no padding) as a dense matrix.
    wt: (Cin, Cout, kh, kw), input (H, W) -> output (H+kh-1, W+kw-1)."""
    Cin, Cout, kh, kw = wt.shape
    OH, OW = H + kh - 1, W + kw - 1
    Fy = jnp.stack([jnp.eye(H, OH, k=ky, dtype=wt.dtype) for ky in range(kh)])
    Fx = jnp.stack([jnp.eye(W, OW, k=kx, dtype=wt.dtype) for kx in range(kw)])
    M6 = jnp.einsum("coij,iyY,jxX->cyxoYX", wt, Fy, Fx)
    return M6.reshape(Cin * H * W, Cout * OH * OW)


def bias_flat(b, oh, ow):
    """Per-channel bias -> (1, C*oh*ow) in (c, y, x) order."""
    return jnp.repeat(b, oh * ow)[None, :]


def build_dense_layers(params, cfg, weight_dtype=jnp.bfloat16):
    depth, size = cfg["depth"], cfg["size"]
    s1, s2 = cfg["conv1_size"], cfg["conv2_size"]
    layers = [
        (conv_dense(params["conv1_w"], size, size), bias_flat(params["conv1_b"], s1, s1)),
        (conv_dense(params["conv2_w"], s1, s1),     bias_flat(params["conv2_b"], s2, s2)),
        (params["ff_in_w"].T,                       params["ff_in_b"][None, :]),
        (params["ff_out_w"].T,                      params["ff_out_b"][None, :]),
        (convT_dense(params["deconv2_w"], s2, s2),  bias_flat(params["deconv2_b"], s1, s1)),
        (convT_dense(params["recon_w"], s1, s1),    bias_flat(params["recon_b"], size, size)),
    ]
    return [(w.astype(weight_dtype), b.astype(jnp.float32)) for (w, b) in layers]


# ---------------------------------------------------------------------------
# SAE_ni forward: single fused pallas_call over the whole (batch, time) grid.
# ---------------------------------------------------------------------------
def sae_ni_forward_pallas(layers, x, *, cfg, num_batch_blocks=1):
    """x: (T, B, depth, size, size) -> (spk_recs (T,B,num_rec),
                                        spk_outs (T,B,depth,size,size))."""
    T, B = x.shape[0], x.shape[1]
    depth, size = cfg["depth"], cfg["size"]
    nb = num_batch_blocks
    if B % nb != 0:
        raise ValueError("num_batch_blocks must divide the batch size")
    bb = B // nb
    if bb != B and bb % 8 != 0:
        raise ValueError("batch block must be the full batch or a multiple of 8 "
                         "(TPU sublane rule)")

    in_dim = int(layers[0][0].shape[0])
    num_rec = int(layers[2][0].shape[1])
    n_out = int(layers[5][0].shape[1])
    x_flat = x.reshape(T, B, in_dim).astype(jnp.float32)

    operands = [x_flat]
    in_specs = [pl.BlockSpec((1, bb, in_dim), lambda b, t: (t, b, 0))]
    for w, bias in layers:
        operands += [w, bias]
        # Constant block index -> weights/biases stay VMEM resident across T.
        in_specs += [pl.BlockSpec(w.shape, lambda b, t: (0, 0)),
                     pl.BlockSpec(bias.shape, lambda b, t: (0, 0))]

    out_shape = (jax.ShapeDtypeStruct((T, B, num_rec), jnp.float32),
                 jax.ShapeDtypeStruct((T, B, n_out), jnp.float32))
    out_specs = (pl.BlockSpec((1, bb, num_rec), lambda b, t: (t, b, 0)),
                 pl.BlockSpec((1, bb, n_out), lambda b, t: (t, b, 0)))
    scratch = [pltpu.VMEM((bb, int(w.shape[1])), jnp.float32) for w, _ in layers]

    flops = 2 * T * B * sum(int(w.shape[0]) * int(w.shape[1]) for w, _ in layers)
    bytes_in = sum(int(np.prod(a.shape)) * a.dtype.itemsize for a in operands)
    bytes_out = T * B * (num_rec + n_out) * 4

    kernel = functools.partial(_sae_fused_kernel,
                               beta=float(cfg["beta"]), threshold=float(cfg["v_th"]))
    spk_recs, spk_outs_flat = pl.pallas_call(
        kernel,
        grid=(nb, T),
        in_specs=in_specs,
        out_specs=out_specs,
        out_shape=out_shape,
        scratch_shapes=scratch,
        compiler_params=pltpu.CompilerParams(
            dimension_semantics=("parallel", "arbitrary"),
            vmem_limit_bytes=32 * 1024 * 1024),
        cost_estimate=pl.CostEstimate(flops=int(flops), transcendentals=0,
                                      bytes_accessed=int(bytes_in + bytes_out)),
    )(*operands)
    return spk_recs, spk_outs_flat.reshape(T, B, depth, size, size)


def sae_ni_forward_ref(layers, x, *, cfg):
    """Pure-JAX reference (same dense-layer formulation) for validation."""
    T, B = x.shape[0], x.shape[1]
    depth, size = cfg["depth"], cfg["size"]
    beta, vth = cfg["beta"], cfg["v_th"]
    in_dim = int(layers[0][0].shape[0])
    x_flat = x.reshape(T, B, in_dim).astype(jnp.float32)
    mems0 = tuple(jnp.zeros((B, int(w.shape[1])), jnp.float32) for w, _ in layers)

    def step(mems, x_t):
        spk = x_t
        new_mems, spks = [], []
        for (w, bias), mem in zip(layers, mems):
            cur = jnp.dot(spk.astype(w.dtype), w,
                          preferred_element_type=jnp.float32) + bias
            reset = (mem > vth).astype(jnp.float32)
            mem = beta * mem + cur - reset * vth
            spk = (mem > vth).astype(jnp.float32)
            new_mems.append(mem)
            spks.append(spk)
        return tuple(new_mems), (spks[2], spks[5])

    _, (spk_recs, spk_outs_flat) = lax.scan(step, mems0, x_flat)
    return spk_recs, spk_outs_flat.reshape(T, B, depth, size, size)


# ---------------------------------------------------------------------------
# Deterministic parameter init (shapes per SAE_ni.__init__).  Weights/biases
# are quantized to multiples of 1/256 so every dot product is exact in f32,
# making Pallas-vs-reference spike comparison bit-deterministic.
# ---------------------------------------------------------------------------
def init_params(key, cfg):
    depth, C1, C2 = cfg["depth"], cfg["channels_1"], cfg["channels_2"]
    f1, f2 = cfg["filter_1"], cfg["filter_2"]
    num_rec, num_conv2 = cfg["num_rec"], cfg["num_conv2"]
    ks = jax.random.split(key, 12)

    def u(k, shape, fan_in):
        bound = 1.0 / np.sqrt(fan_in)
        w = jax.random.uniform(k, shape, jnp.float32, -bound, bound)
        return jnp.round(w * 256.0) / 256.0

    return {
        "conv1_w": u(ks[0], (C1, depth, f1, f1), depth * f1 * f1),
        "conv1_b": u(ks[1], (C1,), depth * f1 * f1),
        "conv2_w": u(ks[2], (C2, C1, f2, f2), C1 * f2 * f2),
        "conv2_b": u(ks[3], (C2,), C1 * f2 * f2),
        "ff_in_w": u(ks[4], (num_rec, num_conv2), num_conv2),
        "ff_in_b": u(ks[5], (num_rec,), num_conv2),
        "ff_out_w": u(ks[6], (num_conv2, num_rec), num_rec),
        "ff_out_b": u(ks[7], (num_conv2,), num_rec),
        # ConvTranspose2d weight layout: (in_channels, out_channels, kh, kw)
        "deconv2_w": u(ks[8], (C2, C1, f2, f2), C1 * f2 * f2),
        "deconv2_b": u(ks[9], (C1,), C1 * f2 * f2),
        "recon_w": u(ks[10], (C1, depth, f1, f1), depth * f1 * f1),
        "recon_b": u(ks[11], (depth,), depth * f1 * f1),
    }


if __name__ == "__main__":
    tp = {"dt": 1.0, "tau_m": 5.0}
    cfg = {
        "size": 16, "depth": 2,
        "channels_1": 4, "channels_2": 4, "filter_1": 3, "filter_2": 3,
        "num_rec": 32, "v_th": 0.5,
        "beta": float(np.exp(-tp["dt"] / tp["tau_m"])),
    }
    cfg["conv1_size"] = cfg["size"] - cfg["filter_1"] + 1           # 14
    cfg["conv2_size"] = cfg["conv1_size"] - cfg["filter_2"] + 1     # 12
    cfg["num_conv2"] = cfg["conv2_size"] ** 2 * cfg["channels_2"]   # 576

    T, B = 8, 2
    C1, C2 = cfg["channels_1"], cfg["channels_2"]
    s1, s2 = cfg["conv1_size"], cfg["conv2_size"]

    key = jax.random.PRNGKey(0)
    kx, kp, kd = jax.random.split(key, 3)
    x = jax.random.bernoulli(kx, 0.3, (T, B, cfg["depth"], cfg["size"], cfg["size"])
                             ).astype(jnp.float32)
    params = init_params(kp, cfg)

    # sanity 1: dense conv matrix == lax.conv (NCHW / OIHW, VALID)
    d1 = conv_dense(params["conv1_w"], cfg["size"], cfg["size"])
    mine = (x[0].reshape(B, -1) @ d1).reshape(B, C1, s1, s1)
    ref = lax.conv(x[0], params["conv1_w"], (1, 1), "VALID")
    np.testing.assert_allclose(np.asarray(mine), np.asarray(ref), atol=1e-4, rtol=1e-4)

    # sanity 2: dense convT matrix == conv(zero-pad(x, k-1), flip(w).swap(io))
    dummy = jax.random.normal(kd, (B, C2, s2, s2), jnp.float32)
    d5 = convT_dense(params["deconv2_w"], s2, s2)
    mineT = (dummy.reshape(B, -1) @ d5).reshape(B, C1, s1, s1)
    weff = jnp.flip(params["deconv2_w"], (2, 3)).transpose(1, 0, 2, 3)
    refT = lax.conv(jnp.pad(dummy, ((0, 0), (0, 0), (2, 2), (2, 2))), weff,
                    (1, 1), "VALID")
    np.testing.assert_allclose(np.asarray(mineT), np.asarray(refT), atol=1e-4, rtol=1e-4)

    # bf16 weights for the MXU (spikes are exactly 0/1 -> lossless operands);
    # LIF math and accumulation stay f32 inside the kernel.
    layers = build_dense_layers(params, cfg, weight_dtype=jnp.bfloat16)

    # On v7x (2 TensorCores), set num_batch_blocks>1 (with B//nb a multiple of 8
    # or == B) to shard the batch across cores via the "parallel" grid axis.
    nb = 1

    fwd_pallas = jax.jit(functools.partial(sae_ni_forward_pallas,
                                           cfg=cfg, num_batch_blocks=nb))
    fwd_ref = jax.jit(functools.partial(sae_ni_forward_ref, cfg=cfg))

    spk_recs, spk_outs = fwd_pallas(layers, x)
    jax.block_until_ready((spk_recs, spk_outs))
    r_recs, r_outs = fwd_ref(layers, x)

    assert spk_recs.shape == (T, B, cfg["num_rec"])
    assert spk_outs.shape == (T, B, cfg["depth"], cfg["size"], cfg["size"])
    np.testing.assert_allclose(np.asarray(spk_recs), np.asarray(r_recs), atol=1e-6)
    np.testing.assert_allclose(np.asarray(spk_outs), np.asarray(r_outs), atol=1e-6)

    print("KERNEL_OK")
</pallas_src>

<mosaic_0001>
module attributes {stable_mosaic.version = 11 : i64} {
  func.func @_sae_fused_kernel(%arg0: i32, %arg1: i32, %arg2: memref<1x2x512xf32, #tpu.memory_space<vmem>>, %arg3: memref<512x784xbf16, #tpu.memory_space<vmem>>, %arg4: memref<1x784xf32, #tpu.memory_space<vmem>>, %arg5: memref<784x576xbf16, #tpu.memory_space<vmem>>, %arg6: memref<1x576xf32, #tpu.memory_space<vmem>>, %arg7: memref<576x32xbf16, #tpu.memory_space<vmem>>, %arg8: memref<1x32xf32, #tpu.memory_space<vmem>>, %arg9: memref<32x576xbf16, #tpu.memory_space<vmem>>, %arg10: memref<1x576xf32, #tpu.memory_space<vmem>>, %arg11: memref<576x784xbf16, #tpu.memory_space<vmem>>, %arg12: memref<1x784xf32, #tpu.memory_space<vmem>>, %arg13: memref<784x512xbf16, #tpu.memory_space<vmem>>, %arg14: memref<1x512xf32, #tpu.memory_space<vmem>>, %arg15: memref<1x2x32xf32, #tpu.memory_space<vmem>>, %arg16: memref<1x2x512xf32, #tpu.memory_space<vmem>>, %arg17: memref<2x784xf32, #tpu.memory_space<vmem>>, %arg18: memref<2x576xf32, #tpu.memory_space<vmem>>, %arg19: memref<2x32xf32, #tpu.memory_space<vmem>>, %arg20: memref<2x576xf32, #tpu.memory_space<vmem>>, %arg21: memref<2x784xf32, #tpu.memory_space<vmem>>, %arg22: memref<2x512xf32, #tpu.memory_space<vmem>>) attributes {dimension_semantics = [#tpu.dimension_semantics<parallel>, #tpu.dimension_semantics<arbitrary>], iteration_bounds = array<i64: 1, 8>, scalar_prefetch = 0 : i64, scratch_operands = 6 : i64, tpu.core_type = #tpu.core_type<tc>, window_params = [{transform_indices = @transform_0, window_bounds = array<i64: 1, 2, 512>}, {pipeline_mode = #tpu.pipeline_mode<synchronous>, transform_indices = @transform_1, window_bounds = array<i64: 512, 784>}, {pipeline_mode = #tpu.pipeline_mode<synchronous>, transform_indices = @transform_2, window_bounds = array<i64: 1, 784>}, {pipeline_mode = #tpu.pipeline_mode<synchronous>, transform_indices = @transform_3, window_bounds = array<i64: 784, 576>}, {pipeline_mode = #tpu.pipeline_mode<synchronous>, transform_indices = @transform_4, window_bounds = array<i64: 1, 576>}, {pipeline_mode = #tpu.pipeline_mode<synchronous>, transform_indices = @transform_5, window_bounds = array<i64: 576, 32>}, {pipeline_mode = #tpu.pipeline_mode<synchronous>, transform_indices = @transform_6, window_bounds = array<i64: 1, 32>}, {pipeline_mode = #tpu.pipeline_mode<synchronous>, transform_indices = @transform_7, window_bounds = array<i64: 32, 576>}, {pipeline_mode = #tpu.pipeline_mode<synchronous>, transform_indices = @transform_8, window_bounds = array<i64: 1, 576>}, {pipeline_mode = #tpu.pipeline_mode<synchronous>, transform_indices = @transform_9, window_bounds = array<i64: 576, 784>}, {pipeline_mode = #tpu.pipeline_mode<synchronous>, transform_indices = @transform_10, window_bounds = array<i64: 1, 784>}, {pipeline_mode = #tpu.pipeline_mode<synchronous>, transform_indices = @transform_11, window_bounds = array<i64: 784, 512>}, {pipeline_mode = #tpu.pipeline_mode<synchronous>, transform_indices = @transform_12, window_bounds = array<i64: 1, 512>}, {transform_indices = @transform_13, window_bounds = array<i64: 1, 2, 32>}, {transform_indices = @transform_14, window_bounds = array<i64: 1, 2, 512>}]} {
    %c0_i32 = arith.constant 0 : i32
    %0 = arith.cmpi eq, %arg1, %c0_i32 : i32
    %1 = arith.extui %0 : i1 to i32
    %c0_i32_0 = arith.constant 0 : i32
    %2 = arith.cmpi ne, %1, %c0_i32_0 : i32
    scf.if %2 {
      %cst_86 = arith.constant 0.000000e+00 : f32
      %143 = vector.broadcast %cst_86 : f32 to vector<2x784xf32>
      %c0_87 = arith.constant 0 : index
      %c0_88 = arith.constant 0 : index
      %144 = vector.load %arg17[%c0_87, %c0_88] : memref<2x784xf32, #tpu.memory_space<vmem>>, vector<2x784xf32>
      tpu.vector_store %arg17[%c0_87, %c0_88], %143 {strides = array<i32>} : memref<2x784xf32, #tpu.memory_space<vmem>>, vector<2x784xf32>,
      %cst_89 = arith.constant 0.000000e+00 : f32
      %145 = vector.broadcast %cst_89 : f32 to vector<2x576xf32>
      %c0_90 = arith.constant 0 : index
      %c0_91 = arith.constant 0 : index
      %146 = vector.load %arg18[%c0_90, %c0_91] : memref<2x576xf32, #tpu.memory_space<vmem>>, vector<2x576xf32>
      tpu.vector_store %arg18[%c0_90, %c0_91], %145 {strides = array<i32>} : memref<2x576xf32, #tpu.memory_space<vmem>>, vector<2x576xf32>,
      %cst_92 = arith.constant 0.000000e+00 : f32
      %147 = vector.broadcast %cst_92 : f32 to vector<2x32xf32>
      %c0_93 = arith.constant 0 : index
      %c0_94 = arith.constant 0 : index
      %148 = vector.load %arg19[%c0_93, %c0_94] : memref<2x32xf32, #tpu.memory_space<vmem>>, vector<2x32xf32>
      tpu.vector_store %arg19[%c0_93, %c0_94], %147 {strides = array<i32>} : memref<2x32xf32, #tpu.memory_space<vmem>>, vector<2x32xf32>,
      %cst_95 = arith.constant 0.000000e+00 : f32
      %149 = vector.broadcast %cst_95 : f32 to vector<2x576xf32>
      %c0_96 = arith.constant 0 : index
      %c0_97 = arith.constant 0 : index
      %150 = vector.load %arg20[%c0_96, %c0_97] : memref<2x576xf32, #tpu.memory_space<vmem>>, vector<2x576xf32>
      tpu.vector_store %arg20[%c0_96, %c0_97], %149 {strides = array<i32>} : memref<2x576xf32, #tpu.memory_space<vmem>>, vector<2x576xf32>,
      %cst_98 = arith.constant 0.000000e+00 : f32
      %151 = vector.broadcast %cst_98 : f32 to vector<2x784xf32>
      %c0_99 = arith.constant 0 : index
      %c0_100 = arith.constant 0 : index
      %152 = vector.load %arg21[%c0_99, %c0_100] : memref<2x784xf32, #tpu.memory_space<vmem>>, vector<2x784xf32>
      tpu.vector_store %arg21[%c0_99, %c0_100], %151 {strides = array<i32>} : memref<2x784xf32, #tpu.memory_space<vmem>>, vector<2x784xf32>,
      %cst_101 = arith.constant 0.000000e+00 : f32
      %153 = vector.broadcast %cst_101 : f32 to vector<2x512xf32>
      %c0_102 = arith.constant 0 : index
      %c0_103 = arith.constant 0 : index
      %154 = vector.load %arg22[%c0_102, %c0_103] : memref<2x512xf32, #tpu.memory_space<vmem>>, vector<2x512xf32>
      tpu.vector_store %arg22[%c0_102, %c0_103], %153 {strides = array<i32>} : memref<2x512xf32, #tpu.memory_space<vmem>>, vector<2x512xf32>,
    } else {
    }
    %c0 = arith.constant 0 : index
    %c0_1 = arith.constant 0 : index
    %c0_2 = arith.constant 0 : index
    %3 = vector.load %arg2[%c0, %c0_1, %c0_2] : memref<1x2x512xf32, #tpu.memory_space<vmem>>, vector<1x2x512xf32>
    %4 = vector.shape_cast %3 : vector<1x2x512xf32> to vector<2x512xf32>
    %5 = arith.truncf %4 : vector<2x512xf32> to vector<2x512xbf16>
    %c0_3 = arith.constant 0 : index
    %c0_4 = arith.constant 0 : index
    %6 = vector.load %arg3[%c0_3, %c0_4] : memref<512x784xbf16, #tpu.memory_space<vmem>>, vector<512x784xbf16>
    %cst = arith.constant dense<0.000000e+00> : vector<2x784xf32>
    %7 = tpu.matmul %5, %6, %cst {dimension_numbers = #tpu.dot_dimension_numbers<[1], [0], [0], [1], [0, 0, 1, 1], [], []>} : vector<2x512xbf16>, vector<512x784xbf16>, vector<2x784xf32> -> vector<2x784xf32>
    %c0_5 = arith.constant 0 : index
    %c0_6 = arith.constant 0 : index
    %8 = vector.load %arg4[%c0_5, %c0_6] : memref<1x784xf32, #tpu.memory_space<vmem>>, vector<1x784xf32>
    %9 = vector.broadcast %8 : vector<1x784xf32> to vector<2x784xf32>
    %10 = arith.addf %7, %9 : vector<2x784xf32>
    %c0_7 = arith.constant 0 : index
    %c0_8 = arith.constant 0 : index
    %11 = vector.load %arg17[%c0_7, %c0_8] : memref<2x784xf32, #tpu.memory_space<vmem>>, vector<2x784xf32>
    %cst_9 = arith.constant 5.000000e-01 : f32
    %12 = vector.broadcast %cst_9 : f32 to vector<2x784xf32>
    %13 = arith.cmpf ogt, %11, %12 : vector<2x784xf32>
    %14 = arith.extui %13 : vector<2x784xi1> to vector<2x784xi32>
    %15 = arith.sitofp %14 : vector<2x784xi32> to vector<2x784xf32>
    %cst_10 = arith.constant 0.818730771 : f32
    %16 = vector.broadcast %cst_10 : f32 to vector<2x784xf32>
    %17 = arith.mulf %16, %11 : vector<2x784xf32>
    %18 = arith.addf %17, %10 : vector<2x784xf32>
    %cst_11 = arith.constant 5.000000e-01 : f32
    %19 = vector.broadcast %cst_11 : f32 to vector<2x784xf32>
    %20 = arith.mulf %15, %19 : vector<2x784xf32>
    %21 = arith.subf %18, %20 : vector<2x784xf32>
    %c0_12 = arith.constant 0 : index
    %c0_13 = arith.constant 0 : index
    %22 = vector.load %arg17[%c0_12, %c0_13] : memref<2x784xf32, #tpu.memory_space<vmem>>, vector<2x784xf32>
    tpu.vector_store %arg17[%c0_12, %c0_13], %21 {strides = array<i32>} : memref<2x784xf32, #tpu.memory_space<vmem>>, vector<2x784xf32>,
    %cst_14 = arith.constant 5.000000e-01 : f32
    %23 = vector.broadcast %cst_14 : f32 to vector<2x784xf32>
    %24 = arith.cmpf ogt, %21, %23 : vector<2x784xf32>
    %25 = arith.extui %24 : vector<2x784xi1> to vector<2x784xi32>
    %26 = arith.sitofp %25 : vector<2x784xi32> to vector<2x784xf32>
    %27 = arith.truncf %26 : vector<2x784xf32> to vector<2x784xbf16>
    %c0_15 = arith.constant 0 : index
    %c0_16 = arith.constant 0 : index
    %28 = vector.load %arg5[%c0_15, %c0_16] : memref<784x576xbf16, #tpu.memory_space<vmem>>, vector<784x576xbf16>
    %cst_17 = arith.constant dense<0.000000e+00> : vector<2x576xf32>
    %29 = tpu.matmul %27, %28, %cst_17 {dimension_numbers = #tpu.dot_dimension_numbers<[1], [0], [0], [1], [0, 0, 1, 1], [], []>} : vector<2x784xbf16>, vector<784x576xbf16>, vector<2x576xf32> -> vector<2x576xf32>
    %c0_18 = arith.constant 0 : index
    %c0_19 = arith.constant 0 : index
    %30 = vector.load %arg6[%c0_18, %c0_19] : memref<1x576xf32, #tpu.memory_space<vmem>>, vector<1x576xf32>
    %31 = vector.broadcast %30 : vector<1x576xf32> to vector<2x576xf32>
    %32 = arith.addf %29, %31 : vector<2x576xf32>
    %c0_20 = arith.constant 0 : index
    %c0_21 = arith.constant 0 : index
    %33 = vector.load %arg18[%c0_20, %c0_21] : memref<2x576xf32, #tpu.memory_space<vmem>>, vector<2x576xf32>
    %cst_22 = arith.constant 5.000000e-01 : f32
    %34 = vector.broadcast %cst_22 : f32 to vector<2x576xf32>
    %35 = arith.cmpf ogt, %33, %34 : vector<2x576xf32>
    %36 = arith.extui %35 : vector<2x576xi1> to vector<2x576xi32>
    %37 = arith.sitofp %36 : vector<2x576xi32> to vector<2x576xf32>
    %cst_23 = arith.constant 0.818730771 : f32
    %38 = vector.broadcast %cst_23 : f32 to vector<2x576xf32>
    %39 = arith.mulf %38, %33 : vector<2x576xf32>
    %40 = arith.addf %39, %32 : vector<2x576xf32>
    %cst_24 = arith.constant 5.000000e-01 : f32
    %41 = vector.broadcast %cst_24 : f32 to vector<2x576xf32>
    %42 = arith.mulf %37, %41 : vector<2x576xf32>
    %43 = arith.subf %40, %42 : vector<2x576xf32>
    %c0_25 = arith.constant 0 : index
    %c0_26 = arith.constant 0 : index
    %44 = vector.load %arg18[%c0_25, %c0_26] : memref<2x576xf32, #tpu.memory_space<vmem>>, vector<2x576xf32>
    tpu.vector_store %arg18[%c0_25, %c0_26], %43 {strides = array<i32>} : memref<2x576xf32, #tpu.memory_space<vmem>>, vector<2x576xf32>,
    %cst_27 = arith.constant 5.000000e-01 : f32
    %45 = vector.broadcast %cst_27 : f32 to vector<2x576xf32>
    %46 = arith.cmpf ogt, %43, %45 : vector<2x576xf32>
    %47 = arith.extui %46 : vector<2x576xi1> to vector<2x576xi32>
    %48 = arith.sitofp %47 : vector<2x576xi32> to vector<2x576xf32>
    %49 = arith.truncf %48 : vector<2x576xf32> to vector<2x576xbf16>
    %c0_28 = arith.constant 0 : index
    %c0_29 = arith.constant 0 : index
    %50 = vector.load %arg7[%c0_28, %c0_29] : memref<576x32xbf16, #tpu.memory_space<vmem>>, vector<576x32xbf16>
    %cst_30 = arith.constant dense<0.000000e+00> : vector<2x32xf32>
    %51 = tpu.matmul %49, %50, %cst_30 {dimension_numbers = #tpu.dot_dimension_numbers<[1], [0], [0], [1], [0, 0, 1, 1], [], []>} : vector<2x576xbf16>, vector<576x32xbf16>, vector<2x32xf32> -> vector<2x32xf32>
    %c0_31 = arith.constant 0 : index
    %c0_32 = arith.constant 0 : index
    %52 = vector.load %arg8[%c0_31, %c0_32] : memref<1x32xf32, #tpu.memory_space<vmem>>, vector<1x32xf32>
    %53 = vector.broadcast %52 : vector<1x32xf32> to vector<2x32xf32>
    %54 = arith.addf %51, %53 : vector<2x32xf32>
    %c0_33 = arith.constant 0 : index
    %c0_34 = arith.constant 0 : index
    %55 = vector.load %arg19[%c0_33, %c0_34] : memref<2x32xf32, #tpu.memory_space<vmem>>, vector<2x32xf32>
    %cst_35 = arith.constant 5.000000e-01 : f32
    %56 = vector.broadcast %cst_35 : f32 to vector<2x32xf32>
    %57 = arith.cmpf ogt, %55, %56 : vector<2x32xf32>
    %58 = arith.extui %57 : vector<2x32xi1> to vector<2x32xi32>
    %59 = arith.sitofp %58 : vector<2x32xi32> to vector<2x32xf32>
    %cst_36 = arith.constant 0.818730771 : f32
    %60 = vector.broadcast %cst_36 : f32 to vector<2x32xf32>
    %61 = arith.mulf %60, %55 : vector<2x32xf32>
    %62 = arith.addf %61, %54 : vector<2x32xf32>
    %cst_37 = arith.constant 5.000000e-01 : f32
    %63 = vector.broadcast %cst_37 : f32 to vector<2x32xf32>
    %64 = arith.mulf %59, %63 : vector<2x32xf32>
    %65 = arith.subf %62, %64 : vector<2x32xf32>
    %c0_38 = arith.constant 0 : index
    %c0_39 = arith.constant 0 : index
    %66 = vector.load %arg19[%c0_38, %c0_39] : memref<2x32xf32, #tpu.memory_space<vmem>>, vector<2x32xf32>
    tpu.vector_store %arg19[%c0_38, %c0_39], %65 {strides = array<i32>} : memref<2x32xf32, #tpu.memory_space<vmem>>, vector<2x32xf32>,
    %cst_40 = arith.constant 5.000000e-01 : f32
    %67 = vector.broadcast %cst_40 : f32 to vector<2x32xf32>
    %68 = arith.cmpf ogt, %65, %67 : vector<2x32xf32>
    %69 = arith.extui %68 : vector<2x32xi1> to vector<2x32xi32>
    %70 = arith.sitofp %69 : vector<2x32xi32> to vector<2x32xf32>
    %71 = arith.truncf %70 : vector<2x32xf32> to vector<2x32xbf16>
    %c0_41 = arith.constant 0 : index
    %c0_42 = arith.constant 0 : index
    %72 = vector.load %arg9[%c0_41, %c0_42] : memref<32x576xbf16, #tpu.memory_space<vmem>>, vector<32x576xbf16>
    %cst_43 = arith.constant dense<0.000000e+00> : vector<2x576xf32>
    %73 = tpu.matmul %71, %72, %cst_43 {dimension_numbers = #tpu.dot_dimension_numbers<[1], [0], [0], [1], [0, 0, 1, 1], [], []>} : vector<2x32xbf16>, vector<32x576xbf16>, vector<2x576xf32> -> vector<2x576xf32>
    %c0_44 = arith.constant 0 : index
    %c0_45 = arith.constant 0 : index
    %74 = vector.load %arg10[%c0_44, %c0_45] : memref<1x576xf32, #tpu.memory_space<vmem>>, vector<1x576xf32>
    %75 = vector.broadcast %74 : vector<1x576xf32> to vector<2x576xf32>
    %76 = arith.addf %73, %75 : vector<2x576xf32>
    %c0_46 = arith.constant 0 : index
    %c0_47 = arith.constant 0 : index
    %77 = vector.load %arg20[%c0_46, %c0_47] : memref<2x576xf32, #tpu.memory_space<vmem>>, vector<2x576xf32>
    %cst_48 = arith.constant 5.000000e-01 : f32
    %78 = vector.broadcast %cst_48 : f32 to vector<2x576xf32>
    %79 = arith.cmpf ogt, %77, %78 : vector<2x576xf32>
    %80 = arith.extui %79 : vector<2x576xi1> to vector<2x576xi32>
    %81 = arith.sitofp %80 : vector<2x576xi32> to vector<2x576xf32>
    %cst_49 = arith.constant 0.818730771 : f32
    %82 = vector.broadcast %cst_49 : f32 to vector<2x576xf32>
    %83 = arith.mulf %82, %77 : vector<2x576xf32>
    %84 = arith.addf %83, %76 : vector<2x576xf32>
    %cst_50 = arith.constant 5.000000e-01 : f32
    %85 = vector.broadcast %cst_50 : f32 to vector<2x576xf32>
    %86 = arith.mulf %81, %85 : vector<2x576xf32>
    %87 = arith.subf %84, %86 : vector<2x576xf32>
    %c0_51 = arith.constant 0 : index
    %c0_52 = arith.constant 0 : index
    %88 = vector.load %arg20[%c0_51, %c0_52] : memref<2x576xf32, #tpu.memory_space<vmem>>, vector<2x576xf32>
    tpu.vector_store %arg20[%c0_51, %c0_52], %87 {strides = array<i32>} : memref<2x576xf32, #tpu.memory_space<vmem>>, vector<2x576xf32>,
    %cst_53 = arith.constant 5.000000e-01 : f32
    %89 = vector.broadcast %cst_53 : f32 to vector<2x576xf32>
    %90 = arith.cmpf ogt, %87, %89 : vector<2x576xf32>
    %91 = arith.extui %90 : vector<2x576xi1> to vector<2x576xi32>
    %92 = arith.sitofp %91 : vector<2x576xi32> to vector<2x576xf32>
    %93 = arith.truncf %92 : vector<2x576xf32> to vector<2x576xbf16>
    %c0_54 = arith.constant 0 : index
    %c0_55 = arith.constant 0 : index
    %94 = vector.load %arg11[%c0_54, %c0_55] : memref<576x784xbf16, #tpu.memory_space<vmem>>, vector<576x784xbf16>
    %cst_56 = arith.constant dense<0.000000e+00> : vector<2x784xf32>
    %95 = tpu.matmul %93, %94, %cst_56 {dimension_numbers = #tpu.dot_dimension_numbers<[1], [0], [0], [1], [0, 0, 1, 1], [], []>} : vector<2x576xbf16>, vector<576x784xbf16>, vector<2x784xf32> -> vector<2x784xf32>
    %c0_57 = arith.constant 0 : index
    %c0_58 = arith.constant 0 : index
    %96 = vector.load %arg12[%c0_57, %c0_58] : memref<1x784xf32, #tpu.memory_space<vmem>>, vector<1x784xf32>
    %97 = vector.broadcast %96 : vector<1x784xf32> to vector<2x784xf32>
    %98 = arith.addf %95, %97 : vector<2x784xf32>
    %c0_59 = arith.constant 0 : index
    %c0_60 = arith.constant 0 : index
    %99 = vector.load %arg21[%c0_59, %c0_60] : memref<2x784xf32, #tpu.memory_space<vmem>>, vector<2x784xf32>
    %cst_61 = arith.constant 5.000000e-01 : f32
    %100 = vector.broadcast %cst_61 : f32 to vector<2x784xf32>
    %101 = arith.cmpf ogt, %99, %100 : vector<2x784xf32>
    %102 = arith.extui %101 : vector<2x784xi1> to vector<2x784xi32>
    %103 = arith.sitofp %102 : vector<2x784xi32> to vector<2x784xf32>
    %cst_62 = arith.constant 0.818730771 : f32
    %104 = vector.broadcast %cst_62 : f32 to vector<2x784xf32>
    %105 = arith.mulf %104, %99 : vector<2x784xf32>
    %106 = arith.addf %105, %98 : vector<2x784xf32>
    %cst_63 = arith.constant 5.000000e-01 : f32
    %107 = vector.broadcast %cst_63 : f32 to vector<2x784xf32>
    %108 = arith.mulf %103, %107 : vector<2x784xf32>
    %109 = arith.subf %106, %108 : vector<2x784xf32>
    %c0_64 = arith.constant 0 : index
    %c0_65 = arith.constant 0 : index
    %110 = vector.load %arg21[%c0_64, %c0_65] : memref<2x784xf32, #tpu.memory_space<vmem>>, vector<2x784xf32>
    tpu.vector_store %arg21[%c0_64, %c0_65], %109 {strides = array<i32>} : memref<2x784xf32, #tpu.memory_space<vmem>>, vector<2x784xf32>,
    %cst_66 = arith.constant 5.000000e-01 : f32
    %111 = vector.broadcast %cst_66 : f32 to vector<2x784xf32>
    %112 = arith.cmpf ogt, %109, %111 : vector<2x784xf32>
    %113 = arith.extui %112 : vector<2x784xi1> to vector<2x784xi32>
    %114 = arith.sitofp %113 : vector<2x784xi32> to vector<2x784xf32>
    %115 = arith.truncf %114 : vector<2x784xf32> to vector<2x784xbf16>
    %c0_67 = arith.constant 0 : index
    %c0_68 = arith.constant 0 : index
    %116 = vector.load %arg13[%c0_67, %c0_68] : memref<784x512xbf16, #tpu.memory_space<vmem>>, vector<784x512xbf16>
    %cst_69 = arith.constant dense<0.000000e+00> : vector<2x512xf32>
    %117 = tpu.matmul %115, %116, %cst_69 {dimension_numbers = #tpu.dot_dimension_numbers<[1], [0], [0], [1], [0, 0, 1, 1], [], []>} : vector<2x784xbf16>, vector<784x512xbf16>, vector<2x512xf32> -> vector<2x512xf32>
    %c0_70 = arith.constant 0 : index
    %c0_71 = arith.constant 0 : index
    %118 = vector.load %arg14[%c0_70, %c0_71] : memref<1x512xf32, #tpu.memory_space<vmem>>, vector<1x512xf32>
    %119 = vector.broadcast %118 : vector<1x512xf32> to vector<2x512xf32>
    %120 = arith.addf %117, %119 : vector<2x512xf32>
    %c0_72 = arith.constant 0 : index
    %c0_73 = arith.constant 0 : index
    %121 = vector.load %arg22[%c0_72, %c0_73] : memref<2x512xf32, #tpu.memory_space<vmem>>, vector<2x512xf32>
    %cst_74 = arith.constant 5.000000e-01 : f32
    %122 = vector.broadcast %cst_74 : f32 to vector<2x512xf32>
    %123 = arith.cmpf ogt, %121, %122 : vector<2x512xf32>
    %124 = arith.extui %123 : vector<2x512xi1> to vector<2x512xi32>
    %125 = arith.sitofp %124 : vector<2x512xi32> to vector<2x512xf32>
    %cst_75 = arith.constant 0.818730771 : f32
    %126 = vector.broadcast %cst_75 : f32 to vector<2x512xf32>
    %127 = arith.mulf %126, %121 : vector<2x512xf32>
    %128 = arith.addf %127, %120 : vector<2x512xf32>
    %cst_76 = arith.constant 5.000000e-01 : f32
    %129 = vector.broadcast %cst_76 : f32 to vector<2x512xf32>
    %130 = arith.mulf %125, %129 : vector<2x512xf32>
    %131 = arith.subf %128, %130 : vector<2x512xf32>
    %c0_77 = arith.constant 0 : index
    %c0_78 = arith.constant 0 : index
    %132 = vector.load %arg22[%c0_77, %c0_78] : memref<2x512xf32, #tpu.memory_space<vmem>>, vector<2x512xf32>
    tpu.vector_store %arg22[%c0_77, %c0_78], %131 {strides = array<i32>} : memref<2x512xf32, #tpu.memory_space<vmem>>, vector<2x512xf32>,
    %cst_79 = arith.constant 5.000000e-01 : f32
    %133 = vector.broadcast %cst_79 : f32 to vector<2x512xf32>
    %134 = arith.cmpf ogt, %131, %133 : vector<2x512xf32>
    %135 = arith.extui %134 : vector<2x512xi1> to vector<2x512xi32>
    %136 = arith.sitofp %135 : vector<2x512xi32> to vector<2x512xf32>
    %c0_80 = arith.constant 0 : index
    %c0_81 = arith.constant 0 : index
    %c0_82 = arith.constant 0 : index
    %137 = vector.load %arg15[%c0_80, %c0_81, %c0_82] : memref<1x2x32xf32, #tpu.memory_space<vmem>>, vector<1x2x32xf32>
    %138 = vector.shape_cast %137 : vector<1x2x32xf32> to vector<2x32xf32>
    %139 = vector.shape_cast %70 : vector<2x32xf32> to vector<1x2x32xf32>
    tpu.vector_store %arg15[%c0_80, %c0_81, %c0_82], %139 {strides = array<i32>} : memref<1x2x32xf32, #tpu.memory_space<vmem>>, vector<1x2x32xf32>,
    %c0_83 = arith.constant 0 : index
    %c0_84 = arith.constant 0 : index
    %c0_85 = arith.constant 0 : index
    %140 = vector.load %arg16[%c0_83, %c0_84, %c0_85] : memref<1x2x512xf32, #tpu.memory_space<vmem>>, vector<1x2x512xf32>
    %141 = vector.shape_cast %140 : vector<1x2x512xf32> to vector<2x512xf32>
    %142 = vector.shape_cast %136 : vector<2x512xf32> to vector<1x2x512xf32>
    tpu.vector_store %arg16[%c0_83, %c0_84, %c0_85], %142 {strides = array<i32>} : memref<1x2x512xf32, #tpu.memory_space<vmem>>, vector<1x2x512xf32>,
    return
  }
  func.func @transform_0(%arg0: i32, %arg1: i32) -> (i32, i32, i32) {
    %c0_i32 = arith.constant 0 : i32
    %c0_i32_0 = arith.constant 0 : i32
    return %arg1, %arg0, %c0_i32 : i32, i32, i32
  }
  func.func @transform_1(%arg0: i32, %arg1: i32) -> (i32, i32) {
    %c0_i32 = arith.constant 0 : i32
    %c0_i32_0 = arith.constant 0 : i32
    %c0_i32_1 = arith.constant 0 : i32
    return %c0_i32, %c0_i32_0 : i32, i32
  }
  func.func @transform_2(%arg0: i32, %arg1: i32) -> (i32, i32) {
    %c0_i32 = arith.constant 0 : i32
    %c0_i32_0 = arith.constant 0 : i32
    %c0_i32_1 = arith.constant 0 : i32
    return %c0_i32, %c0_i32_0 : i32, i32
  }
  func.func @transform_3(%arg0: i32, %arg1: i32) -> (i32, i32) {
    %c0_i32 = arith.constant 0 : i32
    %c0_i32_0 = arith.constant 0 : i32
    %c0_i32_1 = arith.constant 0 : i32
    return %c0_i32, %c0_i32_0 : i32, i32
  }
  func.func @transform_4(%arg0: i32, %arg1: i32) -> (i32, i32) {
    %c0_i32 = arith.constant 0 : i32
    %c0_i32_0 = arith.constant 0 : i32
    %c0_i32_1 = arith.constant 0 : i32
    return %c0_i32, %c0_i32_0 : i32, i32
  }
  func.func @transform_5(%arg0: i32, %arg1: i32) -> (i32, i32) {
    %c0_i32 = arith.constant 0 : i32
    %c0_i32_0 = arith.constant 0 : i32
    %c0_i32_1 = arith.constant 0 : i32
    return %c0_i32, %c0_i32_0 : i32, i32
  }
  func.func @transform_6(%arg0: i32, %arg1: i32) -> (i32, i32) {
    %c0_i32 = arith.constant 0 : i32
    %c0_i32_0 = arith.constant 0 : i32
    %c0_i32_1 = arith.constant 0 : i32
    return %c0_i32, %c0_i32_0 : i32, i32
  }
  func.func @transform_7(%arg0: i32, %arg1: i32) -> (i32, i32) {
    %c0_i32 = arith.constant 0 : i32
    %c0_i32_0 = arith.constant 0 : i32
    %c0_i32_1 = arith.constant 0 : i32
    return %c0_i32, %c0_i32_0 : i32, i32
  }
  func.func @transform_8(%arg0: i32, %arg1: i32) -> (i32, i32) {
    %c0_i32 = arith.constant 0 : i32
    %c0_i32_0 = arith.constant 0 : i32
    %c0_i32_1 = arith.constant 0 : i32
    return %c0_i32, %c0_i32_0 : i32, i32
  }
  func.func @transform_9(%arg0: i32, %arg1: i32) -> (i32, i32) {
    %c0_i32 = arith.constant 0 : i32
    %c0_i32_0 = arith.constant 0 : i32
    %c0_i32_1 = arith.constant 0 : i32
    return %c0_i32, %c0_i32_0 : i32, i32
  }
  func.func @transform_10(%arg0: i32, %arg1: i32) -> (i32, i32) {
    %c0_i32 = arith.constant 0 : i32
    %c0_i32_0 = arith.constant 0 : i32
    %c0_i32_1 = arith.constant 0 : i32
    return %c0_i32, %c0_i32_0 : i32, i32
  }
  func.func @transform_11(%arg0: i32, %arg1: i32) -> (i32, i32) {
    %c0_i32 = arith.constant 0 : i32
    %c0_i32_0 = arith.constant 0 : i32
    %c0_i32_1 = arith.constant 0 : i32
    return %c0_i32, %c0_i32_0 : i32, i32
  }
  func.func @transform_12(%arg0: i32, %arg1: i32) -> (i32, i32) {
    %c0_i32 = arith.constant 0 : i32
    %c0_i32_0 = arith.constant 0 : i32
    %c0_i32_1 = arith.constant 0 : i32
    return %c0_i32, %c0_i32_0 : i32, i32
  }
  func.func @transform_13(%arg0: i32, %arg1: i32) -> (i32, i32, i32) {
    %c0_i32 = arith.constant 0 : i32
    %c0_i32_0 = arith.constant 0 : i32
    return %arg1, %arg0, %c0_i32 : i32, i32, i32
  }
  func.func @transform_14(%arg0: i32, %arg1: i32) -> (i32, i32, i32) {
    %c0_i32 = arith.constant 0 : i32
    %c0_i32_0 = arith.constant 0 : i32
    return %arg1, %arg0, %c0_i32 : i32, i32, i32
  }
}

</mosaic_0001>

<bundles_post_ra>
// kernel: sae_ni_forward_pallas.1
= control target key start
LH: loop header
LB: loop body
LE: loop exit
PB: predicated region body
PF: predicated region fallthrough
CT: control target
= control target key end

     0   :  { %s15626_s0 = inlined_call_operand.vmem [shape: f32[8,2,512], index: 0, kind: input, shape index: {}]   ;;  %s15627_s1 = inlined_call_operand.vmem [shape: bf16[512,784], index: 1, kind: input, shape index: {}]   ;;  %s15628_s2 = inlined_call_operand.vmem [shape: f32[1,784], index: 2, kind: input, shape index: {}]   ;;  %s15629_s3 = inlined_call_operand.vmem [shape: bf16[784,576], index: 3, kind: input, shape index: {}]   ;;  %s15630_s4 = inlined_call_operand.vmem [shape: f32[1,576], index: 4, kind: input, shape index: {}]   ;;  %s15631_s5 = inlined_call_operand.vmem [shape: bf16[576,32], index: 5, kind: input, shape index: {}]   ;;  %s15632_s6 = inlined_call_operand.vmem [shape: f32[1,32], index: 6, kind: input, shape index: {}]   ;;  %s15633_s7 = inlined_call_operand.vmem [shape: bf16[32,576], index: 7, kind: input, shape index: {}]   ;;  %s15634_s8 = inlined_call_operand.vmem [shape: f32[1,576], index: 8, kind: input, shape index: {}]   ;;  %s15635_s9 = inlined_call_operand.vmem [shape: bf16[576,784], index: 9, kind: input, shape index: {}]   ;;  %s15636_s10 = inlined_call_operand.vmem [shape: f32[1,784], index: 10, kind: input, shape index: {}]   ;;  %s15637_s11 = inlined_call_operand.vmem [shape: bf16[784,512], index: 11, kind: input, shape index: {}]   ;;  %s15638_s12 = inlined_call_operand.vmem [shape: f32[1,512], index: 12, kind: input, shape index: {}]   ;;  %s15639_s13 = inlined_call_operand.hbm [shape: f32[8,2,32], index: 13, kind: output, shape index: {0}]   ;;  %s15640_s14 = inlined_call_operand.vmem [shape: f32[8,2,512], index: 14, kind: output, shape index: {1}]  }
   0x1   :  { %15646 = sst [smem:[#allocation16_spill]] %s15626_s0 }
   0x2   :  { %15647 = sst [smem:[#allocation17_spill]] %s15627_s1 }
   0x3   :  { %15648 = sst [smem:[#allocation18_spill]] %s15640_s14 }
   0x4   :  { %20 = vsyncpa [#allocation9], 0 }
   0x5   :  { %22 = vsyncpa [#allocation9 + $0x1], 0  ;;  %s12274_s29 = smov 0   ;;  %s12276_s30 = smov 0  }
   0x6   :  { %s12278_s15 = smov 0   ;;  %s12280_s16 = smov 0  }
   0x7   :  { %s12282_s17 = smov 0   ;;  %s12284_s18 = smov 0  }
   0x8 LB: > { %15649 = sst [smem:[#allocation11_spill]] %s12179_s15  ;;  %s9315_s19 = sadd.s32 4294967295, %s12191_s18   ;;  %s12191_s18 = sphi %s12284_s18, %s28_s18   ;;  %s12187_s17 = sphi %s12282_s17, %s15670_s17   ;;  %s12183_s16 = sphi %s12280_s16, %s15669_s16   ;;  %s12179_s15 = sphi %s12278_s15, %s15668_s15   ;;  %s12175_s30 = sphi %s12276_s30, %s15672_s30   ;;  %s12171_s29 = sphi %s12274_s29, %s15671_s29  }
   0x9   : > { %15650 = sst [smem:[#allocation12_spill]] %s12187_s17  ;;  %s9316_s20 = sadd.s32 4294967294, %s12191_s18  }
   0xa   : > { %s37_s21 = sadd.s32 1, %s12187_s17  ;;  %s329_s22 = sadd.s32 1, %s12179_s15 }
   0xb   : > { %p38_p0 = scmp.ge.s32.totalorder %s37_s21, 8  ;;  %p339_p1 = scmp.ne.s32.totalorder %s12179_s15, %s12175_s30 }
   0xc   : > { %p340_p2 = scmp.eq.s32.totalorder %s9315_s19, 7  ;;  %p345_p3 = scmp.ne.s32.totalorder %s12175_s30, %s12171_s29 }
   0xd   : > { %s15674_s21 = smov (%p38_p0, %s37_s21), 0  ;;  %p346_p5 = scmp.eq.s32.totalorder %s9316_s20, 7 }
   0xe   : > { %15651 = sst [smem:[#allocation13_spill]] %s15674_s21  ;;  %p12314_p4 = por %p340_p2, %p339_p1 }
   0xf   : > { %s324_s24 = ssub.s32 %s12187_s17, %s15674_s21  ;;  %p9319_p6 = scmp.ge.s32.totalorder %s12191_s18, 1 }
  0x10   : > { %p327_p7 = scmp.eq.s32.totalorder %s324_s24, 0  ;;  %p12321_p8 = por %p346_p5, %p345_p3 }
  0x11   : > { %p440_p9 = scmp.lt.s32.totalorder %s12191_s18, 9 }
  0x12   : > { %s15653_s25 = scalar_select %p12321_p8, 1, 0 }
  0x13   : > { %s12327_s26 = scalar_select %p327_p7, %s12179_s15, %s329_s22  }
  0x14   : > { %15654 = sst [smem:[#allocation14_spill]] %s15653_s25  ;;  %p441_p10 = pnand %p9319_p6, %p440_p9 }
  0x15   : > { %15655 = sst [smem:[#allocation15_spill]] %s12327_s26  ;;  %s15645_s27 = sand.u32 (!%p441_p10), 1, %s12175_s30  }
  0x16   : > { %444 = sbr.rel (%p441_p10) target bundleno = 2031 (0x7ef), region = 72  ;;  %p499_p11 = scmp.lt.s32.totalorder (!%p441_p10), %s12183_s16, 7 }
  0x17   : > { %s12333_s28 = sshll.u32 (!%p441_p10), %s15645_s27, 1  ;;  %s15656_s0 = sld [smem:[#allocation16_spill]] (!%p441_p10) }
  0x18   : > { %s15657_s14 = sld [smem:[#allocation18_spill]] (!%p441_p10)  ;;  %p9325_p12 = scmp.ne.s32.totalorder (!%p441_p10), %s12183_s16, 0 }
  0x1d   : > { %s500_s19 = scalar_select %p499_p11, %s12183_s16, 7 }
  0x1e   : > { %521 = sbr.rel (%p9325_p12) target bundleno = 38 (0x26), region = 76  ;;  %vm523_vm0 = vcmask (!%p9325_p12), 1041408   ;;  %vm524_vm1 = vcmask (!%p9325_p12), 1043458   ;;  %vm526_vm2 = vcmask (!%p9325_p12), 128004   ;;  %v12193_v0 = vmov (!%p9325_p12), 0.0  }
  0x1f   : > { %s10327_s20 = sshll.u32 %s500_s19, 3  ;;  %522 = vst [vmem:[#allocation2] sm:$0xff] (!%p9325_p12), %v12193_v0  ;;  %529 = vst [vmem:[#allocation3] sm:$0xff] (!%p9325_p12), %v12193_v0  ;;  %vm530_vm4 = vcmask (!%p9325_p12), 517120   ;;  %vm532_vm5 = vcmask (!%p9325_p12), 254976  }
  0x20   : > { %s12339_s17 = scalar_lea.vmem %s15656_s0, %s10327_s20  ;;  %s12344_s15 = scalar_lea.vmem %s15657_s14, %s10327_s20  ;;  %534 = vst [vmem:[#allocation5] sm:$0xff] (!%p9325_p12), %v12193_v0  ;;  %536 = vst [vmem:[#allocation6] sm:$0xff] (!%p9325_p12), %v12193_v0 }
  0x21   : > { %538 = vst [vmem:[#allocation7] sm:$0xff] (!%p9325_p12), %v12193_v0  ;;  %vm525_vm3 = vmor (!%p9325_p12), %vm524_vm1, %vm523_vm0 }
  0x22   : > { %vm527_vm6 = vmor (!%p9325_p12), %vm526_vm2, %vm525_vm3  ;;  %531 = vst.msk [vmem:[#allocation3 + $0x8] sm:$0x3] (!%p9325_p12), %vm530_vm4, %v12193_v0 }
  0x23   : > { %535 = vst.msk [vmem:[#allocation5 + $0x8] sm:$0x3] (!%p9325_p12), %vm530_vm4, %v12193_v0 }
  0x24   : > { %533 = vst.msk [vmem:[#allocation4] sm:$0x3] (!%p9325_p12), %vm532_vm5, %v12193_v0 }
  0x25   : > { %528 = vst.msk [vmem:[#allocation2 + $0x8] sm:$0x3f] %vm527_vm6, %v12193_v0  ;;  %537 = vst.msk [vmem:[#allocation6 + $0x8] sm:$0x3f] %vm527_vm6, %v12193_v0 }
  0x26 PF: > { %s15658_s1 = sld [smem:[#allocation17_spill]]  ;;  %v12194_v37 = vmov 1983009808   ;;  %v545_v39 = vlaneseq  ;;  %v539_v53 = vld [vmem:[%s12339_s17] sm:$0xff]  ;;  %vm2396_vm9 = vcmask 1041408   ;;  %vm2397_vm10 = vcmask 1043458  }
  0x27   : > { %v543_v38 = vunpack.c.l.s4 %v12194_v37  ;;  %vm13676_vm12 = vmor %vm2397_vm10, %vm2396_vm9  ;;  %vm2399_vm13 = vcmask 128004   ;;  %vm4052_vm0 = vcmask 130048   ;;  %vm12197_vm1 = vmmov 0   ;;  %s15663_s24 = scalar_lea.vmem [#allocation8], %s12333_s28  ;;  %s10324_s26 = sshll.u32 %s12183_s16, 5 }
  0x28   : > { %v12465_v44 = vshrl.u32 %v545_v39, 7  ;;  %vm13698_vm14 = vmor %vm2399_vm13, %vm13676_vm12  ;;  %vm4592_vm5 = vcmask 517120   ;;  %vm5063_vm9 = vcmask 254976   ;;  %s15664_s19 = scalar_lea.vmem [#allocation8], %s12333_s28  ;;  %s15571_s25 = scalar_lea.hbm %s15639_s13, %s10324_s26 }
  0x29   : > { %v544_v43 = vunpack.c.0.s8 %v543_v38  ;;  %s9194_s20 = sshll.u32 %s15664_s19, 4  ;;  %s15665_s27 = sand.u32 1, %s12175_s30   ;;  %s9195_s20 = int_to_ptr.vmem [resolvable:$true] %s9194_s20 }
  0x2a   : > { %s9171_s0 = scalar_lea.sflag [#allocation9], %s15665_s27  ;;  %s12113_s17 = scalar_lea.vmem %s9195_s20, 32 }
  0x2b   : > { %v12483_v50 = vsub.s32 %v544_v43, %v12465_v44  ;;  %p12114_p13 = scmp.ne.s32.totalorder %s9195_s20, %s12113_s17  ;;  %s12198_s14 = smov [#allocation8]  }
  0x2c   : > { %v10744_v1 = vld [vmem:[%s15658_s1 + $0x4] ss:$28 sps:$4 sm:$0xff]   ;;  %v10746_v2 = vld [vmem:[%s15658_s1 + $0xc] ss:$28 sps:$4 sm:$0xff]   ;;  %v10750_v5 = vld [vmem:[%s15658_s1 + $0x3c] ss:$28 sps:$4 sm:$0xff]  }
  0x2d   : > { %2011 = vmatprep.subr.bf16.mxu0 %v10744_v1  ;;  %v10748_v3 = vld [vmem:[%s15658_s1] ss:$28 sps:$4 sm:$0xff]   ;;  %v10749_v4 = vld [vmem:[%s15658_s1 + $0x8] ss:$28 sps:$4 sm:$0xff]   ;;  %2093 = vmatprep.subr.bf16.mxu1 %v10746_v2  ;;  %v10754_v7 = vld [vmem:[%s15658_s1 + $0x38] ss:$28 sps:$4 sm:$0xff]   ;;  %v548_v55 = vrot.slane %v539_v53, %v12483_v50  ;;  %p12115_p0 = pnand %p12114_p13, %p12314_p4 }
  0x2e   : > { %2012 = vmatpush1.bf16.msra.mxu0 %v10748_v3  ;;  %2094 = vmatpush1.bf16.msra.mxu1 %v10749_v4  ;;  %v10752_v6 = vld [vmem:[%s15658_s1 + $0x44] ss:$28 sps:$4 sm:$0xff]   ;;  %v10756_v9 = vld [vmem:[%s15658_s1 + $0x74] ss:$28 sps:$4 sm:$0xff]   ;;  %v10758_v10 = vld [vmem:[%s15658_s1 + $0x7c] ss:$28 sps:$4 sm:$0xff]  }
  0x2f   : > { %2013 = vmatprep.subr.bf16.mxu0 %v10750_v5  ;;  %v10755_v8 = vld [vmem:[%s15658_s1 + $0x40] ss:$28 sps:$4 sm:$0xff]   ;;  %2095 = vmatprep.subr.bf16.mxu1 %v10752_v6  ;;  %v10760_v11 = vld [vmem:[%s15658_s1 + $0x70] ss:$28 sps:$4 sm:$0xff]   ;;  %v10761_v12 = vld [vmem:[%s15658_s1 + $0x78] ss:$28 sps:$4 sm:$0xff]   ;;  %v556_v59 = vcombine.high %v548_v55, %v548_v55  ;;  %v541_v5 = vcombine.high %v539_v53, %v539_v53  ;;  %p12116_p1 = pneg %p12115_p0 }
  0x30   : > { %v10762_v13 = vld [vmem:[%s15658_s1 + $0xac] ss:$28 sps:$4 sm:$0xff]   ;;  %v10764_v14 = vld [vmem:[%s15658_s1 + $0xb4] ss:$28 sps:$4 sm:$0xff]   ;;  %v10768_v17 = vld [vmem:[%s15658_s1 + $0xe4] ss:$28 sps:$4 sm:$0xff]  }
  0x31   : > { %v10766_v15 = vld [vmem:[%s15658_s1 + $0xa8] ss:$28 sps:$4 sm:$0xff]   ;;  %v10767_v16 = vld [vmem:[%s15658_s1 + $0xb0] ss:$28 sps:$4 sm:$0xff]   ;;  %v10772_v19 = vld [vmem:[%s15658_s1 + $0xe0] ss:$28 sps:$4 sm:$0xff]   ;;  %v12508_v61 = vpack.c.bf16 %v556_v59, %v556_v59 }
  0x32   : > { %2014 = vmatpush1.bf16.msra.mxu0 %v10754_v7  ;;  %2096 = vmatpush1.bf16.msra.mxu1 %v10755_v8  ;;  %v10770_v18 = vld [vmem:[%s15658_s1 + $0xec] ss:$28 sps:$4 sm:$0xff]   ;;  %v10774_v21 = vld [vmem:[%s15658_s1 + $0x11c] ss:$28 sps:$4 sm:$0xff]   ;;  %v10776_v22 = vld [vmem:[%s15658_s1 + $0x124] ss:$28 sps:$4 sm:$0xff]  }
  0x33   : > { %2015 = vmatprep.subr.bf16.mxu0 %v10756_v9  ;;  %2097 = vmatprep.subr.bf16.mxu1 %v10758_v10  ;;  %v10773_v20 = vld [vmem:[%s15658_s1 + $0xe8] ss:$28 sps:$4 sm:$0xff]   ;;  %v10778_v23 = vld [vmem:[%s15658_s1 + $0x118] ss:$28 sps:$4 sm:$0xff]   ;;  %v10779_v24 = vld [vmem:[%s15658_s1 + $0x120] ss:$28 sps:$4 sm:$0xff]   ;;  %v12546_v10 = vrot.slane %v541_v5, %v12483_v50 }
  0x34   : > { %v10780_v25 = vld [vmem:[%s15658_s1 + $0x154] ss:$28 sps:$4 sm:$0xff]   ;;  %v10782_v26 = vld [vmem:[%s15658_s1 + $0x15c] ss:$28 sps:$4 sm:$0xff]   ;;  %v10786_v29 = vld [vmem:[%s15658_s1 + $0x18c] ss:$28 sps:$4 sm:$0xff]   ;;  %2043 = vmatprep.mubr.bf16.mxu0 %v12508_v61  ;;  %2125 = vmatprep.mubr.bf16.mxu1 %v12508_v61 }
  0x35   : > { %v10784_v27 = vld [vmem:[%s15658_s1 + $0x150] ss:$28 sps:$4 sm:$0xff]   ;;  %v10785_v28 = vld [vmem:[%s15658_s1 + $0x158] ss:$28 sps:$4 sm:$0xff]   ;;  %v10790_v31 = vld [vmem:[%s15658_s1 + $0x188] ss:$28 sps:$4 sm:$0xff]  }
  0x36   : > { %2016 = vmatpush1.bf16.msra.mxu0 %v10760_v11  ;;  %2098 = vmatpush1.bf16.msra.mxu1 %v10761_v12  ;;  %v10788_v30 = vld [vmem:[%s15658_s1 + $0x194] ss:$28 sps:$4 sm:$0xff]   ;;  %v10792_v33 = vld [vmem:[%s15658_s1 + $0x1c4] ss:$28 sps:$4 sm:$0xff]   ;;  %v10794_v34 = vld [vmem:[%s15658_s1 + $0x1cc] ss:$28 sps:$4 sm:$0xff]  }
  0x37   : > { %2017 = vmatprep.subr.bf16.mxu0 %v10762_v13  ;;  %2099 = vmatprep.subr.bf16.mxu1 %v10764_v14  ;;  %v10791_v32 = vld [vmem:[%s15658_s1 + $0x190] ss:$28 sps:$4 sm:$0xff]   ;;  %v10796_v35 = vld [vmem:[%s15658_s1 + $0x1c0] ss:$28 sps:$4 sm:$0xff]   ;;  %v10797_v36 = vld [vmem:[%s15658_s1 + $0x1c8] ss:$28 sps:$4 sm:$0xff]  }
  0x38   : > { %v10798_v40 = vld [vmem:[%s15658_s1 + $0x1fc] ss:$28 sps:$4 sm:$0xff]   ;;  %v10800_v41 = vld [vmem:[%s15658_s1 + $0x204] ss:$28 sps:$4 sm:$0xff]   ;;  %v10804_v46 = vld [vmem:[%s15658_s1 + $0x234] ss:$28 sps:$4 sm:$0xff]  }
  0x39   : > { %v10802_v42 = vld [vmem:[%s15658_s1 + $0x1f8] ss:$28 sps:$4 sm:$0xff]   ;;  %v10803_v45 = vld [vmem:[%s15658_s1 + $0x200] ss:$28 sps:$4 sm:$0xff]   ;;  %v10808_v48 = vld [vmem:[%s15658_s1 + $0x230] ss:$28 sps:$4 sm:$0xff]  }
  0x3a   : > { %2018 = vmatpush1.bf16.msra.mxu0 %v10766_v15  ;;  %2100 = vmatpush1.bf16.msra.mxu1 %v10767_v16  ;;  %v10806_v47 = vld [vmem:[%s15658_s1 + $0x23c] ss:$28 sps:$4 sm:$0xff]   ;;  %v10810_v51 = vld [vmem:[%s15658_s1 + $0x26c] ss:$28 sps:$4 sm:$0xff]   ;;  %v10812_v52 = vld [vmem:[%s15658_s1 + $0x274] ss:$28 sps:$4 sm:$0xff]   ;;  %v557_v15 = vcombine.high %v12546_v10, %v12546_v10 }
  0x3b   : > { %2019 = vmatprep.subr.bf16.mxu0 %v10768_v17  ;;  %2101 = vmatprep.subr.bf16.mxu1 %v10770_v18  ;;  %v10809_v49 = vld [vmem:[%s15658_s1 + $0x238] ss:$28 sps:$4 sm:$0xff]   ;;  %v10814_v54 = vld [vmem:[%s15658_s1 + $0x268] ss:$28 sps:$4 sm:$0xff]   ;;  %v10815_v56 = vld [vmem:[%s15658_s1 + $0x270] ss:$28 sps:$4 sm:$0xff]   ;;  %v12565_v17 = vpack.c.bf16 %v548_v55, %v548_v55 }
  0x3c   : > { %v10816_v57 = vld [vmem:[%s15658_s1 + $0x2a4] ss:$28 sps:$4 sm:$0xff]   ;;  %v10818_v58 = vld [vmem:[%s15658_s1 + $0x2ac] ss:$28 sps:$4 sm:$0xff]   ;;  %v10822_v63 = vld [vmem:[%s15658_s1 + $0x2dc] ss:$28 sps:$4 sm:$0xff]  }
  0x3d   : > { %v10820_v60 = vld [vmem:[%s15658_s1 + $0x2a0] ss:$28 sps:$4 sm:$0xff]   ;;  %v10821_v62 = vld [vmem:[%s15658_s1 + $0x2a8] ss:$28 sps:$4 sm:$0xff]   ;;  %v10826_v1 = vld [vmem:[%s15658_s1 + $0x2d8] ss:$28 sps:$4 sm:$0xff]  }
  0x3e   : > { %2020 = vmatpush1.bf16.msra.mxu0 %v10772_v19  ;;  %2102 = vmatpush1.bf16.msra.mxu1 %v10773_v20  ;;  %v10824_v0 = vld [vmem:[%s15658_s1 + $0x2e4] ss:$28 sps:$4 sm:$0xff]   ;;  %v10828_v3 = vld [vmem:[%s15658_s1 + $0x314] ss:$28 sps:$4 sm:$0xff]   ;;  %v10830_v4 = vld [vmem:[%s15658_s1 + $0x31c] ss:$28 sps:$4 sm:$0xff]  }
  0x3f   : > { %2021 = vmatprep.subr.bf16.mxu0 %v10774_v21  ;;  %2103 = vmatprep.subr.bf16.mxu1 %v10776_v22  ;;  %v10827_v2 = vld [vmem:[%s15658_s1 + $0x2e0] ss:$28 sps:$4 sm:$0xff]   ;;  %v10832_v6 = vld [vmem:[%s15658_s1 + $0x310] ss:$28 sps:$4 sm:$0xff]   ;;  %v10833_v7 = vld [vmem:[%s15658_s1 + $0x318] ss:$28 sps:$4 sm:$0xff]   ;;  %v12576_v21 = vpack.c.bf16 %v557_v15, %v557_v15 }
  0x40   : > { %v10834_v8 = vld [vmem:[%s15658_s1 + $0x34c] ss:$28 sps:$4 sm:$0xff]   ;;  %v10836_v9 = vld [vmem:[%s15658_s1 + $0x354] ss:$28 sps:$4 sm:$0xff]   ;;  %v10842_v13 = vld [vmem:[%s15658_s1 + $0x384] ss:$28 sps:$4 sm:$0xff]  }
  0x41   : > { %v10838_v11 = vld [vmem:[%s15658_s1 + $0x348] ss:$28 sps:$4 sm:$0xff]   ;;  %v10839_v12 = vld [vmem:[%s15658_s1 + $0x350] ss:$28 sps:$4 sm:$0xff]   ;;  %v10840_v16 = vld [vmem:[%s15658_s1 + $0x380] ss:$28 sps:$4 sm:$0xff]  }
  0x42   : > { %2022 = vmatpush1.bf16.msra.mxu0 %v10778_v23  ;;  %2104 = vmatpush1.bf16.msra.mxu1 %v10779_v24  ;;  %v10845_v14 = vld [vmem:[%s15658_s1 + $0x38c] ss:$28 sps:$4 sm:$0xff]   ;;  %v10848_v19 = vld [vmem:[%s15658_s1 + $0x3bc] ss:$28 sps:$4 sm:$0xff]   ;;  %v10851_v20 = vld [vmem:[%s15658_s1 + $0x3c4] ss:$28 sps:$4 sm:$0xff]  }
  0x43   : > { %2023 = vmatprep.subr.bf16.mxu0 %v10780_v25  ;;  %2105 = vmatprep.subr.bf16.mxu1 %v10782_v26  ;;  %v10843_v18 = vld [vmem:[%s15658_s1 + $0x388] ss:$28 sps:$4 sm:$0xff]   ;;  %v10846_v22 = vld [vmem:[%s15658_s1 + $0x3b8] ss:$28 sps:$4 sm:$0xff]   ;;  %v10849_v23 = vld [vmem:[%s15658_s1 + $0x3c0] ss:$28 sps:$4 sm:$0xff]  }
  0x44   : > { %v10854_v24 = vld [vmem:[%s15658_s1 + $0x3f4] ss:$28 sps:$4 sm:$0xff]   ;;  %v10857_v25 = vld [vmem:[%s15658_s1 + $0x3fc] ss:$28 sps:$4 sm:$0xff]   ;;  %v10875_v37 = vld [vmem:[%s15658_s1 + $0x4a4] ss:$28 sps:$4 sm:$0xff]  }
  0x45   : > { %v10852_v26 = vld [vmem:[%s15658_s1 + $0x3f0] ss:$28 sps:$4 sm:$0xff]   ;;  %v10870_v38 = vld [vmem:[%s15658_s1 + $0x498] ss:$28 sps:$4 sm:$0xff]   ;;  %v10873_v39 = vld [vmem:[%s15658_s1 + $0x4a0] ss:$28 sps:$4 sm:$0xff]  }
  0x46   : > { %2024 = vmatpush1.bf16.msra.mxu0 %v10784_v27  ;;  %2106 = vmatpush1.bf16.msra.mxu1 %v10785_v28  ;;  %v10855_v27 = vld [vmem:[%s15658_s1 + $0x3f8] ss:$28 sps:$4 sm:$0xff]   ;;  %v10860_v28 = vld [vmem:[%s15658_s1 + $0x42c] ss:$28 sps:$4 sm:$0xff]   ;;  %v10899_v55 = vld [vmem:[%s15658_s1 + $0x584] ss:$28 sps:$4 sm:$0xff]  }
  0x47   : > { %2025 = vmatprep.subr.bf16.mxu0 %v10786_v29  ;;  %2107 = vmatprep.subr.bf16.mxu1 %v10788_v30  ;;  %v10863_v29 = vld [vmem:[%s15658_s1 + $0x434] ss:$28 sps:$4 sm:$0xff]   ;;  %v10858_v30 = vld [vmem:[%s15658_s1 + $0x428] ss:$28 sps:$4 sm:$0xff]   ;;  %v10905_v59 = vld [vmem:[%s15658_s1 + $0x5bc] ss:$28 sps:$4 sm:$0xff]  }
  0x48   : > { %v10879_v43 = vld [vmem:[%s15658_s1 + $0x4d8] ss:$28 sps:$4 sm:$0xff]   ;;  %v10891_v53 = vld [vmem:[%s15658_s1 + $0x548] ss:$28 sps:$4 sm:$0xff]   ;;  %v10912_v5 = vld [vmem:[%s15658_s1 + $0x620] ss:$28 sps:$4 sm:$0xff]  }
  0x49   : > { %v10927_v15 = vld [vmem:[%s15658_s1 + $0x698] ss:$28 sps:$4 sm:$0xff]   ;;  %s12117_s21 = sshll.u32 %s12198_s14, 4  ;;  %s12118_s21 = int_to_ptr.vmem [resolvable:$false] %s12117_s21 }
  0x4a   : > { %2026 = vmatpush1.bf16.msra.mxu0 %v10790_v31  ;;  %2108 = vmatpush1.bf16.msra.mxu1 %v10791_v32  ;;  %v10861_v31 = vld [vmem:[%s15658_s1 + $0x430] ss:$28 sps:$4 sm:$0xff]   ;;  %v10866_v32 = vld [vmem:[%s15658_s1 + $0x464] ss:$28 sps:$4 sm:$0xff]   ;;  %p12120_p2 = scmp.lt.s32.totalorder %s9195_s20, %s12118_s21 }
  0x4b   : > { %2027 = vmatprep.subr.bf16.mxu0 %v10792_v33  ;;  %2109 = vmatprep.subr.bf16.mxu1 %v10794_v34  ;;  %v10869_v33 = vld [vmem:[%s15658_s1 + $0x46c] ss:$28 sps:$4 sm:$0xff]   ;;  %v10864_v34 = vld [vmem:[%s15658_s1 + $0x460] ss:$28 sps:$4 sm:$0xff]  }
  0x4e   : > { %2028 = vmatpush1.bf16.msra.mxu0 %v10796_v35  ;;  %2110 = vmatpush1.bf16.msra.mxu1 %v10797_v36  ;;  %v10867_v35 = vld [vmem:[%s15658_s1 + $0x468] ss:$28 sps:$4 sm:$0xff]   ;;  %v10872_v36 = vld [vmem:[%s15658_s1 + $0x49c] ss:$28 sps:$4 sm:$0xff]  }
  0x4f   : > { %2029 = vmatprep.subr.bf16.mxu0 %v10798_v40  ;;  %2111 = vmatprep.subr.bf16.mxu1 %v10800_v41  ;;  %v10878_v40 = vld [vmem:[%s15658_s1 + $0x4d4] ss:$28 sps:$4 sm:$0xff]   ;;  %v10881_v41 = vld [vmem:[%s15658_s1 + $0x4dc] ss:$28 sps:$4 sm:$0xff]  }
  0x52   : > { %2030 = vmatpush1.bf16.msra.mxu0 %v10802_v42  ;;  %2112 = vmatpush1.bf16.msra.mxu1 %v10803_v45  ;;  %v10876_v42 = vld [vmem:[%s15658_s1 + $0x4d0] ss:$28 sps:$4 sm:$0xff]  }
  0x53   : > { %2031 = vmatprep.subr.bf16.mxu0 %v10804_v46  ;;  %2113 = vmatprep.subr.bf16.mxu1 %v10806_v47  ;;  %v10884_v45 = vld [vmem:[%s15658_s1 + $0x50c] ss:$28 sps:$4 sm:$0xff]   ;;  %v10887_v46 = vld [vmem:[%s15658_s1 + $0x514] ss:$28 sps:$4 sm:$0xff]  }
  0x54   : > { %v10882_v47 = vld [vmem:[%s15658_s1 + $0x508] ss:$28 sps:$4 sm:$0xff]  }
  0x56   : > { %2032 = vmatpush1.bf16.msra.mxu0 %v10808_v48  ;;  %2114 = vmatpush1.bf16.msra.mxu1 %v10809_v49  ;;  %v10885_v48 = vld [vmem:[%s15658_s1 + $0x510] ss:$28 sps:$4 sm:$0xff]   ;;  %v10890_v49 = vld [vmem:[%s15658_s1 + $0x544] ss:$28 sps:$4 sm:$0xff]  }
  0x57   : > { %2033 = vmatprep.subr.bf16.mxu0 %v10810_v51  ;;  %2115 = vmatprep.subr.bf16.mxu1 %v10812_v52  ;;  %v10893_v51 = vld [vmem:[%s15658_s1 + $0x54c] ss:$28 sps:$4 sm:$0xff]   ;;  %v10888_v52 = vld [vmem:[%s15658_s1 + $0x540] ss:$28 sps:$4 sm:$0xff]  }
  0x5a   : > { %2034 = vmatpush1.bf16.msra.mxu0 %v10814_v54  ;;  %2116 = vmatpush1.bf16.msra.mxu1 %v10815_v56  ;;  %v10896_v54 = vld [vmem:[%s15658_s1 + $0x57c] ss:$28 sps:$4 sm:$0xff]  }
  0x5b   : > { %2035 = vmatprep.subr.bf16.mxu0 %v10816_v57  ;;  %2117 = vmatprep.subr.bf16.mxu1 %v10818_v58  ;;  %v10894_v56 = vld [vmem:[%s15658_s1 + $0x578] ss:$28 sps:$4 sm:$0xff]   ;;  %v10897_v57 = vld [vmem:[%s15658_s1 + $0x580] ss:$28 sps:$4 sm:$0xff]  }
  0x5c   : > { %v10902_v58 = vld [vmem:[%s15658_s1 + $0x5b4] ss:$28 sps:$4 sm:$0xff]  }
  0x5e   : > { %2036 = vmatpush1.bf16.msra.mxu0 %v10820_v60  ;;  %2118 = vmatpush1.bf16.msra.mxu1 %v10821_v62  ;;  %v10900_v60 = vld [vmem:[%s15658_s1 + $0x5b0] ss:$28 sps:$4 sm:$0xff]   ;;  %v10903_v62 = vld [vmem:[%s15658_s1 + $0x5b8] ss:$28 sps:$4 sm:$0xff]  }
  0x5f   : > { %2037 = vmatprep.subr.bf16.mxu0 %v10822_v63  ;;  %2119 = vmatprep.subr.bf16.mxu1 %v10824_v0  ;;  %v10908_v63 = vld [vmem:[%s15658_s1 + $0x5ec] ss:$28 sps:$4 sm:$0xff]   ;;  %v10911_v0 = vld [vmem:[%s15658_s1 + $0x5f4] ss:$28 sps:$4 sm:$0xff]  }
  0x62   : > { %2038 = vmatpush1.bf16.msra.mxu0 %v10826_v1  ;;  %2120 = vmatpush1.bf16.msra.mxu1 %v10827_v2  ;;  %v10906_v1 = vld [vmem:[%s15658_s1 + $0x5e8] ss:$28 sps:$4 sm:$0xff]   ;;  %v10909_v2 = vld [vmem:[%s15658_s1 + $0x5f0] ss:$28 sps:$4 sm:$0xff]  }
  0x63   : > { %2039 = vmatprep.subr.bf16.mxu0 %v10828_v3  ;;  %2121 = vmatprep.subr.bf16.mxu1 %v10830_v4  ;;  %v10914_v3 = vld [vmem:[%s15658_s1 + $0x624] ss:$28 sps:$4 sm:$0xff]   ;;  %v10917_v4 = vld [vmem:[%s15658_s1 + $0x62c] ss:$28 sps:$4 sm:$0xff]  }
  0x66   : > { %2040 = vmatpush1.bf16.msra.mxu0 %v10832_v6  ;;  %2122 = vmatpush1.bf16.msra.mxu1 %v10833_v7  ;;  %v10915_v6 = vld [vmem:[%s15658_s1 + $0x628] ss:$28 sps:$4 sm:$0xff]   ;;  %v10920_v7 = vld [vmem:[%s15658_s1 + $0x65c] ss:$28 sps:$4 sm:$0xff]  }
  0x67   : > { %2041 = vmatprep.subr.bf16.mxu0 %v10834_v8  ;;  %2123 = vmatprep.subr.bf16.mxu1 %v10836_v9  ;;  %v10923_v8 = vld [vmem:[%s15658_s1 + $0x664] ss:$28 sps:$4 sm:$0xff]   ;;  %v10918_v9 = vld [vmem:[%s15658_s1 + $0x658] ss:$28 sps:$4 sm:$0xff]  }
  0x6a   : > { %2042 = vmatpush1.bf16.msra.mxu0 %v10838_v11  ;;  %2124 = vmatpush1.bf16.msra.mxu1 %v10839_v12  ;;  %v10921_v11 = vld [vmem:[%s15658_s1 + $0x660] ss:$28 sps:$4 sm:$0xff]   ;;  %v10926_v12 = vld [vmem:[%s15658_s1 + $0x694] ss:$28 sps:$4 sm:$0xff]  }
  0x6b   : > { %2052 = vmatprep.subr.bf16.mxu0 %v10842_v13  ;;  %2134 = vmatprep.subr.bf16.mxu1 %v10845_v14  ;;  %v10929_v13 = vld [vmem:[%s15658_s1 + $0x69c] ss:$28 sps:$4 sm:$0xff]   ;;  %v10924_v14 = vld [vmem:[%s15658_s1 + $0x690] ss:$28 sps:$4 sm:$0xff]  }
  0x6d   : > { %2044 = vmatmul.mubr.bf16.vlgmr.msra.gmra.mrb[0].mxu0 %v12565_v17  ;;  %2126 = vmatmul.mubr.bf16.vlgmr.msra.gmra.mrb[0].mxu1 %v12565_v17 }
  0x6e   : > { %2053 = vmatpush1.bf16.msra.mxu0 %v10840_v16  ;;  %2135 = vmatpush1.bf16.msra.mxu1 %v10843_v18  ;;  %v10932_v16 = vld [vmem:[%s15658_s1 + $0x6cc] ss:$28 sps:$4 sm:$0xff]   ;;  %v10935_v18 = vld [vmem:[%s15658_s1 + $0x6d4] ss:$28 sps:$4 sm:$0xff]  }
  0x6f   : > { %2054 = vmatprep.subr.bf16.mxu0 %v10848_v19  ;;  %2136 = vmatprep.subr.bf16.mxu1 %v10851_v20  ;;  %v10930_v19 = vld [vmem:[%s15658_s1 + $0x6c8] ss:$28 sps:$4 sm:$0xff]   ;;  %v10933_v20 = vld [vmem:[%s15658_s1 + $0x6d0] ss:$28 sps:$4 sm:$0xff]  }
  0x70   : > { %2084 = vmatprep.mubr.bf16.mxu0 %v12576_v21  ;;  %2166 = vmatprep.mubr.bf16.mxu1 %v12576_v21 }
  0x72   : > { %2055 = vmatpush1.bf16.msra.mxu0 %v10846_v22  ;;  %2137 = vmatpush1.bf16.msra.mxu1 %v10849_v23  ;;  %v10939_v22 = vld [vmem:[%s15658_s1 + $0x14] ss:$28 sps:$4 sm:$0xff]  }
  0x73   : > { %2056 = vmatprep.subr.bf16.mxu0 %v10854_v24  ;;  %2138 = vmatprep.subr.bf16.mxu1 %v10857_v25  ;;  %v10964_v23 = vld [vmem:[%s15658_s1 + $0x1d8] ss:$28 sps:$4 sm:$0xff]   ;;  %v12764_v24 = vpack.c.bf16 %v12546_v10, %v12546_v10  ;;  %v10937_v25 = vld [vmem:[%s15658_s1 + $0x10] ss:$28 sps:$4 sm:$0xff]  }
  0x74   : > { %v10969_v10 = vld [vmem:[%s15658_s1 + $0x210] ss:$28 sps:$4 sm:$0xff]  }
  0x76   : > { %2057 = vmatpush1.bf16.msra.mxu0 %v10852_v26  ;;  %2139 = vmatpush1.bf16.msra.mxu1 %v10855_v27  ;;  %v10942_v26 = vld [vmem:[%s15658_s1 + $0x4c] ss:$28 sps:$4 sm:$0xff]   ;;  %v10965_v27 = vld [vmem:[%s15658_s1 + $0x18] ss:$28 sps:$4 sm:$0xff]  }
  0x77   : > { %2058 = vmatprep.subr.bf16.mxu0 %v10860_v28  ;;  %2140 = vmatprep.subr.bf16.mxu1 %v10863_v29  ;;  %v10940_v28 = vld [vmem:[%s15658_s1 + $0x48] ss:$28 sps:$4 sm:$0xff]  }
  0x78   : > { %v10945_v29 = vld [vmem:[%s15658_s1 + $0x84] ss:$28 sps:$4 sm:$0xff]  }
  0x7a   : > { %2059 = vmatpush1.bf16.msra.mxu0 %v10858_v30  ;;  %2141 = vmatpush1.bf16.msra.mxu1 %v10861_v31  ;;  %v10970_v30 = vld [vmem:[%s15658_s1 + $0x50] ss:$28 sps:$4 sm:$0xff]   ;;  %v10974_v31 = vld [vmem:[%s15658_s1 + $0x248] ss:$28 sps:$4 sm:$0xff]  }
  0x7b   : > { %2060 = vmatprep.subr.bf16.mxu0 %v10866_v32  ;;  %2142 = vmatprep.subr.bf16.mxu1 %v10869_v33  ;;  %v10943_v32 = vld [vmem:[%s15658_s1 + $0x80] ss:$28 sps:$4 sm:$0xff]   ;;  %v10975_v33 = vld [vmem:[%s15658_s1 + $0x88] ss:$28 sps:$4 sm:$0xff]  }
  0x7e   : > { %2061 = vmatpush1.bf16.msra.mxu0 %v10864_v34  ;;  %2143 = vmatpush1.bf16.msra.mxu1 %v10867_v35  ;;  %v10948_v34 = vld [vmem:[%s15658_s1 + $0xbc] ss:$28 sps:$4 sm:$0xff]  }
  0x7f   : > { %2062 = vmatprep.subr.bf16.mxu0 %v10872_v36  ;;  %2144 = vmatprep.subr.bf16.mxu1 %v10875_v37  ;;  %v10946_v35 = vld [vmem:[%s15658_s1 + $0xb8] ss:$28 sps:$4 sm:$0xff]   ;;  %v10980_v37 = vld [vmem:[%s15658_s1 + $0xc0] ss:$28 sps:$4 sm:$0xff]  }
  0x80   : > { %v10951_v36 = vld [vmem:[%s15658_s1 + $0xf4] ss:$28 sps:$4 sm:$0xff]  }
  0x82   : > { %2063 = vmatpush1.bf16.msra.mxu0 %v10870_v38  ;;  %2145 = vmatpush1.bf16.msra.mxu1 %v10873_v39  ;;  %v10984_v38 = vld [vmem:[%s15658_s1 + $0x2b8] ss:$28 sps:$4 sm:$0xff]   ;;  %v10949_v39 = vld [vmem:[%s15658_s1 + $0xf0] ss:$28 sps:$4 sm:$0xff]  }
  0x83   : > { %2064 = vmatprep.subr.bf16.mxu0 %v10878_v40  ;;  %2146 = vmatprep.subr.bf16.mxu1 %v10881_v41  ;;  %v10954_v40 = vld [vmem:[%s15658_s1 + $0x12c] ss:$28 sps:$4 sm:$0xff]   ;;  %v10985_v41 = vld [vmem:[%s15658_s1 + $0xf8] ss:$28 sps:$4 sm:$0xff]  }
  0x86   : > { %2065 = vmatpush1.bf16.msra.mxu0 %v10876_v42  ;;  %2147 = vmatpush1.bf16.msra.mxu1 %v10879_v43  ;;  %v10989_v42 = vld [vmem:[%s15658_s1 + $0x2f0] ss:$28 sps:$4 sm:$0xff]   ;;  %v10952_v43 = vld [vmem:[%s15658_s1 + $0x128] ss:$28 sps:$4 sm:$0xff]  }
  0x87   : > { %2066 = vmatprep.subr.bf16.mxu0 %v10884_v45  ;;  %2148 = vmatprep.subr.bf16.mxu1 %v10887_v46  ;;  %v10957_v45 = vld [vmem:[%s15658_s1 + $0x164] ss:$28 sps:$4 sm:$0xff]   ;;  %v10990_v46 = vld [vmem:[%s15658_s1 + $0x130] ss:$28 sps:$4 sm:$0xff]  }
  0x8a   : > { %2067 = vmatpush1.bf16.msra.mxu0 %v10882_v47  ;;  %2149 = vmatpush1.bf16.msra.mxu1 %v10885_v48  ;;  %v10994_v47 = vld [vmem:[%s15658_s1 + $0x328] ss:$28 sps:$4 sm:$0xff]   ;;  %v10955_v48 = vld [vmem:[%s15658_s1 + $0x160] ss:$28 sps:$4 sm:$0xff]  }
  0x8b   : > { %2068 = vmatprep.subr.bf16.mxu0 %v10890_v49  ;;  %2150 = vmatprep.subr.bf16.mxu1 %v10893_v51  ;;  %v10995_v49 = vld [vmem:[%s15658_s1 + $0x168] ss:$28 sps:$4 sm:$0xff]   ;;  %v10960_v51 = vld [vmem:[%s15658_s1 + $0x19c] ss:$28 sps:$4 sm:$0xff]  }
  0x8e   : > { %2069 = vmatpush1.bf16.msra.mxu0 %v10888_v52  ;;  %2151 = vmatpush1.bf16.msra.mxu1 %v10891_v53  ;;  %v10999_v52 = vld [vmem:[%s15658_s1 + $0x360] ss:$28 sps:$4 sm:$0xff]   ;;  %v10958_v53 = vld [vmem:[%s15658_s1 + $0x198] ss:$28 sps:$4 sm:$0xff]  }
  0x8f   : > { %2070 = vmatprep.subr.bf16.mxu0 %v10896_v54  ;;  %2152 = vmatprep.subr.bf16.mxu1 %v10899_v55  ;;  %v11000_v54 = vld [vmem:[%s15658_s1 + $0x1a0] ss:$28 sps:$4 sm:$0xff]   ;;  %v10963_v55 = vld [vmem:[%s15658_s1 + $0x1d4] ss:$28 sps:$4 sm:$0xff]  }
  0x92   : > { %2071 = vmatpush1.bf16.msra.mxu0 %v10894_v56  ;;  %2153 = vmatpush1.bf16.msra.mxu1 %v10897_v57  ;;  %v11004_v56 = vld [vmem:[%s15658_s1 + $0x558] ss:$28 sps:$4 sm:$0xff]   ;;  %v10961_v57 = vld [vmem:[%s15658_s1 + $0x1d0] ss:$28 sps:$4 sm:$0xff]  }
  0x93   : > { %2072 = vmatprep.subr.bf16.mxu0 %v10902_v58  ;;  %2154 = vmatprep.subr.bf16.mxu1 %v10905_v59  ;;  %v11005_v58 = vld [vmem:[%s15658_s1 + $0x398] ss:$28 sps:$4 sm:$0xff]   ;;  %v10968_v59 = vld [vmem:[%s15658_s1 + $0x20c] ss:$28 sps:$4 sm:$0xff]  }
  0x96   : > { %2073 = vmatpush1.bf16.msra.mxu0 %v10900_v60  ;;  %2155 = vmatpush1.bf16.msra.mxu1 %v10903_v62  ;;  %v11009_v60 = vld [vmem:[%s15658_s1 + $0x590] ss:$28 sps:$4 sm:$0xff]   ;;  %v10966_v62 = vld [vmem:[%s15658_s1 + $0x208] ss:$28 sps:$4 sm:$0xff]  }
  0x97   : > { %2074 = vmatprep.subr.bf16.mxu0 %v10908_v63  ;;  %2156 = vmatprep.subr.bf16.mxu1 %v10911_v0  ;;  %v11010_v63 = vld [vmem:[%s15658_s1 + $0x3d0] ss:$28 sps:$4 sm:$0xff]   ;;  %v10973_v0 = vld [vmem:[%s15658_s1 + $0x244] ss:$28 sps:$4 sm:$0xff]  }
  0x9a   : > { %2075 = vmatpush1.bf16.msra.mxu0 %v10906_v1  ;;  %2157 = vmatpush1.bf16.msra.mxu1 %v10909_v2  ;;  %v11014_v1 = vld [vmem:[%s15658_s1 + $0x5c8] ss:$28 sps:$4 sm:$0xff]   ;;  %v10971_v2 = vld [vmem:[%s15658_s1 + $0x240] ss:$28 sps:$4 sm:$0xff]  }
  0x9b   : > { %2076 = vmatprep.subr.bf16.mxu0 %v10914_v3  ;;  %2158 = vmatprep.subr.bf16.mxu1 %v10917_v4  ;;  %v11015_v3 = vld [vmem:[%s15658_s1 + $0x408] ss:$28 sps:$4 sm:$0xff]   ;;  %v10978_v4 = vld [vmem:[%s15658_s1 + $0x27c] ss:$28 sps:$4 sm:$0xff]  }
  0x9e   : > { %2077 = vmatpush1.bf16.msra.mxu0 %v10912_v5  ;;  %2159 = vmatpush1.bf16.msra.mxu1 %v10915_v6  ;;  %v11019_v5 = vld [vmem:[%s15658_s1 + $0x600] ss:$28 sps:$4 sm:$0xff]   ;;  %v10976_v6 = vld [vmem:[%s15658_s1 + $0x278] ss:$28 sps:$4 sm:$0xff]  }
  0x9f   : > { %2078 = vmatprep.subr.bf16.mxu0 %v10920_v7  ;;  %2160 = vmatprep.subr.bf16.mxu1 %v10923_v8  ;;  %v11020_v7 = vld [vmem:[%s15658_s1 + $0x440] ss:$28 sps:$4 sm:$0xff]   ;;  %v10983_v8 = vld [vmem:[%s15658_s1 + $0x2b4] ss:$28 sps:$4 sm:$0xff]  }
  0xa2   : > { %2079 = vmatpush1.bf16.msra.mxu0 %v10918_v9  ;;  %2161 = vmatpush1.bf16.msra.mxu1 %v10921_v11  ;;  %v11024_v9 = vld [vmem:[%s15658_s1 + $0x638] ss:$28 sps:$4 sm:$0xff]   ;;  %v10981_v11 = vld [vmem:[%s15658_s1 + $0x2b0] ss:$28 sps:$4 sm:$0xff]  }
  0xa3   : > { %2080 = vmatprep.subr.bf16.mxu0 %v10926_v12  ;;  %2162 = vmatprep.subr.bf16.mxu1 %v10929_v13  ;;  %v11025_v12 = vld [vmem:[%s15658_s1 + $0x478] ss:$28 sps:$4 sm:$0xff]   ;;  %v10988_v13 = vld [vmem:[%s15658_s1 + $0x2ec] ss:$28 sps:$4 sm:$0xff]  }
  0xa6   : > { %2081 = vmatpush1.bf16.msra.mxu0 %v10924_v14  ;;  %2163 = vmatpush1.bf16.msra.mxu1 %v10927_v15  ;;  %v11029_v14 = vld [vmem:[%s15658_s1 + $0x670] ss:$28 sps:$4 sm:$0xff]   ;;  %v10986_v15 = vld [vmem:[%s15658_s1 + $0x2e8] ss:$28 sps:$4 sm:$0xff]  }
  0xa7   : > { %2082 = vmatprep.subr.bf16.mxu0 %v10932_v16  ;;  %2164 = vmatprep.subr.bf16.mxu1 %v10935_v18  ;;  %v11030_v16 = vld [vmem:[%s15658_s1 + $0x4b0] ss:$28 sps:$4 sm:$0xff]   ;;  %v10993_v18 = vld [vmem:[%s15658_s1 + $0x324] ss:$28 sps:$4 sm:$0xff]  }
  0xaa   : > { %2083 = vmatpush1.bf16.msra.mxu0 %v10930_v19  ;;  %2165 = vmatpush1.bf16.msra.mxu1 %v10933_v20  ;;  %v11034_v19 = vld [vmem:[%s15658_s1 + $0x6a8] ss:$28 sps:$4 sm:$0xff]   ;;  %v10991_v20 = vld [vmem:[%s15658_s1 + $0x320] ss:$28 sps:$4 sm:$0xff]  }
  0xab   : > { %2175 = vmatprep.subr.bf16.mxu0 %v10939_v22  ;;  %10329 = vmatprep.subr.bf16.mxu1 %v10964_v23  ;;  %v11035_v22 = vld [vmem:[%s15658_s1 + $0x4e8] ss:$28 sps:$4 sm:$0xff]   ;;  %v10998_v23 = vld [vmem:[%s15658_s1 + $0x35c] ss:$28 sps:$4 sm:$0xff]  }
  0xad   : > { %2085 = vmatmul.mubr.bf16.vlgmr.msra.gmra.mrb[0].mxu0 %v12764_v24  ;;  %2167 = vmatmul.mubr.bf16.vlgmr.msra.gmra.mrb[0].mxu1 %v12764_v24 }
  0xae   : > { %2176 = vmatpush1.bf16.msra.mxu0 %v10937_v25  ;;  %10330 = vmatpush3.bf16.msra.mxu1 %v10965_v27  ;;  %v11039_v25 = vld [vmem:[%s15658_s1 + $0x6e0] ss:$28 sps:$4 sm:$0xff]  }
  0xaf   : > { %2177 = vmatprep.subr.bf16.mxu0 %v10942_v26  ;;  %10331 = vmatprep.subr.bf16.mxu1 %v10969_v10  ;;  %v10996_v26 = vld [vmem:[%s15658_s1 + $0x358] ss:$28 sps:$4 sm:$0xff]   ;;  %v11040_v27 = vld [vmem:[%s15658_s1 + $0x520] ss:$28 sps:$4 sm:$0xff]  }
  0xb0   : > { %2207 = vmatprep.mubr.bf16.mxu0 %v12508_v61  ;;  %2289 = vmatprep.mubr.bf16.mxu1 %v12508_v61  ;;  %v10979_v61 = vld [vmem:[%s15658_s1 + $0x280] ss:$28 sps:$4 sm:$0xff]   ;;  %v11003_v10 = vld [vmem:[%s15658_s1 + $0x394] ss:$28 sps:$4 sm:$0xff]  }
  0xb2   : > { %2178 = vmatpush1.bf16.msra.mxu0 %v10940_v28  ;;  %10332 = vmatpush3.bf16.msra.mxu1 %v10970_v30  ;;  %v11067_v28 = vld [vmem:[%s15629_s3 + $0x4] ss:$20 sps:$4 sm:$0xff]   ;;  %v11008_v30 = vld [vmem:[%s15658_s1 + $0x3cc] ss:$28 sps:$4 sm:$0xff]  }
  0xb3   : > { %2179 = vmatprep.subr.bf16.mxu0 %v10945_v29  ;;  %10333 = vmatprep.subr.bf16.mxu1 %v10974_v31  ;;  %v11001_v29 = vld [vmem:[%s15658_s1 + $0x390] ss:$28 sps:$4 sm:$0xff]   ;;  %v11065_v31 = vld [vmem:[%s15629_s3] ss:$20 sps:$4 sm:$0xff]  }
  0xb6   : > { %2180 = vmatpush1.bf16.msra.mxu0 %v10943_v32  ;;  %10334 = vmatpush3.bf16.msra.mxu1 %v10975_v33  ;;  %v11073_v32 = vld [vmem:[%s15629_s3 + $0x2c] ss:$20 sps:$4 sm:$0xff]   ;;  %v11006_v33 = vld [vmem:[%s15658_s1 + $0x3c8] ss:$28 sps:$4 sm:$0xff]  }
  0xb7   : > { %2181 = vmatprep.subr.bf16.mxu0 %v10948_v34  ;;  %10335 = vmatprep.subr.bf16.mxu1 %v10979_v61  ;;  %v11013_v34 = vld [vmem:[%s15658_s1 + $0x404] ss:$28 sps:$4 sm:$0xff]   ;;  %v11071_v61 = vld [vmem:[%s15629_s3 + $0x28] ss:$20 sps:$4 sm:$0xff]  }
  0xba   : > { %2182 = vmatpush1.bf16.msra.mxu0 %v10946_v35  ;;  %10336 = vmatpush3.bf16.msra.mxu1 %v10980_v37  ;;  %v11079_v35 = vld [vmem:[%s15629_s3 + $0x54] ss:$20 sps:$4 sm:$0xff]   ;;  %v11077_v37 = vld [vmem:[%s15629_s3 + $0x50] ss:$20 sps:$4 sm:$0xff]  }
  0xbb   : > { %2183 = vmatprep.subr.bf16.mxu0 %v10951_v36  ;;  %10337 = vmatprep.subr.bf16.mxu1 %v10984_v38  ;;  %v11018_v36 = vld [vmem:[%s15658_s1 + $0x43c] ss:$28 sps:$4 sm:$0xff]  }
  0xbc   : > { %v11016_v38 = vld [vmem:[%s15658_s1 + $0x438] ss:$28 sps:$4 sm:$0xff]  }
  0xbe   : > { %2184 = vmatpush1.bf16.msra.mxu0 %v10949_v39  ;;  %10338 = vmatpush3.bf16.msra.mxu1 %v10985_v41  ;;  %v11023_v39 = vld [vmem:[%s15658_s1 + $0x474] ss:$28 sps:$4 sm:$0xff]   ;;  %v11091_v41 = vld [vmem:[%s15629_s3 + $0xa4] ss:$20 sps:$4 sm:$0xff]  }
  0xbf   : > { %2185 = vmatprep.subr.bf16.mxu0 %v10954_v40  ;;  %10339 = vmatprep.subr.bf16.mxu1 %v10989_v42  ;;  %v11083_v40 = vld [vmem:[%s15629_s3 + $0x78] ss:$20 sps:$4 sm:$0xff]  }
  0xc0   : > { %v11021_v42 = vld [vmem:[%s15658_s1 + $0x470] ss:$28 sps:$4 sm:$0xff]  }
  0xc2   : > { %2186 = vmatpush1.bf16.msra.mxu0 %v10952_v43  ;;  %10340 = vmatpush3.bf16.msra.mxu1 %v10990_v46  ;;  %v11028_v43 = vld [vmem:[%s15658_s1 + $0x4ac] ss:$28 sps:$4 sm:$0xff]  }
  0xc3   : > { %2187 = vmatprep.subr.bf16.mxu0 %v10957_v45  ;;  %10341 = vmatprep.subr.bf16.mxu1 %v10994_v47  ;;  %v11089_v45 = vld [vmem:[%s15629_s3 + $0xa0] ss:$20 sps:$4 sm:$0xff]   ;;  %v11026_v47 = vld [vmem:[%s15658_s1 + $0x4a8] ss:$28 sps:$4 sm:$0xff]  }
  0xc4   : > { %v11097_v46 = vld [vmem:[%s15629_s3 + $0xcc] ss:$20 sps:$4 sm:$0xff]  }
  0xc6   : > { %2188 = vmatpush1.bf16.msra.mxu0 %v10955_v48  ;;  %10342 = vmatpush3.bf16.msra.mxu1 %v10995_v49  ;;  %v11033_v48 = vld [vmem:[%s15658_s1 + $0x4e4] ss:$28 sps:$4 sm:$0xff]   ;;  %v11095_v49 = vld [vmem:[%s15629_s3 + $0xc8] ss:$20 sps:$4 sm:$0xff]  }
  0xc7   : > { %2189 = vmatprep.subr.bf16.mxu0 %v10960_v51  ;;  %10343 = vmatprep.subr.bf16.mxu1 %v10999_v52  ;;  %v11031_v51 = vld [vmem:[%s15658_s1 + $0x4e0] ss:$28 sps:$4 sm:$0xff]   ;;  %v11103_v52 = vld [vmem:[%s15629_s3 + $0xf4] ss:$20 sps:$4 sm:$0xff]  }
  0xca   : > { %2190 = vmatpush1.bf16.msra.mxu0 %v10958_v53  ;;  %10344 = vmatpush3.bf16.msra.mxu1 %v11000_v54  ;;  %v11038_v53 = vld [vmem:[%s15658_s1 + $0x51c] ss:$28 sps:$4 sm:$0xff]   ;;  %v11101_v54 = vld [vmem:[%s15629_s3 + $0xf0] ss:$20 sps:$4 sm:$0xff]  }
  0xcb   : > { %2191 = vmatprep.subr.bf16.mxu0 %v10963_v55  ;;  %10351 = vmatprep.subr.bf16.mxu1 %v11004_v56  ;;  %v11109_v55 = vld [vmem:[%s15629_s3 + $0x11c] ss:$20 sps:$4 sm:$0xff]   ;;  %v11036_v56 = vld [vmem:[%s15658_s1 + $0x518] ss:$28 sps:$4 sm:$0xff]  }
  0xcd   : > { %2290 = vmatmul.mubr.bf16.vlgmr.msra.gmra.mrb[4].mxu1 %v12565_v17 }
  0xce   : > { %2192 = vmatpush1.bf16.msra.mxu0 %v10961_v57  ;;  %10352 = vmatpush3.bf16.msra.mxu1 %v11005_v58  ;;  %v11043_v57 = vld [vmem:[%s15658_s1 + $0x554] ss:$28 sps:$4 sm:$0xff]   ;;  %v11107_v58 = vld [vmem:[%s15629_s3 + $0x118] ss:$20 sps:$4 sm:$0xff]  }
  0xcf   : > { %2193 = vmatprep.subr.bf16.mxu0 %v10968_v59  ;;  %10353 = vmatprep.subr.bf16.mxu1 %v11009_v60  ;;  %v11115_v59 = vld [vmem:[%s15629_s3 + $0x144] ss:$20 sps:$4 sm:$0xff]   ;;  %v11041_v60 = vld [vmem:[%s15658_s1 + $0x550] ss:$28 sps:$4 sm:$0xff]  }
  0xd0   : > { %2329 = vmatprep.mubr.bf16.mxu1 %v12576_v21 }
  0xd2   : > { %2194 = vmatpush1.bf16.msra.mxu0 %v10966_v62  ;;  %10354 = vmatpush3.bf16.msra.mxu1 %v11010_v63  ;;  %v11046_v62 = vld [vmem:[%s15658_s1 + $0x58c] ss:$28 sps:$4 sm:$0xff]   ;;  %v11113_v63 = vld [vmem:[%s15629_s3 + $0x140] ss:$20 sps:$4 sm:$0xff]  }
  0xd3   : > { %2195 = vmatprep.subr.bf16.mxu0 %v10973_v0  ;;  %10355 = vmatprep.subr.bf16.mxu1 %v11014_v1  ;;  %v11044_v0 = vld [vmem:[%s15658_s1 + $0x588] ss:$28 sps:$4 sm:$0xff]   ;;  %v11121_v1 = vld [vmem:[%s15629_s3 + $0x16c] ss:$20 sps:$4 sm:$0xff]  }
  0xd6   : > { %2196 = vmatpush1.bf16.msra.mxu0 %v10971_v2  ;;  %10356 = vmatpush3.bf16.msra.mxu1 %v11015_v3  ;;  %v11049_v2 = vld [vmem:[%s15658_s1 + $0x5c4] ss:$28 sps:$4 sm:$0xff]   ;;  %v11119_v3 = vld [vmem:[%s15629_s3 + $0x168] ss:$20 sps:$4 sm:$0xff]  }
  0xd7   : > { %2197 = vmatprep.subr.bf16.mxu0 %v10978_v4  ;;  %10357 = vmatprep.subr.bf16.mxu1 %v11019_v5  ;;  %v11127_v4 = vld [vmem:[%s15629_s3 + $0x194] ss:$20 sps:$4 sm:$0xff]   ;;  %v11047_v5 = vld [vmem:[%s15658_s1 + $0x5c0] ss:$28 sps:$4 sm:$0xff]  }
  0xda   : > { %2198 = vmatpush1.bf16.msra.mxu0 %v10976_v6  ;;  %10358 = vmatpush3.bf16.msra.mxu1 %v11020_v7  ;;  %v11052_v6 = vld [vmem:[%s15658_s1 + $0x5fc] ss:$28 sps:$4 sm:$0xff]   ;;  %v11125_v7 = vld [vmem:[%s15629_s3 + $0x190] ss:$20 sps:$4 sm:$0xff]  }
  0xdb   : > { %2199 = vmatprep.subr.bf16.mxu0 %v10983_v8  ;;  %10359 = vmatprep.subr.bf16.mxu1 %v11024_v9  ;;  %v11050_v8 = vld [vmem:[%s15658_s1 + $0x5f8] ss:$28 sps:$4 sm:$0xff]   ;;  %v11133_v9 = vld [vmem:[%s15629_s3 + $0x1bc] ss:$20 sps:$4 sm:$0xff]  }
  0xde   : > { %2200 = vmatpush1.bf16.msra.mxu0 %v10981_v11  ;;  %10360 = vmatpush3.bf16.msra.mxu1 %v11025_v12  ;;  %v11055_v11 = vld [vmem:[%s15658_s1 + $0x634] ss:$28 sps:$4 sm:$0xff]   ;;  %v11131_v12 = vld [vmem:[%s15629_s3 + $0x1b8] ss:$20 sps:$4 sm:$0xff]  }
  0xdf   : > { %2201 = vmatprep.subr.bf16.mxu0 %v10988_v13  ;;  %10361 = vmatprep.subr.bf16.mxu1 %v11029_v14  ;;  %v11139_v13 = vld [vmem:[%s15629_s3 + $0x1e4] ss:$20 sps:$4 sm:$0xff]   ;;  %v11053_v14 = vld [vmem:[%s15658_s1 + $0x630] ss:$28 sps:$4 sm:$0xff]  }
  0xe2   : > { %2202 = vmatpush1.bf16.msra.mxu0 %v10986_v15  ;;  %10362 = vmatpush3.bf16.msra.mxu1 %v11030_v16  ;;  %v11058_v15 = vld [vmem:[%s15658_s1 + $0x66c] ss:$28 sps:$4 sm:$0xff]   ;;  %v11137_v16 = vld [vmem:[%s15629_s3 + $0x1e0] ss:$20 sps:$4 sm:$0xff]  }
  0xe3   : > { %2203 = vmatprep.subr.bf16.mxu0 %v10993_v18  ;;  %10363 = vmatprep.subr.bf16.mxu1 %v11034_v19  ;;  %v11056_v18 = vld [vmem:[%s15658_s1 + $0x668] ss:$28 sps:$4 sm:$0xff]   ;;  %v11145_v19 = vld [vmem:[%s15629_s3 + $0x20c] ss:$20 sps:$4 sm:$0xff]  }
  0xe6   : > { %2204 = vmatpush1.bf16.msra.mxu0 %v10991_v20  ;;  %10364 = vmatpush3.bf16.msra.mxu1 %v11035_v22  ;;  %v11061_v20 = vld [vmem:[%s15658_s1 + $0x6a4] ss:$28 sps:$4 sm:$0xff]   ;;  %v11143_v22 = vld [vmem:[%s15629_s3 + $0x208] ss:$20 sps:$4 sm:$0xff]  }
  0xe7   : > { %2205 = vmatprep.subr.bf16.mxu0 %v10998_v23  ;;  %10365 = vmatprep.subr.bf16.mxu1 %v11039_v25  ;;  %v11059_v23 = vld [vmem:[%s15658_s1 + $0x6a0] ss:$28 sps:$4 sm:$0xff]   ;;  %v11151_v25 = vld [vmem:[%s15629_s3 + $0x234] ss:$20 sps:$4 sm:$0xff]  }
  0xea   : > { %2206 = vmatpush1.bf16.msra.mxu0 %v10996_v26  ;;  %10366 = vmatpush3.bf16.msra.mxu1 %v11040_v27  ;;  %v11064_v26 = vld [vmem:[%s15658_s1 + $0x6dc] ss:$28 sps:$4 sm:$0xff]   ;;  %v11149_v27 = vld [vmem:[%s15629_s3 + $0x230] ss:$20 sps:$4 sm:$0xff]  }
  0xeb   : > { %2216 = vmatprep.subr.bf16.mxu0 %v11003_v10  ;;  %4056 = vmatprep.subr.bf16.mxu1 %v11067_v28  ;;  %v11062_v10 = vld [vmem:[%s15658_s1 + $0x6d8] ss:$28 sps:$4 sm:$0xff]   ;;  %v11157_v28 = vld [vmem:[%s15629_s3 + $0x25c] ss:$20 sps:$4 sm:$0xff]  }
  0xed   : > { %2208 = vmatmul.mubr.bf16.vlgmr.msra.gmra.mrb[4].mxu0 %v12565_v17  ;;  %2330 = vmatmul.mubr.bf16.vlgmr.msra.gmra.mrb[8].mxu1 %v12764_v24  ;;  %v11011_v17 = vld [vmem:[%s15658_s1 + $0x400] ss:$28 sps:$4 sm:$0xff]   ;;  %s12119_s1 = scalar_lea.vmem %s12118_s21, 64 }
  0xee   : > { %2217 = vmatpush1.bf16.msra.mxu0 %v11001_v29  ;;  %2248 = vmatprep.mubr.bf16.mxu0 %v12576_v21  ;;  %v11085_v21 = vld [vmem:[%s15629_s3 + $0x7c] ss:$20 sps:$4 sm:$0xff]   ;;  %v11070_v29 = vld [vmem:[%s15629_s3 + $0xc] ss:$20 sps:$4 sm:$0xff]   ;;  %p12121_p3 = scmp.lt.s32.totalorder %s12119_s1, %s12113_s17 }
  0xef   : > { %2218 = vmatprep.subr.bf16.mxu0 %v11008_v30  ;;  %4057 = vmatpush1.bf16.msra.mxu1 %v11065_v31  ;;  %v11155_v30 = vld [vmem:[%s15629_s3 + $0x258] ss:$20 sps:$4 sm:$0xff]  }
  0xf0   : > { %4058 = vmatprep.subr.bf16.mxu1 %v11073_v32  ;;  %v11163_v31 = vld [vmem:[%s15629_s3 + $0x284] ss:$20 sps:$4 sm:$0xff]   ;;  %v11068_v32 = vld [vmem:[%s15629_s3 + $0x8] ss:$20 sps:$4 sm:$0xff]   ;;  %p12122_p5 = por %p12121_p3, %p12120_p2 }
  0xf2   : > { %2219 = vmatpush1.bf16.msra.mxu0 %v11006_v33  ;;  %v11076_v33 = vld [vmem:[%s15629_s3 + $0x34] ss:$20 sps:$4 sm:$0xff]   ;;  %p12123_p6 = pnand %p12122_p5, %p12116_p1 }
  0xf3   : > { %2220 = vmatprep.subr.bf16.mxu0 %v11013_v34  ;;  %4059 = vmatpush1.bf16.msra.mxu1 %v11071_v61  ;;  %v11074_v34 = vld [vmem:[%s15629_s3 + $0x30] ss:$20 sps:$4 sm:$0xff]  }
  0xf4   : > { %4060 = vmatprep.subr.bf16.mxu1 %v11079_v35  ;;  %v11082_v61 = vld [vmem:[%s15629_s3 + $0x5c] ss:$20 sps:$4 sm:$0xff]   ;;  %v11080_v35 = vld [vmem:[%s15629_s3 + $0x58] ss:$20 sps:$4 sm:$0xff]  }
  0xf6   : > { %2221 = vmatpush1.bf16.msra.mxu0 %v11011_v17  ;;  %v11088_v17 = vld [vmem:[%s15629_s3 + $0x84] ss:$20 sps:$4 sm:$0xff]  }
  0xf7   : > { %2222 = vmatprep.subr.bf16.mxu0 %v11018_v36  ;;  %4061 = vmatpush1.bf16.msra.mxu1 %v11077_v37  ;;  %v11094_v36 = vld [vmem:[%s15629_s3 + $0xac] ss:$20 sps:$4 sm:$0xff]   ;;  %v11092_v37 = vld [vmem:[%s15629_s3 + $0xa8] ss:$20 sps:$4 sm:$0xff]  }
  0xf8   : > { %4062 = vmatprep.subr.bf16.mxu1 %v11085_v21  ;;  %v11100_v21 = vld [vmem:[%s15629_s3 + $0xd4] ss:$20 sps:$4 sm:$0xff]  }
  0xfa   : > { %2223 = vmatpush1.bf16.msra.mxu0 %v11016_v38  ;;  %v11098_v38 = vld [vmem:[%s15629_s3 + $0xd0] ss:$20 sps:$4 sm:$0xff]  }
  0xfb   : > { %2224 = vmatprep.subr.bf16.mxu0 %v11023_v39  ;;  %4063 = vmatpush1.bf16.msra.mxu1 %v11083_v40  ;;  %v11106_v39 = vld [vmem:[%s15629_s3 + $0xfc] ss:$20 sps:$4 sm:$0xff]   ;;  %v11104_v40 = vld [vmem:[%s15629_s3 + $0xf8] ss:$20 sps:$4 sm:$0xff]  }
  0xfc   : > { %4064 = vmatprep.subr.bf16.mxu1 %v11091_v41  ;;  %v11112_v41 = vld [vmem:[%s15629_s3 + $0x124] ss:$20 sps:$4 sm:$0xff]  }
  0xfe   : > { %2225 = vmatpush1.bf16.msra.mxu0 %v11021_v42  ;;  %v11110_v42 = vld [vmem:[%s15629_s3 + $0x120] ss:$20 sps:$4 sm:$0xff]  }
  0xff   : > { %2226 = vmatprep.subr.bf16.mxu0 %v11028_v43  ;;  %4065 = vmatpush1.bf16.msra.mxu1 %v11089_v45  ;;  %v11118_v43 = vld [vmem:[%s15629_s3 + $0x14c] ss:$20 sps:$4 sm:$0xff]   ;;  %v11116_v45 = vld [vmem:[%s15629_s3 + $0x148] ss:$20 sps:$4 sm:$0xff]  }
 0x100   : > { %4066 = vmatprep.subr.bf16.mxu1 %v11097_v46  ;;  %v11124_v46 = vld [vmem:[%s15629_s3 + $0x174] ss:$20 sps:$4 sm:$0xff]  }
 0x102   : > { %2227 = vmatpush1.bf16.msra.mxu0 %v11026_v47  ;;  %v11122_v47 = vld [vmem:[%s15629_s3 + $0x170] ss:$20 sps:$4 sm:$0xff]  }
 0x103   : > { %2228 = vmatprep.subr.bf16.mxu0 %v11033_v48  ;;  %4067 = vmatpush1.bf16.msra.mxu1 %v11095_v49  ;;  %v11130_v48 = vld [vmem:[%s15629_s3 + $0x19c] ss:$20 sps:$4 sm:$0xff]   ;;  %v11128_v49 = vld [vmem:[%s15629_s3 + $0x198] ss:$20 sps:$4 sm:$0xff]  }
 0x104   : > { %4068 = vmatprep.subr.bf16.mxu1 %v11103_v52  ;;  %v11134_v52 = vld [vmem:[%s15629_s3 + $0x1c0] ss:$20 sps:$4 sm:$0xff]  }
 0x106   : > { %2229 = vmatpush1.bf16.msra.mxu0 %v11031_v51  ;;  %v11136_v51 = vld [vmem:[%s15629_s3 + $0x1c4] ss:$20 sps:$4 sm:$0xff]  }
 0x107   : > { %2230 = vmatprep.subr.bf16.mxu0 %v11038_v53  ;;  %4069 = vmatpush1.bf16.msra.mxu1 %v11101_v54  ;;  %v11142_v53 = vld [vmem:[%s15629_s3 + $0x1ec] ss:$20 sps:$4 sm:$0xff]   ;;  %v11140_v54 = vld [vmem:[%s15629_s3 + $0x1e8] ss:$20 sps:$4 sm:$0xff]  }
 0x108   : > { %4070 = vmatprep.subr.bf16.mxu1 %v11109_v55  ;;  %v11148_v55 = vld [vmem:[%s15629_s3 + $0x214] ss:$20 sps:$4 sm:$0xff]  }
 0x10a   : > { %2231 = vmatpush1.bf16.msra.mxu0 %v11036_v56  ;;  %v11146_v56 = vld [vmem:[%s15629_s3 + $0x210] ss:$20 sps:$4 sm:$0xff]  }
 0x10b   : > { %2232 = vmatprep.subr.bf16.mxu0 %v11043_v57  ;;  %4071 = vmatpush1.bf16.msra.mxu1 %v11107_v58  ;;  %v11154_v57 = vld [vmem:[%s15629_s3 + $0x23c] ss:$20 sps:$4 sm:$0xff]   ;;  %v11152_v58 = vld [vmem:[%s15629_s3 + $0x238] ss:$20 sps:$4 sm:$0xff]  }
 0x10c   : > { %4072 = vmatprep.subr.bf16.mxu1 %v11115_v59  ;;  %v11160_v59 = vld [vmem:[%s15629_s3 + $0x264] ss:$20 sps:$4 sm:$0xff]  }
 0x10e   : > { %2233 = vmatpush1.bf16.msra.mxu0 %v11041_v60  ;;  %v11158_v60 = vld [vmem:[%s15629_s3 + $0x260] ss:$20 sps:$4 sm:$0xff]  }
 0x10f   : > { %2234 = vmatprep.subr.bf16.mxu0 %v11046_v62  ;;  %4073 = vmatpush1.bf16.msra.mxu1 %v11113_v63  ;;  %v11166_v62 = vld [vmem:[%s15629_s3 + $0x28c] ss:$20 sps:$4 sm:$0xff]  }
 0x110   : > { %4074 = vmatprep.subr.bf16.mxu1 %v11121_v1  ;;  %v13259_v63 = vld [vmem:[%s15628_s2] sm:$0x7f]  ;;  %v13265_v1 = vsub.s32 2, %v12465_v44 }
 0x112   : > { %2235 = vmatpush1.bf16.msra.mxu0 %v11044_v0  ;;  %v13262_v0 = vsub.s32 0, %v12465_v44 }
 0x113   : > { %2236 = vmatprep.subr.bf16.mxu0 %v11049_v2  ;;  %4075 = vmatpush1.bf16.msra.mxu1 %v11119_v3  ;;  %v13268_v2 = vsub.s32 1, %v12465_v44  ;;  %v13271_v3 = vsub.s32 3, %v12465_v44 }
 0x114   : > { %4076 = vmatprep.subr.bf16.mxu1 %v11127_v4  ;;  %v827_v4 = vrot.slane %v13259_v63, %v13262_v0 }
 0x116   : > { %2237 = vmatpush1.bf16.msra.mxu0 %v11047_v5  ;;  %v835_v5 = vrot.slane %v13259_v63, %v13265_v1 }
 0x117   : > { %2238 = vmatprep.subr.bf16.mxu0 %v11052_v6  ;;  %4077 = vmatpush1.bf16.msra.mxu1 %v11125_v7  ;;  %v2337_v6 = vld [vmem:[#allocation2] sm:$0xff]  ;;  %v831_v7 = vrot.slane %v13259_v63, %v13268_v2 }
 0x118   : > { %4078 = vmatprep.subr.bf16.mxu1 %v11133_v9  ;;  %vm2339_vm7 = vcmp.gt.f32.partialorder %v2337_v6, 0.5 }
 0x11a   : > { %2239 = vmatpush1.bf16.msra.mxu0 %v11050_v8  ;;  %v839_v8 = vrot.slane %v13259_v63, %v13271_v3 }
 0x11b   : > { %2240 = vmatprep.subr.bf16.mxu0 %v11055_v11  ;;  %4079 = vmatpush1.bf16.msra.mxu1 %v11131_v12 }
 0x11c   : > { %4080 = vmatprep.subr.bf16.mxu1 %v11139_v13 }
 0x11e   : > { %2241 = vmatpush1.bf16.msra.mxu0 %v11053_v14 }
 0x11f   : > { %2242 = vmatprep.subr.bf16.mxu0 %v11058_v15  ;;  %4081 = vmatpush1.bf16.msra.mxu1 %v11137_v16 }
 0x120   : > { %4082 = vmatprep.subr.bf16.mxu1 %v11145_v19 }
 0x122   : > { %2243 = vmatpush1.bf16.msra.mxu0 %v11056_v18 }
 0x123   : > { %2244 = vmatprep.subr.bf16.mxu0 %v11061_v20  ;;  %4083 = vmatpush1.bf16.msra.mxu1 %v11143_v22 }
 0x124   : > { %4084 = vmatprep.subr.bf16.mxu1 %v11151_v25 }
 0x126   : > { %2245 = vmatpush1.bf16.msra.mxu0 %v11059_v23 }
 0x127   : > { %2246 = vmatprep.subr.bf16.mxu0 %v11064_v26  ;;  %4085 = vmatpush1.bf16.msra.mxu1 %v11149_v27  ;;  %v12195_v27 = vmov 0.0  }
 0x128   : > { %4086 = vmatprep.subr.bf16.mxu1 %v11157_v28 }
 0x12a   : > { %2247 = vmatpush1.bf16.msra.mxu0 %v11062_v10  ;;  %v9550_v10 = vsel %vm2339_vm7, 1.0, %v12195_v27  ;;  %vm4931_vm7 = vcmask 523264  }
 0x12b   : > { %4220 = vmatprep.subr.bf16.mxu0 %v11070_v29  ;;  %4087 = vmatpush1.bf16.msra.mxu1 %v11155_v30  ;;  %v2345_v29 = vmul.f32 0.8187308, %v2337_v6 }
 0x12c   : > { %4097 = vmatprep.subr.bf16.mxu1 %v11163_v31 }
 0x12d   : > { %2249 = vmatmul.mubr.bf16.vlgmr.msra.gmra.mrb[4].mxu0 %v12764_v24  ;;  %v11086_v24 = vld [vmem:[%s15629_s3 + $0x80] ss:$20 sps:$4 sm:$0xff]  }
 0x12e   : > { %4221 = vmatpush1.bf16.msra.mxu0 %v11068_v32  ;;  %v2391_v32 = vmul.f32 0.5, %v9550_v10  ;;  %v11217_v10 = vld [vmem:[%s15629_s3 + $0x3ec] ss:$20 sps:$4 sm:$0xff]  }
 0x12f   : > { %4222 = vmatprep.subr.bf16.mxu0 %v11076_v33 }
 0x132   : > { %4223 = vmatpush1.bf16.msra.mxu0 %v11074_v34 }
 0x133   : > { %4224 = vmatprep.subr.bf16.mxu0 %v11082_v61 }
 0x136   : > { %4225 = vmatpush1.bf16.msra.mxu0 %v11080_v35 }
 0x137   : > { %4226 = vmatprep.subr.bf16.mxu0 %v11088_v17 }
 0x13a   : > { %4227 = vmatpush1.bf16.msra.mxu0 %v11086_v24 }
 0x13b   : > { %4228 = vmatprep.subr.bf16.mxu0 %v11094_v36  ;;  %v11161_v36 = vld [vmem:[%s15629_s3 + $0x280] ss:$20 sps:$4 sm:$0xff]  }
 0x13e   : > { %4229 = vmatpush1.bf16.msra.mxu0 %v11092_v37  ;;  %v11164_v37 = vld [vmem:[%s15629_s3 + $0x288] ss:$20 sps:$4 sm:$0xff]  }
 0x13f   : > { %4230 = vmatprep.subr.bf16.mxu0 %v11100_v21 }
 0x142   : > { %4231 = vmatpush1.bf16.msra.mxu0 %v11098_v38 }
 0x143   : > { %4232 = vmatprep.subr.bf16.mxu0 %v11106_v39 }
 0x146   : > { %4233 = vmatpush1.bf16.msra.mxu0 %v11104_v40  ;;  %v11169_v40 = vld [vmem:[%s15629_s3 + $0x2ac] ss:$20 sps:$4 sm:$0xff]  }
 0x147   : > { %4234 = vmatprep.subr.bf16.mxu0 %v11112_v41  ;;  %v11172_v41 = vld [vmem:[%s15629_s3 + $0x2b4] ss:$20 sps:$4 sm:$0xff]  }
 0x14a   : > { %4235 = vmatpush1.bf16.msra.mxu0 %v11110_v42 }
 0x14b   : > { %4236 = vmatprep.subr.bf16.mxu0 %v11118_v43 }
 0x14e   : > { %4237 = vmatpush1.bf16.msra.mxu0 %v11116_v45  ;;  %v11167_v45 = vld [vmem:[%s15629_s3 + $0x2a8] ss:$20 sps:$4 sm:$0xff]  }
 0x14f   : > { %4238 = vmatprep.subr.bf16.mxu0 %v11124_v46  ;;  %v11170_v46 = vld [vmem:[%s15629_s3 + $0x2b0] ss:$20 sps:$4 sm:$0xff]  }
 0x152   : > { %4239 = vmatpush1.bf16.msra.mxu0 %v11122_v47  ;;  %v11175_v47 = vld [vmem:[%s15629_s3 + $0x2d4] ss:$20 sps:$4 sm:$0xff]  }
 0x153   : > { %4240 = vmatprep.subr.bf16.mxu0 %v11130_v48  ;;  %v11178_v48 = vld [vmem:[%s15629_s3 + $0x2dc] ss:$20 sps:$4 sm:$0xff]  }
 0x156   : > { %4241 = vmatpush1.bf16.msra.mxu0 %v11128_v49  ;;  %v11173_v49 = vld [vmem:[%s15629_s3 + $0x2d0] ss:$20 sps:$4 sm:$0xff]  }
 0x157   : > { %4242 = vmatprep.subr.bf16.mxu0 %v11136_v51  ;;  %v11176_v51 = vld [vmem:[%s15629_s3 + $0x2d8] ss:$20 sps:$4 sm:$0xff]  }
 0x15a   : > { %4243 = vmatpush1.bf16.msra.mxu0 %v11134_v52  ;;  %v11181_v52 = vld [vmem:[%s15629_s3 + $0x2fc] ss:$20 sps:$4 sm:$0xff]  }
 0x15b   : > { %4244 = vmatprep.subr.bf16.mxu0 %v11142_v53  ;;  %v11184_v53 = vld [vmem:[%s15629_s3 + $0x304] ss:$20 sps:$4 sm:$0xff]  }
 0x15e   : > { %4245 = vmatpush1.bf16.msra.mxu0 %v11140_v54  ;;  %v11179_v54 = vld [vmem:[%s15629_s3 + $0x2f8] ss:$20 sps:$4 sm:$0xff]  }
 0x15f   : > { %4246 = vmatprep.subr.bf16.mxu0 %v11148_v55  ;;  %v11182_v55 = vld [vmem:[%s15629_s3 + $0x300] ss:$20 sps:$4 sm:$0xff]  }
 0x162   : > { %4247 = vmatpush1.bf16.msra.mxu0 %v11146_v56  ;;  %v11187_v56 = vld [vmem:[%s15629_s3 + $0x324] ss:$20 sps:$4 sm:$0xff]  }
 0x163   : > { %4248 = vmatprep.subr.bf16.mxu0 %v11154_v57  ;;  %v11190_v57 = vld [vmem:[%s15629_s3 + $0x32c] ss:$20 sps:$4 sm:$0xff]  }
 0x166   : > { %4249 = vmatpush1.bf16.msra.mxu0 %v11152_v58 }
 0x167   : > { %4250 = vmatprep.subr.bf16.mxu0 %v11160_v59 }
 0x16a   : > { %4251 = vmatpush1.bf16.msra.mxu0 %v11158_v60  ;;  %v11185_v60 = vld [vmem:[%s15629_s3 + $0x320] ss:$20 sps:$4 sm:$0xff]  }
 0x16b   : > { %4261 = vmatprep.subr.bf16.mxu0 %v11166_v62  ;;  %v11188_v62 = vld [vmem:[%s15629_s3 + $0x328] ss:$20 sps:$4 sm:$0xff]  }
 0x180   : > { %v2086_v9 = vpop.f32.mrb[0].mxu0  ;;  %v2168_v11 = vpop.f32.mrb[0].mxu1 }
 0x181   : > { %v10580_v12 = vadd.f32 %v2086_v9, %v827_v4  ;;  %v10582_v13 = vadd.f32 %v2168_v11, %v835_v5  ;;  %v2088_v14 = vpop.f32.mrb[1].mxu0  ;;  %v2170_v15 = vpop.f32.mrb[1].mxu1  ;;  %v11191_v9 = vld [vmem:[%s15629_s3 + $0x348] ss:$20 sps:$4 sm:$0xff]   ;;  %v11194_v11 = vld [vmem:[%s15629_s3 + $0x350] ss:$20 sps:$4 sm:$0xff]  }
 0x182   : > { %v10581_v16 = vadd.f32 %v2088_v14, %v831_v7  ;;  %v10583_v18 = vadd.f32 %v2170_v15, %v839_v8  ;;  %v2090_v19 = vpop.f32.mrb[2].mxu0  ;;  %v2172_v20 = vpop.f32.mrb[2].mxu1  ;;  %v11193_v7 = vld [vmem:[%s15629_s3 + $0x34c] ss:$20 sps:$4 sm:$0xff]   ;;  %v11196_v8 = vld [vmem:[%s15629_s3 + $0x354] ss:$20 sps:$4 sm:$0xff]  }
 0x183   : > { %v2091_v22 = vpop.f32.mrb[3].mxu0  ;;  %v2173_v23 = vpop.f32.mrb[3].mxu1  ;;  %v11197_v14 = vld [vmem:[%s15629_s3 + $0x370] ss:$20 sps:$4 sm:$0xff]   ;;  %v11200_v15 = vld [vmem:[%s15629_s3 + $0x378] ss:$20 sps:$4 sm:$0xff]  }
 0x184   : > { %v2354_v25 = vcombine.low %v10580_v12, %v10581_v16  ;;  %v2355_v26 = vcombine.low %v10582_v13, %v10583_v18  ;;  %v11199_v12 = vld [vmem:[%s15629_s3 + $0x374] ss:$20 sps:$4 sm:$0xff]   ;;  %v11202_v13 = vld [vmem:[%s15629_s3 + $0x37c] ss:$20 sps:$4 sm:$0xff]   ;;  %v11208_v18 = vld [vmem:[%s15629_s3 + $0x3a4] ss:$20 sps:$4 sm:$0xff]  }
 0x185   : > { %v11205_v16 = vld [vmem:[%s15629_s3 + $0x39c] ss:$20 sps:$4 sm:$0xff]   ;;  %v11203_v19 = vld [vmem:[%s15629_s3 + $0x398] ss:$20 sps:$4 sm:$0xff]   ;;  %v11206_v20 = vld [vmem:[%s15629_s3 + $0x3a0] ss:$20 sps:$4 sm:$0xff]  }
 0x186   : > { %v2362_v28 = vrot.slane %v2354_v25, %v12483_v50  ;;  %v2369_v30 = vrot.slane %v2355_v26, %v12483_v50  ;;  %v11211_v22 = vld [vmem:[%s15629_s3 + $0x3c4] ss:$20 sps:$4 sm:$0xff]   ;;  %v11214_v23 = vld [vmem:[%s15629_s3 + $0x3cc] ss:$20 sps:$4 sm:$0xff]   ;;  %v11212_v26 = vld [vmem:[%s15629_s3 + $0x3c8] ss:$20 sps:$4 sm:$0xff]  }
 0x187   : > { %v11209_v25 = vld [vmem:[%s15629_s3 + $0x3c0] ss:$20 sps:$4 sm:$0xff]  }
 0x188   : > { %v2370_v31 = vcombine.low %v2362_v28, %v2369_v30  ;;  %v11220_v28 = vld [vmem:[%s15629_s3 + $0x3f4] ss:$20 sps:$4 sm:$0xff]   ;;  %v11218_v30 = vld [vmem:[%s15629_s3 + $0x3f0] ss:$20 sps:$4 sm:$0xff]  }
 0x18a   : > { %v2389_v33 = vadd.f32 %v2370_v31, %v2345_v29  ;;  %v11215_v29 = vld [vmem:[%s15629_s3 + $0x3e8] ss:$20 sps:$4 sm:$0xff]  }
 0x18b   : > { %v11223_v31 = vld [vmem:[%s15629_s3 + $0x414] ss:$20 sps:$4 sm:$0xff]  }
 0x18c   : > { %v2393_v34 = vsub.f32 %v2389_v33, %v2391_v32  ;;  %v850_v32 = vsub.s32 6, %v12465_v44  ;;  %v11226_v33 = vld [vmem:[%s15629_s3 + $0x41c] ss:$20 sps:$4 sm:$0xff]  }
 0x18e   : > { %2395 = vst [vmem:[#allocation2] sm:$0xff] %v2393_v34  ;;  %vm2402_vm8 = vcmp.gt.f32.partialorder %v2393_v34, 0.5  ;;  %v11221_v34 = vld [vmem:[%s15629_s3 + $0x410] ss:$20 sps:$4 sm:$0xff]  }
 0x18f   : > { %v9552_v61 = vsel %vm2402_vm8, 1.0, %v12195_v27 }
 0x190   : > { %v2417_v35 = vrot.slane %v9552_v61, %v12483_v50  ;;  %v2410_v17 = vcombine.high %v9552_v61, %v9552_v61  ;;  %v11224_v61 = vld [vmem:[%s15629_s3 + $0x418] ss:$20 sps:$4 sm:$0xff]  }
 0x192   : > { %v2425_v24 = vcombine.high %v2417_v35, %v2417_v35  ;;  %v13293_v21 = vrot.slane %v2410_v17, %v12483_v50  ;;  %v13305_v42 = vpack.c.bf16 %v2417_v35, %v2417_v35  ;;  %v11229_v35 = vld [vmem:[%s15629_s3 + $0x43c] ss:$20 sps:$4 sm:$0xff]   ;;  %v851_v17 = vrot.slane %v13259_v63, %v850_v32 }
 0x194   : > { %v13295_v38 = vpack.c.bf16 %v2425_v24, %v2425_v24  ;;  %v2426_v39 = vcombine.high %v13293_v21, %v13293_v21  ;;  %v11232_v24 = vld [vmem:[%s15629_s3 + $0x444] ss:$20 sps:$4 sm:$0xff]  }
 0x196   : > { %4088 = vmatprep.mubr.bf16.mxu1 %v13295_v38  ;;  %4252 = vmatprep.mubr.bf16.mxu0 %v13295_v38  ;;  %v13309_v43 = vpack.c.bf16 %v2426_v39, %v2426_v39  ;;  %v11235_v39 = vld [vmem:[%s15629_s3 + $0x464] ss:$20 sps:$4 sm:$0xff]  }
 0x197   : > { %4089 = vmatmul.mubr.bf16.vlgmr.msra.gmra.mrb[12].mxu1 %v13305_v42  ;;  %4253 = vmatmul.mubr.bf16.vlgmr.msra.gmra.mrb[8].mxu0 %v13305_v42 }
 0x198   : > { %4098 = vmatpush1.bf16.msra.mxu1 %v11161_v36  ;;  %4262 = vmatpush1.bf16.msra.mxu0 %v11164_v37  ;;  %v11227_v36 = vld [vmem:[%s15629_s3 + $0x438] ss:$20 sps:$4 sm:$0xff]   ;;  %v11230_v37 = vld [vmem:[%s15629_s3 + $0x440] ss:$20 sps:$4 sm:$0xff]  }
 0x199   : > { %4129 = vmatprep.mubr.bf16.mxu1 %v13309_v43  ;;  %4293 = vmatprep.mubr.bf16.mxu0 %v13309_v43 }
 0x19a   : > { %4099 = vmatprep.subr.bf16.mxu1 %v11169_v40  ;;  %4263 = vmatprep.subr.bf16.mxu0 %v11172_v41  ;;  %v11238_v41 = vld [vmem:[%s15629_s3 + $0x46c] ss:$20 sps:$4 sm:$0xff]  }
 0x19c   : > { %4100 = vmatpush1.bf16.msra.mxu1 %v11167_v45  ;;  %4264 = vmatpush1.bf16.msra.mxu0 %v11170_v46  ;;  %v11233_v46 = vld [vmem:[%s15629_s3 + $0x460] ss:$20 sps:$4 sm:$0xff]  }
 0x19d   : > { %4101 = vmatprep.subr.bf16.mxu1 %v11175_v47  ;;  %4265 = vmatprep.subr.bf16.mxu0 %v11178_v48  ;;  %v11236_v47 = vld [vmem:[%s15629_s3 + $0x468] ss:$20 sps:$4 sm:$0xff]  }
 0x1a0   : > { %4102 = vmatpush1.bf16.msra.mxu1 %v11173_v49  ;;  %4266 = vmatpush1.bf16.msra.mxu0 %v11176_v51  ;;  %v10345_v58 = vpop.f32.mrb[4].mxu1 }
 0x1a1   : > { %4103 = vmatprep.subr.bf16.mxu1 %v11181_v52  ;;  %4267 = vmatprep.subr.bf16.mxu0 %v11184_v53  ;;  %v10346_v59 = vpop.f32.mrb[5].mxu1  ;;  %v11241_v52 = vld [vmem:[%s15629_s3 + $0x48c] ss:$20 sps:$4 sm:$0xff]  }
 0x1a2   : > { %v13357_v4 = vadd.f32 %v10346_v59, %v10345_v58  ;;  %v10348_v5 = vpop.f32.mrb[6].mxu1  ;;  %v11250_v58 = vld [vmem:[%s15629_s3 + $0x4bc] ss:$20 sps:$4 sm:$0xff]  }
 0x1a3   : > { %v10349_v6 = vpop.f32.mrb[7].mxu1  ;;  %v11245_v59 = vld [vmem:[%s15629_s3 + $0x4b0] ss:$20 sps:$4 sm:$0xff]   ;;  %v11251_v5 = vld [vmem:[%s15629_s3 + $0x4d8] ss:$20 sps:$4 sm:$0xff]  }
 0x1a4   : > { %4104 = vmatpush1.bf16.msra.mxu1 %v11179_v54  ;;  %4268 = vmatpush1.bf16.msra.mxu0 %v11182_v55  ;;  %v2292_v63 = vadd.f32 %v13357_v4, %v851_v17  ;;  %v11244_v54 = vld [vmem:[%s15629_s3 + $0x494] ss:$20 sps:$4 sm:$0xff]   ;;  %v11256_v4 = vld [vmem:[%s15629_s3 + $0x4e4] ss:$20 sps:$4 sm:$0xff]   ;;  %v11298_v17 = vld [vmem:[%s15629_s3 + $0x5fc] ss:$20 sps:$4 sm:$0xff]  }
 0x1a5   : > { %4105 = vmatprep.subr.bf16.mxu1 %v11187_v56  ;;  %4269 = vmatprep.subr.bf16.mxu0 %v11190_v57  ;;  %v11239_v55 = vld [vmem:[%s15629_s3 + $0x488] ss:$20 sps:$4 sm:$0xff]   ;;  %v11242_v56 = vld [vmem:[%s15629_s3 + $0x490] ss:$20 sps:$4 sm:$0xff]   ;;  %v11254_v6 = vld [vmem:[%s15629_s3 + $0x4e0] ss:$20 sps:$4 sm:$0xff]  }
 0x1a6   : > { %v11247_v57 = vld [vmem:[%s15629_s3 + $0x4b4] ss:$20 sps:$4 sm:$0xff]  }
 0x1a8   : > { %4106 = vmatpush1.bf16.msra.mxu1 %v11185_v60  ;;  %4270 = vmatpush1.bf16.msra.mxu0 %v11188_v62  ;;  %v11248_v60 = vld [vmem:[%s15629_s3 + $0x4b8] ss:$20 sps:$4 sm:$0xff]   ;;  %v11253_v62 = vld [vmem:[%s15629_s3 + $0x4dc] ss:$20 sps:$4 sm:$0xff]  }
 0x1a9   : > { %4107 = vmatprep.subr.bf16.mxu1 %v11193_v7  ;;  %4271 = vmatprep.subr.bf16.mxu0 %v11196_v8  ;;  %v11259_v7 = vld [vmem:[%s15629_s3 + $0x504] ss:$20 sps:$4 sm:$0xff]   ;;  %v11262_v8 = vld [vmem:[%s15629_s3 + $0x50c] ss:$20 sps:$4 sm:$0xff]  }
 0x1ac   : > { %4108 = vmatpush1.bf16.msra.mxu1 %v11191_v9  ;;  %4272 = vmatpush1.bf16.msra.mxu0 %v11194_v11  ;;  %v11257_v9 = vld [vmem:[%s15629_s3 + $0x500] ss:$20 sps:$4 sm:$0xff]   ;;  %v11260_v11 = vld [vmem:[%s15629_s3 + $0x508] ss:$20 sps:$4 sm:$0xff]  }
 0x1ad   : > { %4109 = vmatprep.subr.bf16.mxu1 %v11199_v12  ;;  %4273 = vmatprep.subr.bf16.mxu0 %v11202_v13  ;;  %v11265_v12 = vld [vmem:[%s15629_s3 + $0x52c] ss:$20 sps:$4 sm:$0xff]   ;;  %v13515_v13 = vpack.c.bf16 %v13293_v21, %v13293_v21  ;;  %v11271_v21 = vld [vmem:[%s15629_s3 + $0x554] ss:$20 sps:$4 sm:$0xff]  }
 0x1b0   : > { %4110 = vmatpush1.bf16.msra.mxu1 %v11197_v14  ;;  %4274 = vmatpush1.bf16.msra.mxu0 %v11200_v15  ;;  %v11268_v14 = vld [vmem:[%s15629_s3 + $0x534] ss:$20 sps:$4 sm:$0xff]  }
 0x1b1   : > { %4111 = vmatprep.subr.bf16.mxu1 %v11205_v16  ;;  %4275 = vmatprep.subr.bf16.mxu0 %v11208_v18  ;;  %v11263_v15 = vld [vmem:[%s15629_s3 + $0x528] ss:$20 sps:$4 sm:$0xff]   ;;  %v11266_v16 = vld [vmem:[%s15629_s3 + $0x530] ss:$20 sps:$4 sm:$0xff]  }
 0x1b2   : > { %v11274_v18 = vld [vmem:[%s15629_s3 + $0x55c] ss:$20 sps:$4 sm:$0xff]  }
 0x1b4   : > { %4112 = vmatpush1.bf16.msra.mxu1 %v11203_v19  ;;  %4276 = vmatpush1.bf16.msra.mxu0 %v11206_v20  ;;  %v11269_v19 = vld [vmem:[%s15629_s3 + $0x550] ss:$20 sps:$4 sm:$0xff]   ;;  %v11272_v20 = vld [vmem:[%s15629_s3 + $0x558] ss:$20 sps:$4 sm:$0xff]  }
 0x1b5   : > { %4113 = vmatprep.subr.bf16.mxu1 %v11211_v22  ;;  %4277 = vmatprep.subr.bf16.mxu0 %v11214_v23  ;;  %v11277_v22 = vld [vmem:[%s15629_s3 + $0x57c] ss:$20 sps:$4 sm:$0xff]   ;;  %v11280_v23 = vld [vmem:[%s15629_s3 + $0x584] ss:$20 sps:$4 sm:$0xff]  }
 0x1b8   : > { %4114 = vmatpush1.bf16.msra.mxu1 %v11209_v25  ;;  %4278 = vmatpush1.bf16.msra.mxu0 %v11212_v26  ;;  %v11275_v25 = vld [vmem:[%s15629_s3 + $0x578] ss:$20 sps:$4 sm:$0xff]   ;;  %v11278_v26 = vld [vmem:[%s15629_s3 + $0x580] ss:$20 sps:$4 sm:$0xff]  }
 0x1b9   : > { %4115 = vmatprep.subr.bf16.mxu1 %v11217_v10  ;;  %4279 = vmatprep.subr.bf16.mxu0 %v11220_v28  ;;  %v11283_v10 = vld [vmem:[%s15629_s3 + $0x5a4] ss:$20 sps:$4 sm:$0xff]   ;;  %v11286_v28 = vld [vmem:[%s15629_s3 + $0x5ac] ss:$20 sps:$4 sm:$0xff]  }
 0x1bc   : > { %4116 = vmatpush1.bf16.msra.mxu1 %v11215_v29  ;;  %4280 = vmatpush1.bf16.msra.mxu0 %v11218_v30  ;;  %v11281_v29 = vld [vmem:[%s15629_s3 + $0x5a0] ss:$20 sps:$4 sm:$0xff]   ;;  %v11284_v30 = vld [vmem:[%s15629_s3 + $0x5a8] ss:$20 sps:$4 sm:$0xff]  }
 0x1bd   : > { %4117 = vmatprep.subr.bf16.mxu1 %v11223_v31  ;;  %4281 = vmatprep.subr.bf16.mxu0 %v11226_v33  ;;  %v11289_v31 = vld [vmem:[%s15629_s3 + $0x5cc] ss:$20 sps:$4 sm:$0xff]   ;;  %v11292_v33 = vld [vmem:[%s15629_s3 + $0x5d4] ss:$20 sps:$4 sm:$0xff]  }
 0x1c0   : > { %4118 = vmatpush1.bf16.msra.mxu1 %v11221_v34  ;;  %4282 = vmatpush1.bf16.msra.mxu0 %v11224_v61  ;;  %v10367_v40 = vpop.f32.mrb[8].mxu1  ;;  %v11287_v34 = vld [vmem:[%s15629_s3 + $0x5c8] ss:$20 sps:$4 sm:$0xff]   ;;  %v11290_v61 = vld [vmem:[%s15629_s3 + $0x5d0] ss:$20 sps:$4 sm:$0xff]  }
 0x1c1   : > { %4119 = vmatprep.subr.bf16.mxu1 %v11229_v35  ;;  %4283 = vmatprep.subr.bf16.mxu0 %v11232_v24  ;;  %v10368_v45 = vpop.f32.mrb[9].mxu1  ;;  %v11295_v35 = vld [vmem:[%s15629_s3 + $0x5f4] ss:$20 sps:$4 sm:$0xff]   ;;  %v11293_v24 = vld [vmem:[%s15629_s3 + $0x5f0] ss:$20 sps:$4 sm:$0xff]  }
 0x1c2   : > { %v10369_v48 = vadd.f32 %v10368_v45, %v10367_v40  ;;  %v10370_v49 = vpop.f32.mrb[10].mxu1  ;;  %v11302_v40 = vld [vmem:[%s15629_s3 + $0x620] ss:$20 sps:$4 sm:$0xff]  }
 0x1c3   : > { %v10371_v51 = vpop.f32.mrb[11].mxu1  ;;  %v11310_v45 = vld [vmem:[%s15629_s3 + $0x64c] ss:$20 sps:$4 sm:$0xff]   ;;  %v11316_v49 = vld [vmem:[%s15629_s3 + $0x674] ss:$20 sps:$4 sm:$0xff]  }
 0x1c4   : > { %4120 = vmatpush1.bf16.msra.mxu1 %v11227_v36  ;;  %4284 = vmatpush1.bf16.msra.mxu0 %v11230_v37  ;;  %v13463_v53 = vadd.f32 %v10369_v48, %v2292_v63  ;;  %v11296_v36 = vld [vmem:[%s15629_s3 + $0x5f8] ss:$20 sps:$4 sm:$0xff]   ;;  %v11301_v37 = vld [vmem:[%s15629_s3 + $0x61c] ss:$20 sps:$4 sm:$0xff]  }
 0x1c5   : > { %4121 = vmatprep.subr.bf16.mxu1 %v11235_v39  ;;  %4285 = vmatprep.subr.bf16.mxu0 %v11238_v41  ;;  %v11304_v39 = vld [vmem:[%s15629_s3 + $0x624] ss:$20 sps:$4 sm:$0xff]   ;;  %v11313_v48 = vld [vmem:[%s15629_s3 + $0x66c] ss:$20 sps:$4 sm:$0xff]   ;;  %v11311_v51 = vld [vmem:[%s15629_s3 + $0x668] ss:$20 sps:$4 sm:$0xff]  }
 0x1c6   : > { %v11299_v63 = vld [vmem:[%s15629_s3 + $0x618] ss:$20 sps:$4 sm:$0xff]  }
 0x1c7   : > { %v11307_v41 = vld [vmem:[%s15629_s3 + $0x644] ss:$20 sps:$4 sm:$0xff]  }
 0x1c8   : > { %4122 = vmatpush1.bf16.msra.mxu1 %v11233_v46  ;;  %4286 = vmatpush1.bf16.msra.mxu0 %v11236_v47  ;;  %v11305_v46 = vld [vmem:[%s15629_s3 + $0x640] ss:$20 sps:$4 sm:$0xff]   ;;  %v11308_v47 = vld [vmem:[%s15629_s3 + $0x648] ss:$20 sps:$4 sm:$0xff]  }
 0x1c9   : > { %4123 = vmatprep.subr.bf16.mxu1 %v11241_v52  ;;  %4287 = vmatprep.subr.bf16.mxu0 %v11244_v54  ;;  %v11314_v52 = vld [vmem:[%s15629_s3 + $0x670] ss:$20 sps:$4 sm:$0xff]   ;;  %v11319_v54 = vld [vmem:[%s15629_s3 + $0x694] ss:$20 sps:$4 sm:$0xff]  }
 0x1cc   : > { %4124 = vmatpush1.bf16.msra.mxu1 %v11239_v55  ;;  %4288 = vmatpush1.bf16.msra.mxu0 %v11242_v56  ;;  %v11322_v55 = vld [vmem:[%s15629_s3 + $0x69c] ss:$20 sps:$4 sm:$0xff]   ;;  %v13631_v56 = vsub.s32 4, %v12465_v44 }
 0x1cd   : > { %4125 = vmatprep.subr.bf16.mxu1 %v11247_v57  ;;  %4289 = vmatprep.subr.bf16.mxu0 %v11250_v58  ;;  %v11317_v57 = vld [vmem:[%s15629_s3 + $0x690] ss:$20 sps:$4 sm:$0xff]   ;;  %v11320_v58 = vld [vmem:[%s15629_s3 + $0x698] ss:$20 sps:$4 sm:$0xff]  }
 0x1d0   : > { %4126 = vmatpush1.bf16.msra.mxu1 %v11245_v59  ;;  %4290 = vmatpush1.bf16.msra.mxu0 %v11248_v60  ;;  %v846_v59 = vsub.s32 5, %v12465_v44  ;;  %v11325_v60 = vld [vmem:[%s15629_s3 + $0x6bc] ss:$20 sps:$4 sm:$0xff]   ;;  %v12108_v44 = vld [vmem:[%s15637_s11 + $0x604] ss:$16 sps:$4 sm:$0xff]  }
 0x1d1   : > { %4127 = vmatprep.subr.bf16.mxu1 %v11253_v62  ;;  %4291 = vmatprep.subr.bf16.mxu0 %v11256_v4  ;;  %v12112_v62 = vld [vmem:[%s15628_s2] sm:$0x7f] }
 0x1d2   : > { %v843_v4 = vrot.slane %v12112_v62, %v13631_v56 }
 0x1d4   : > { %4128 = vmatpush1.bf16.msra.mxu1 %v11251_v5  ;;  %4292 = vmatpush1.bf16.msra.mxu0 %v11254_v6  ;;  %v2338_v5 = vld [vmem:[#allocation2 + $0x8] sm:$0x3f]  ;;  %v11328_v6 = vld [vmem:[%s15629_s3 + $0x6c4] ss:$20 sps:$4 sm:$0xff]  }
 0x1d5   : > { %4138 = vmatprep.subr.bf16.mxu1 %v11259_v7  ;;  %4302 = vmatprep.subr.bf16.mxu0 %v11262_v8  ;;  %v847_v7 = vrot.slane %v12112_v62, %v846_v59  ;;  %v11323_v8 = vld [vmem:[%s15629_s3 + $0x6b8] ss:$20 sps:$4 sm:$0xff]   ;;  %vm2340_vm11 = vcmp.gt.f32.partialorder %v2338_v5, 0.5 }
 0x1d7   : > { %4130 = vmatmul.mubr.bf16.vlgmr.msra.gmra.mrb[12].mxu1 %v13515_v13  ;;  %4294 = vmatmul.mubr.bf16.vlgmr.msra.gmra.mrb[8].mxu0 %v13515_v13 }
 0x1d8   : > { %4139 = vmatpush1.bf16.msra.mxu1 %v11257_v9  ;;  %4303 = vmatpush1.bf16.msra.mxu0 %v11260_v11  ;;  %v11326_v9 = vld [vmem:[%s15629_s3 + $0x6c0] ss:$20 sps:$4 sm:$0xff]   ;;  %v11331_v11 = vld [vmem:[%s15629_s3 + $0x6e4] ss:$20 sps:$4 sm:$0xff]  }
 0x1d9   : > { %4140 = vmatprep.subr.bf16.mxu1 %v11265_v12  ;;  %4304 = vmatprep.subr.bf16.mxu0 %v11268_v14  ;;  %v11334_v12 = vld [vmem:[%s15629_s3 + $0x6ec] ss:$20 sps:$4 sm:$0xff]  }
 0x1dc   : > { %4141 = vmatpush1.bf16.msra.mxu1 %v11263_v15  ;;  %4305 = vmatpush1.bf16.msra.mxu0 %v11266_v16 }
 0x1dd   : > { %4142 = vmatprep.subr.bf16.mxu1 %v11271_v21  ;;  %4306 = vmatprep.subr.bf16.mxu0 %v11274_v18 }
 0x1e0   : > { %4143 = vmatpush1.bf16.msra.mxu1 %v11269_v19  ;;  %4307 = vmatpush1.bf16.msra.mxu0 %v11272_v20  ;;  %v11329_v19 = vld [vmem:[%s15629_s3 + $0x6e0] ss:$20 sps:$4 sm:$0xff]   ;;  %v11332_v20 = vld [vmem:[%s15629_s3 + $0x6e8] ss:$20 sps:$4 sm:$0xff]  }
 0x1e1   : > { %4144 = vmatprep.subr.bf16.mxu1 %v11277_v22  ;;  %4308 = vmatprep.subr.bf16.mxu0 %v11280_v23  ;;  %v11337_v23 = vld [vmem:[%s15629_s3 + $0x70c] ss:$20 sps:$4 sm:$0xff]  }
 0x1e4   : > { %4145 = vmatpush1.bf16.msra.mxu1 %v11275_v25  ;;  %4309 = vmatpush1.bf16.msra.mxu0 %v11278_v26  ;;  %v11340_v25 = vld [vmem:[%s15629_s3 + $0x714] ss:$20 sps:$4 sm:$0xff]  }
 0x1e5   : > { %4146 = vmatprep.subr.bf16.mxu1 %v11283_v10  ;;  %4310 = vmatprep.subr.bf16.mxu0 %v11286_v28  ;;  %v9551_v28 = vsel %vm2340_vm11, 1.0, %v12195_v27  ;;  %v11372_v26 = vld [vmem:[%s15629_s3 + $0x100] ss:$20 sps:$4 sm:$0xff]   ;;  %vm5160_vm11 = vcmask 261120  }
 0x1e8   : > { %4147 = vmatpush1.bf16.msra.mxu1 %v11281_v29  ;;  %4311 = vmatpush1.bf16.msra.mxu0 %v11284_v30  ;;  %v2385_v29 = vrot.slane %v13463_v53, %v12483_v50  ;;  %v2346_v30 = vmul.f32 0.8187308, %v2338_v5  ;;  %v12196_v5 = vmov 0  }
 0x1e9   : > { %4148 = vmatprep.subr.bf16.mxu1 %v11289_v31  ;;  %4312 = vmatprep.subr.bf16.mxu0 %v11292_v33  ;;  %v11335_v33 = vld [vmem:[%s15629_s3 + $0x708] ss:$20 sps:$4 sm:$0xff]  }
 0x1ec   : > { %4149 = vmatpush1.bf16.msra.mxu1 %v11287_v34  ;;  %4313 = vmatpush1.bf16.msra.mxu0 %v11290_v61  ;;  %v11338_v34 = vld [vmem:[%s15629_s3 + $0x710] ss:$20 sps:$4 sm:$0xff]   ;;  %v11343_v61 = vld [vmem:[%s15629_s3 + $0x734] ss:$20 sps:$4 sm:$0xff]  }
 0x1ed   : > { %4150 = vmatprep.subr.bf16.mxu1 %v11295_v35  ;;  %4314 = vmatprep.subr.bf16.mxu0 %v11298_v17  ;;  %v11346_v35 = vld [vmem:[%s15629_s3 + $0x73c] ss:$20 sps:$4 sm:$0xff]   ;;  %v2392_v17 = vmul.f32 0.5, %v9551_v28 }
 0x1ee   : > { %v11374_v28 = vld [vmem:[%s15629_s3 + $0x128] ss:$20 sps:$4 sm:$0xff]  }
 0x1f0   : > { %4151 = vmatpush1.bf16.msra.mxu1 %v11293_v24  ;;  %4315 = vmatpush1.bf16.msra.mxu0 %v11296_v36 }
 0x1f1   : > { %4152 = vmatprep.subr.bf16.mxu1 %v11301_v37  ;;  %4316 = vmatprep.subr.bf16.mxu0 %v11304_v39  ;;  %v11341_v37 = vld [vmem:[%s15629_s3 + $0x730] ss:$20 sps:$4 sm:$0xff]   ;;  %v11344_v39 = vld [vmem:[%s15629_s3 + $0x738] ss:$20 sps:$4 sm:$0xff]  }
 0x1f4   : > { %4153 = vmatpush1.bf16.msra.mxu1 %v11299_v63  ;;  %4317 = vmatpush1.bf16.msra.mxu0 %v11302_v40  ;;  %v11349_v63 = vld [vmem:[%s15629_s3 + $0x75c] ss:$20 sps:$4 sm:$0xff]  }
 0x1f5   : > { %4154 = vmatprep.subr.bf16.mxu1 %v11307_v41  ;;  %4318 = vmatprep.subr.bf16.mxu0 %v11310_v45  ;;  %v11352_v41 = vld [vmem:[%s15629_s3 + $0x764] ss:$20 sps:$4 sm:$0xff]  }
 0x1f8   : > { %4155 = vmatpush1.bf16.msra.mxu1 %v11305_v46  ;;  %4319 = vmatpush1.bf16.msra.mxu0 %v11308_v47  ;;  %v11347_v46 = vld [vmem:[%s15629_s3 + $0x758] ss:$20 sps:$4 sm:$0xff]   ;;  %v11350_v47 = vld [vmem:[%s15629_s3 + $0x760] ss:$20 sps:$4 sm:$0xff]  }
 0x1f9   : > { %4156 = vmatprep.subr.bf16.mxu1 %v11313_v48  ;;  %4320 = vmatprep.subr.bf16.mxu0 %v11316_v49  ;;  %v11355_v49 = vld [vmem:[%s15629_s3 + $0x784] ss:$20 sps:$4 sm:$0xff]  }
 0x1fc   : > { %4157 = vmatpush1.bf16.msra.mxu1 %v11311_v51  ;;  %4321 = vmatpush1.bf16.msra.mxu0 %v11314_v52  ;;  %v11358_v51 = vld [vmem:[%s15629_s3 + $0x78c] ss:$20 sps:$4 sm:$0xff]  }
 0x1fd   : > { %4158 = vmatprep.subr.bf16.mxu1 %v11319_v54  ;;  %4322 = vmatprep.subr.bf16.mxu0 %v11322_v55  ;;  %v11353_v54 = vld [vmem:[%s15629_s3 + $0x780] ss:$20 sps:$4 sm:$0xff]   ;;  %v11356_v55 = vld [vmem:[%s15629_s3 + $0x788] ss:$20 sps:$4 sm:$0xff]  }
 0x200   : > { %v2250_v14 = vpop.f32.mrb[4].mxu0  ;;  %4159 = vmatpush1.bf16.msra.mxu1 %v11317_v57  ;;  %4323 = vmatpush1.bf16.msra.mxu0 %v11320_v58  ;;  %v11359_v58 = vld [vmem:[%s15629_s3 + $0x150] ss:$20 sps:$4 sm:$0xff]  }
 0x201   : > { %v10584_v15 = vadd.f32 %v2250_v14, %v843_v4  ;;  %v2252_v16 = vpop.f32.mrb[5].mxu0  ;;  %4160 = vmatprep.subr.bf16.mxu1 %v11325_v60  ;;  %4324 = vmatprep.subr.bf16.mxu0 %v11328_v6  ;;  %v11410_v60 = vld [vmem:[%s15631_s5 + $0xc0] sm:$0xff]   ;;  %v11362_v14 = vld [vmem:[%s15629_s3 + $0x38] ss:$20 sps:$4 sm:$0xff]  }
 0x202   : > { %v10585_v21 = vadd.f32 %v2252_v16, %v847_v7  ;;  %v2254_v18 = vpop.f32.mrb[6].mxu0  ;;  %v11360_v7 = vld [vmem:[%s15629_s3 + $0x10] ss:$20 sps:$4 sm:$0xff]   ;;  %v11415_v16 = vld [vmem:[%s15631_s5 + $0x88] sm:$0xff]  }
 0x203   : > { %v2255_v22 = vpop.f32.mrb[7].mxu0  ;;  %v11365_v18 = vld [vmem:[%s15629_s3 + $0x1c8] ss:$20 sps:$4 sm:$0xff]  }
 0x204   : > { %v2371_v10 = vcombine.low %v10584_v15, %v10585_v21  ;;  %4161 = vmatpush1.bf16.msra.mxu1 %v11323_v8  ;;  %4325 = vmatpush1.bf16.msra.mxu0 %v11326_v9  ;;  %v11361_v8 = vld [vmem:[%s15629_s3 + $0x178] ss:$20 sps:$4 sm:$0xff]   ;;  %v11411_v9 = vld [vmem:[%s15631_s5 + $0x80] sm:$0xff]  }
 0x205   : > { %4162 = vmatprep.subr.bf16.mxu1 %v11331_v11  ;;  %4326 = vmatprep.subr.bf16.mxu0 %v11334_v12  ;;  %v11414_v11 = vld [vmem:[%s15631_s5 + $0xc8] sm:$0xff]   ;;  %v11363_v15 = vld [vmem:[%s15629_s3 + $0x1a0] ss:$20 sps:$4 sm:$0xff]  }
 0x206   : > { %v2378_v31 = vrot.slane %v2371_v10, %v12483_v50  ;;  %v11364_v21 = vld [vmem:[%s15629_s3 + $0x60] ss:$20 sps:$4 sm:$0xff]   ;;  %v11369_v22 = vld [vmem:[%s15629_s3 + $0x218] ss:$20 sps:$4 sm:$0xff]   ;;  %v11373_v10 = vld [vmem:[%s15629_s3 + $0x268] ss:$20 sps:$4 sm:$0xff]  }
 0x208   : > { %v2386_v53 = vcombine.low %v2378_v31, %v2385_v29  ;;  %4163 = vmatpush1.bf16.msra.mxu1 %v11329_v19  ;;  %4327 = vmatpush1.bf16.msra.mxu0 %v11332_v20  ;;  %v11366_v19 = vld [vmem:[%s15629_s3 + $0x88] ss:$20 sps:$4 sm:$0xff]   ;;  %v11368_v20 = vld [vmem:[%s15629_s3 + $0xb0] ss:$20 sps:$4 sm:$0xff]   ;;  %v11377_v31 = vld [vmem:[%s15629_s3 + $0x3f8] ss:$20 sps:$4 sm:$0xff]  }
 0x209   : > { %4164 = vmatprep.subr.bf16.mxu1 %v11337_v23  ;;  %4328 = vmatprep.subr.bf16.mxu0 %v11340_v25  ;;  %v11370_v23 = vld [vmem:[%s15629_s3 + $0xd8] ss:$20 sps:$4 sm:$0xff]   ;;  %v11371_v25 = vld [vmem:[%s15629_s3 + $0x240] ss:$20 sps:$4 sm:$0xff]   ;;  %v11375_v29 = vld [vmem:[%s15629_s3 + $0x3d0] ss:$20 sps:$4 sm:$0xff]  }
 0x20a   : > { %v2390_v24 = vadd.f32 %v2386_v53, %v2346_v30  ;;  %v11376_v30 = vld [vmem:[%s15629_s3 + $0x290] ss:$20 sps:$4 sm:$0xff]  }
 0x20b   : > { %v11384_v53 = vld [vmem:[%s15629_s3 + $0x330] ss:$20 sps:$4 sm:$0xff]  }
 0x20c   : > { %4165 = vmatpush1.bf16.msra.mxu1 %v11335_v33  ;;  %4329 = vmatpush1.bf16.msra.mxu0 %v11338_v34  ;;  %v2394_v40 = vsub.f32 %v2390_v24, %v2392_v17  ;;  %v11378_v33 = vld [vmem:[%s15629_s3 + $0x2b8] ss:$20 sps:$4 sm:$0xff]   ;;  %v11379_v34 = vld [vmem:[%s15629_s3 + $0x420] ss:$20 sps:$4 sm:$0xff]  }
 0x20d   : > { %4166 = vmatprep.subr.bf16.mxu1 %v11343_v61  ;;  %4330 = vmatprep.subr.bf16.mxu0 %v11346_v35  ;;  %v11380_v61 = vld [vmem:[%s15629_s3 + $0x2e0] ss:$20 sps:$4 sm:$0xff]   ;;  %v11383_v35 = vld [vmem:[%s15629_s3 + $0x470] ss:$20 sps:$4 sm:$0xff]   ;;  %v11385_v17 = vld [vmem:[%s15629_s3 + $0x498] ss:$20 sps:$4 sm:$0xff]  }
 0x20e   : > { %2401 = vst.msk [vmem:[#allocation2 + $0x8] sm:$0x3f] %vm13698_vm14, %v2394_v40  ;;  %vm2403_vm15 = vcmp.gt.f32.partialorder %v2394_v40, 0.5  ;;  %v11386_v24 = vld [vmem:[%s15629_s3 + $0x358] ss:$20 sps:$4 sm:$0xff]  }
 0x20f   : > { %v9553_v45 = vsel %vm2403_vm15, 1.0, %v12195_v27  ;;  %v11390_v40 = vld [vmem:[%s15629_s3 + $0x3a8] ss:$20 sps:$4 sm:$0xff]  }
 0x210   : > { %4167 = vmatpush1.bf16.msra.mxu1 %v11341_v37  ;;  %4331 = vmatpush1.bf16.msra.mxu0 %v11344_v39  ;;  %v2434_v48 = vrot.slane %v9553_v45, %v12483_v50  ;;  %v2427_v4 = vcombine.high %v9553_v45, %v9553_v45  ;;  %v11387_v37 = vld [vmem:[%s15629_s3 + $0x4c0] ss:$20 sps:$4 sm:$0xff]   ;;  %v11392_v45 = vld [vmem:[%s15629_s3 + $0x510] ss:$20 sps:$4 sm:$0xff]  }
 0x211   : > { %4168 = vmatprep.subr.bf16.mxu1 %v11349_v63  ;;  %4332 = vmatprep.subr.bf16.mxu0 %v11352_v41  ;;  %v11388_v39 = vld [vmem:[%s15629_s3 + $0x380] ss:$20 sps:$4 sm:$0xff]   ;;  %v11389_v63 = vld [vmem:[%s15629_s3 + $0x4e8] ss:$20 sps:$4 sm:$0xff]   ;;  %v11391_v41 = vld [vmem:[%s15629_s3 + $0x650] ss:$20 sps:$4 sm:$0xff]  }
 0x212   : > { %v2442_v52 = vcombine.high %v2434_v48, %v2434_v48  ;;  %v13744_v62 = vpack.c.bf16 %v2434_v48, %v2434_v48  ;;  %v2441_v6 = vrot.slane %v2427_v4, %v12483_v50  ;;  %v11395_v48 = vld [vmem:[%s15629_s3 + $0x6a0] ss:$20 sps:$4 sm:$0xff]  }
 0x213   : > { %v11419_v4 = vld [vmem:[%s15631_s5 + $0x90] sm:$0xff]  }
 0x214   : > { %4169 = vmatpush1.bf16.msra.mxu1 %v11347_v46  ;;  %4333 = vmatpush1.bf16.msra.mxu0 %v11350_v47  ;;  %v13736_v57 = vpack.c.bf16 %v2442_v52, %v2442_v52  ;;  %v13765_v12 = vpack.c.bf16 %v2441_v6, %v2441_v6  ;;  %v11393_v46 = vld [vmem:[%s15629_s3 + $0x678] ss:$20 sps:$4 sm:$0xff]   ;;  %v11399_v52 = vld [vmem:[%s15629_s3 + $0x6f0] ss:$20 sps:$4 sm:$0xff]   ;;  %v11404_v6 = vld [vmem:[%s15629_s3 + $0x600] ss:$20 sps:$4 sm:$0xff]  }
 0x215   : > { %4179 = vmatprep.subr.bf16.mxu1 %v11355_v49  ;;  %4343 = vmatprep.subr.bf16.mxu0 %v11358_v51  ;;  %v11394_v47 = vld [vmem:[%s15629_s3 + $0x538] ss:$20 sps:$4 sm:$0xff]   ;;  %v11396_v49 = vld [vmem:[%s15629_s3 + $0x560] ss:$20 sps:$4 sm:$0xff]   ;;  %v11398_v51 = vld [vmem:[%s15629_s3 + $0x588] ss:$20 sps:$4 sm:$0xff]  }
 0x216   : > { %4170 = vmatprep.mubr.bf16.mxu1 %v13736_v57  ;;  %4334 = vmatprep.mubr.bf16.mxu0 %v13736_v57 }
 0x217   : > { %4171 = vmatmul.mubr.bf16.vlgmr.msra.gmra.mrb[12].mxu1 %v13744_v62  ;;  %4335 = vmatmul.mubr.bf16.vlgmr.msra.gmra.mrb[8].mxu0 %v13744_v62 }
 0x218   : > { %4180 = vmatpush1.bf16.msra.mxu1 %v11353_v54  ;;  %4344 = vmatpush1.bf16.msra.mxu0 %v11356_v55  ;;  %v11400_v54 = vld [vmem:[%s15629_s3 + $0x5b0] ss:$20 sps:$4 sm:$0xff]   ;;  %v11401_v55 = vld [vmem:[%s15629_s3 + $0x718] ss:$20 sps:$4 sm:$0xff]  }
 0x219   : > { %4211 = vmatprep.mubr.bf16.mxu1 %v12196_v5  ;;  %4375 = vmatprep.mubr.bf16.mxu0 %v12196_v5 }
 0x21a   : > { %10373 = vmatprep.subr.bf16.mxu1 %v11359_v58  ;;  %10463 = vmatprep.subr.bf16.mxu0 %v11410_v60  ;;  %v11403_v58 = vld [vmem:[%s15629_s3 + $0x740] ss:$20 sps:$4 sm:$0xff]  }
 0x21b   : > { %v11418_v60 = vld [vmem:[%s15631_s5 + $0xd0] sm:$0xff]  }
 0x223   : > { %9799 = vmatmul.mubr.msk.bf16.vlgmr.msra.gmra.mrb[12].mxu1 %vm4052_vm0, %v13765_v12  ;;  %9800 = vmatmul.mubr.msk.bf16.vlgmr.msra.gmra.mrb[8].mxu0 %vm4052_vm0, %v13765_v12 }
 0x224   : > { %10374 = vmatpush3.bf16.msra.mxu1 %v11360_v7  ;;  %4416 = vmatprep.mubr.bf16.mxu1 %v13295_v38  ;;  %v11367_v38 = vld [vmem:[%s15629_s3 + $0x1f0] ss:$20 sps:$4 sm:$0xff]   ;;  %v11405_v7 = vld [vmem:[%s15629_s3 + $0x768] ss:$20 sps:$4 sm:$0xff]  }
 0x225   : > { %10375 = vmatprep.subr.bf16.mxu1 %v11361_v8  ;;  %10464 = vmatpush3.bf16.msra.mxu0 %v11411_v9  ;;  %v11422_v8 = vld [vmem:[%s15631_s5 + $0xd8] sm:$0xff]  }
 0x226   : > { %10465 = vmatprep.subr.bf16.mxu0 %v11414_v11  ;;  %v11423_v9 = vld [vmem:[%s15631_s5 + $0x98] sm:$0xff]  }
 0x227   : > { %v11406_v11 = vld [vmem:[%s15629_s3 + $0x628] ss:$20 sps:$4 sm:$0xff]  }
 0x228   : > { %10376 = vmatpush3.bf16.msra.mxu1 %v11362_v14  ;;  %v11426_v14 = vld [vmem:[%s15631_s5 + $0xe0] sm:$0xff]  }
 0x229   : > { %10377 = vmatprep.subr.bf16.mxu1 %v11363_v15  ;;  %10466 = vmatpush3.bf16.msra.mxu0 %v11415_v16  ;;  %v11427_v15 = vld [vmem:[%s15631_s5 + $0xa0] sm:$0xff]  }
 0x22a   : > { %10467 = vmatprep.subr.bf16.mxu0 %v11418_v60  ;;  %v11407_v16 = vld [vmem:[%s15629_s3 + $0x790] ss:$20 sps:$4 sm:$0xff]  }
 0x22c   : > { %10378 = vmatpush3.bf16.msra.mxu1 %v11364_v21  ;;  %v11430_v21 = vld [vmem:[%s15631_s5 + $0xe8] sm:$0xff]  }
 0x22d   : > { %10379 = vmatprep.subr.bf16.mxu1 %v11365_v18  ;;  %10468 = vmatpush3.bf16.msra.mxu0 %v11419_v4  ;;  %v11408_v18 = vld [vmem:[%s15631_s5 + $0x40] sm:$0xff]  }
 0x22e   : > { %10469 = vmatprep.subr.bf16.mxu0 %v11422_v8 }
 0x230   : > { %10380 = vmatpush3.bf16.msra.mxu1 %v11366_v19  ;;  %v11431_v19 = vld [vmem:[%s15631_s5 + $0xa8] sm:$0xff]  }
 0x231   : > { %10381 = vmatprep.subr.bf16.mxu1 %v11367_v38  ;;  %10470 = vmatpush3.bf16.msra.mxu0 %v11423_v9  ;;  %v11434_v38 = vld [vmem:[%s15631_s5 + $0xf0] sm:$0xff]  }
 0x232   : > { %10471 = vmatprep.subr.bf16.mxu0 %v11426_v14 }
 0x234   : > { %10382 = vmatpush3.bf16.msra.mxu1 %v11368_v20  ;;  %v11435_v20 = vld [vmem:[%s15631_s5 + $0xb0] sm:$0xff]  }
 0x235   : > { %10383 = vmatprep.subr.bf16.mxu1 %v11369_v22  ;;  %10472 = vmatpush3.bf16.msra.mxu0 %v11427_v15  ;;  %v11438_v22 = vld [vmem:[%s15631_s5 + $0xf8] sm:$0xff]  }
 0x236   : > { %10473 = vmatprep.subr.bf16.mxu0 %v11430_v21 }
 0x238   : > { %10384 = vmatpush3.bf16.msra.mxu1 %v11370_v23  ;;  %v11412_v23 = vld [vmem:[%s15631_s5 + $0x48] sm:$0xff]  }
 0x239   : > { %10385 = vmatprep.subr.bf16.mxu1 %v11371_v25  ;;  %10474 = vmatpush3.bf16.msra.mxu0 %v11431_v19  ;;  %v11439_v25 = vld [vmem:[%s15631_s5 + $0xb8] sm:$0xff]  }
 0x23a   : > { %10475 = vmatprep.subr.bf16.mxu0 %v11434_v38 }
 0x23c   : > { %10386 = vmatpush3.bf16.msra.mxu1 %v11372_v26  ;;  %v11413_v26 = vld [vmem:[%s15631_s5 + $0x8] sm:$0xff]  }
 0x23d   : > { %10387 = vmatprep.subr.bf16.mxu1 %v11373_v10  ;;  %10476 = vmatpush3.bf16.msra.mxu0 %v11435_v20  ;;  %v11416_v10 = vld [vmem:[%s15631_s5 + $0x50] sm:$0xff]  }
 0x23e   : > { %10477 = vmatprep.subr.bf16.mxu0 %v11438_v22  ;;  %v11440_v22 = vld [vmem:[%s15631_s5 + $0x100] sm:$0xff]  }
 0x240   : > { %10388 = vmatpush3.bf16.msra.mxu1 %v11374_v28  ;;  %v11420_v28 = vld [vmem:[%s15631_s5 + $0x58] sm:$0xff]  }
 0x241   : > { %10395 = vmatprep.subr.bf16.mxu1 %v11375_v29  ;;  %10478 = vmatpush3.bf16.msra.mxu0 %v11439_v25  ;;  %v11421_v29 = vld [vmem:[%s15631_s5 + $0x18] sm:$0xff]  }
 0x243   : > { %4417 = vmatmul.mubr.bf16.vlgmr.msra.gmra.mrb[16].mxu1 %v13305_v42  ;;  %v11381_v42 = vld [vmem:[%s15629_s3 + $0x448] ss:$20 sps:$4 sm:$0xff]  }
 0x244   : > { %10396 = vmatpush3.bf16.msra.mxu1 %v11376_v30  ;;  %4456 = vmatprep.mubr.bf16.mxu1 %v13309_v43  ;;  %v11382_v43 = vld [vmem:[%s15629_s3 + $0x308] ss:$20 sps:$4 sm:$0xff]   ;;  %v11424_v30 = vld [vmem:[%s15631_s5 + $0x60] sm:$0xff]  }
 0x245   : > { %10397 = vmatprep.subr.bf16.mxu1 %v11377_v31  ;;  %v11425_v31 = vld [vmem:[%s15631_s5 + $0x20] sm:$0xff]  }
 0x248   : > { %10398 = vmatpush3.bf16.msra.mxu1 %v11378_v33  ;;  %v11428_v33 = vld [vmem:[%s15631_s5 + $0x68] sm:$0xff]  }
 0x249   : > { %10399 = vmatprep.subr.bf16.mxu1 %v11379_v34  ;;  %v11429_v34 = vld [vmem:[%s15631_s5 + $0x28] sm:$0xff]  }
 0x24c   : > { %10400 = vmatpush3.bf16.msra.mxu1 %v11380_v61  ;;  %v11432_v61 = vld [vmem:[%s15631_s5 + $0x70] sm:$0xff]  }
 0x24d   : > { %10401 = vmatprep.subr.bf16.mxu1 %v11381_v42  ;;  %v11433_v42 = vld [vmem:[%s15631_s5 + $0x30] sm:$0xff]  }
 0x250   : > { %10402 = vmatpush3.bf16.msra.mxu1 %v11382_v43  ;;  %v11436_v43 = vld [vmem:[%s15631_s5 + $0x78] sm:$0xff]  }
 0x251   : > { %10403 = vmatprep.subr.bf16.mxu1 %v11383_v35  ;;  %v11437_v35 = vld [vmem:[%s15631_s5 + $0x38] sm:$0xff]  }
 0x254   : > { %10404 = vmatpush3.bf16.msra.mxu1 %v11384_v53  ;;  %v14011_v53 = vld [vmem:[%s15630_s4] sm:$0x1f] }
 0x255   : > { %10405 = vmatprep.subr.bf16.mxu1 %v11385_v17  ;;  %v2756_v17 = vrot.slane %v14011_v53, %v13262_v0 }
 0x258   : > { %10406 = vmatpush3.bf16.msra.mxu1 %v11386_v24  ;;  %v2764_v24 = vrot.slane %v14011_v53, %v13265_v1 }
 0x259   : > { %10407 = vmatprep.subr.bf16.mxu1 %v11387_v37  ;;  %v2760_v37 = vrot.slane %v14011_v53, %v13268_v2 }
 0x25c   : > { %10408 = vmatpush3.bf16.msra.mxu1 %v11388_v39  ;;  %v2768_v39 = vrot.slane %v14011_v53, %v13271_v3 }
 0x25d   : > { %10409 = vmatprep.subr.bf16.mxu1 %v11389_v63  ;;  %v4544_v63 = vld [vmem:[#allocation3] sm:$0xff] }
 0x25e   : > { %vm4546_vm2 = vcmp.gt.f32.partialorder %v4544_v63, 0.5 }
 0x25f   : > { %v9802_v60 = vsel %vm4546_vm2, 1.0, %v12195_v27 }
 0x260   : > { %10410 = vmatpush3.bf16.msra.mxu1 %v11390_v40  ;;  %v4587_v9 = vmul.f32 0.5, %v9802_v60 }
 0x261   : > { %10417 = vmatprep.subr.bf16.mxu1 %v11391_v41 }
 0x263   : > { %4457 = vmatmul.mubr.bf16.vlgmr.msra.gmra.mrb[20].mxu1 %v13515_v13  ;;  %v11397_v13 = vld [vmem:[%s15629_s3 + $0x6c8] ss:$20 sps:$4 sm:$0xff]  }
 0x264   : > { %10418 = vmatpush3.bf16.msra.mxu1 %v11392_v45  ;;  %4496 = vmatprep.mubr.bf16.mxu1 %v13736_v57  ;;  %v11402_v57 = vld [vmem:[%s15629_s3 + $0x5d8] ss:$20 sps:$4 sm:$0xff]  }
 0x265   : > { %10419 = vmatprep.subr.bf16.mxu1 %v11393_v46 }
 0x268   : > { %10420 = vmatpush3.bf16.msra.mxu1 %v11394_v47 }
 0x269   : > { %10421 = vmatprep.subr.bf16.mxu1 %v11395_v48 }
 0x26c   : > { %10422 = vmatpush3.bf16.msra.mxu1 %v11396_v49 }
 0x26d   : > { %10423 = vmatprep.subr.bf16.mxu1 %v11397_v13 }
 0x270   : > { %10424 = vmatpush3.bf16.msra.mxu1 %v11398_v51 }
 0x271   : > { %10425 = vmatprep.subr.bf16.mxu1 %v11399_v52 }
 0x274   : > { %10426 = vmatpush3.bf16.msra.mxu1 %v11400_v54 }
 0x275   : > { %10427 = vmatprep.subr.bf16.mxu1 %v11401_v55 }
 0x278   : > { %10428 = vmatpush3.bf16.msra.mxu1 %v11402_v57 }
 0x279   : > { %10429 = vmatprep.subr.bf16.mxu1 %v11403_v58 }
 0x27c   : > { %10430 = vmatpush3.bf16.msra.mxu1 %v11404_v6  ;;  %v4552_v6 = vmul.f32 0.8187308, %v4544_v63 }
 0x27d   : > { %10431 = vmatprep.subr.bf16.mxu1 %v11405_v7 }
 0x280   : > { %10432 = vmatpush3.bf16.msra.mxu1 %v11406_v11 }
 0x281   : > { %10542 = vmatprep.subr.bf16.mxu1 %v12195_v27 }
 0x283   : > { %4497 = vmatmul.mubr.bf16.vlgmr.msra.gmra.mrb[24].mxu1 %v13744_v62  ;;  %v11409_v62 = vld [vmem:[%s15631_s5] sm:$0xff]  }
 0x284   : > { %10543 = vmatpush3.bf16.msra.mxu1 %v11407_v16  ;;  %10544 = vmatprep.mubr.msk.bf16.mxu1 %vm12197_vm1, %v12195_v27 }
 0x285   : > { %10441 = vmatprep.subr.bf16.mxu1 %v11408_v18 }
 0x28b   : > { %10545 = vmatmul.mubr.msk.bf16.vlgmr.msra.gmra.mrb[28].mxu1 %vm4052_vm0, %v13765_v12  ;;  %v11417_v12 = vld [vmem:[%s15631_s5 + $0x10] sm:$0xff]  }
 0x28c   : > { %10442 = vmatpush3.bf16.msra.mxu1 %v11409_v62 }
 0x28d   : > { %10443 = vmatprep.subr.bf16.mxu1 %v11412_v23 }
 0x290   : > { %10444 = vmatpush3.bf16.msra.mxu1 %v11413_v26  ;;  %v11441_v26 = vld [vmem:[%s15631_s5 + $0x108] sm:$0xff]  }
 0x291   : > { %10445 = vmatprep.subr.bf16.mxu1 %v11416_v10  ;;  %v11442_v10 = vld [vmem:[%s15631_s5 + $0x110] sm:$0xff]  }
 0x294   : > { %10446 = vmatpush3.bf16.msra.mxu1 %v11417_v12 }
 0x295   : > { %10447 = vmatprep.subr.bf16.mxu1 %v11420_v28  ;;  %v11443_v28 = vld [vmem:[%s15631_s5 + $0x118] sm:$0xff]  }
 0x298   : > { %10448 = vmatpush3.bf16.msra.mxu1 %v11421_v29 }
 0x299   : > { %10449 = vmatprep.subr.bf16.mxu1 %v11424_v30 }
 0x29c   : > { %10450 = vmatpush3.bf16.msra.mxu1 %v11425_v31 }
 0x29d   : > { %10451 = vmatprep.subr.bf16.mxu1 %v11428_v33 }
 0x2a0   : > { %10452 = vmatpush3.bf16.msra.mxu1 %v11429_v34  ;;  %v2772_v34 = vrot.slane %v14011_v53, %v13631_v56 }
 0x2a1   : > { %10453 = vmatprep.subr.bf16.mxu1 %v11432_v61 }
 0x2a4   : > { %10454 = vmatpush3.bf16.msra.mxu1 %v11433_v42 }
 0x2a5   : > { %10455 = vmatprep.subr.bf16.mxu1 %v11436_v43 }
 0x2a8   : > { %10456 = vmatpush3.bf16.msra.mxu1 %v11437_v35 }
 0x2a9   : > { %10548 = vmatprep.subr.bf16.mxu1 %v12195_v27 }
 0x2f6   : > { %v4213_v40 = vpop.f32.mrb[12].mxu1  ;;  %v4377_v41 = vpop.f32.mrb[8].mxu0 }
 0x2f7   : > { %v10586_v45 = vadd.f32 %v4213_v40, %v2756_v17  ;;  %v10588_v46 = vadd.f32 %v4377_v41, %v2764_v24  ;;  %v4215_v47 = vpop.f32.mrb[13].mxu1  ;;  %v4379_v48 = vpop.f32.mrb[9].mxu0 }
 0x2f8   : > { %v10587_v49 = vadd.f32 %v4215_v47, %v2760_v37  ;;  %v10589_v13 = vadd.f32 %v4379_v48, %v2768_v39  ;;  %v4217_v51 = vpop.f32.mrb[14].mxu1  ;;  %v4381_v52 = vpop.f32.mrb[10].mxu0 }
 0x2f9   : > { %v4218_v54 = vpop.f32.mrb[15].mxu1  ;;  %v4382_v55 = vpop.f32.mrb[11].mxu0 }
 0x2fa   : > { %v4559_v57 = vcombine.low %v10586_v45, %v10587_v49  ;;  %v4560_v58 = vcombine.low %v10588_v46, %v10589_v13  ;;  %v4545_v45 = vld [vmem:[#allocation3 + $0x8] sm:$0x3] }
 0x2fb   : > { %vm4547_vm4 = vcmp.gt.f32.partialorder %v4545_v45, 0.5  ;;  %v4553_v53 = vmul.f32 0.8187308, %v4545_v45 }
 0x2fc   : > { %v4567_v4 = vrot.slane %v4559_v57, %v12483_v50  ;;  %v4574_v7 = vrot.slane %v4560_v58, %v12483_v50  ;;  %v9803_v49 = vsel %vm4547_vm4, 1.0, %v12195_v27 }
 0x2fd   : > { %v4588_v55 = vmul.f32 0.5, %v9803_v49  ;;  %v11463_v49 = vld [vmem:[%s15635_s9 + $0xc] ss:$28 sps:$4 sm:$0xff]  }
 0x2fe   : > { %v4575_v8 = vcombine.low %v4567_v4, %v4574_v7 }
 0x300   : > { %v4585_v11 = vadd.f32 %v4575_v8, %v4552_v6  ;;  %v11446_v8 = vld [vmem:[%s15633_s7 + $0x4] ss:$20 sps:$4 sm:$0xff]  }
 0x302   : > { %v4589_v14 = vsub.f32 %v4585_v11, %v4587_v9  ;;  %v11444_v9 = vld [vmem:[%s15633_s7] ss:$20 sps:$4 sm:$0xff]   ;;  %v11447_v11 = vld [vmem:[%s15633_s7 + $0x8] ss:$20 sps:$4 sm:$0xff]  }
 0x304   : > { %4591 = vst [vmem:[#allocation3] sm:$0xff] %v4589_v14  ;;  %vm4594_vm3 = vcmp.gt.f32.partialorder %v4589_v14, 0.5  ;;  %v11449_v14 = vld [vmem:[%s15633_s7 + $0xc] ss:$20 sps:$4 sm:$0xff]  }
 0x305   : > { %v9804_v15 = vsel %vm4594_vm3, 1.0, %v12195_v27  ;;  %5205 = vmatprep.subr.bf16.mxu0 %v11449_v14  ;;  %v11487_v14 = vld [vmem:[%s15635_s9 + $0xec] ss:$28 sps:$4 sm:$0xff]  }
 0x306   : > { %v4609_v16 = vrot.slane %v9804_v15, %v12483_v50  ;;  %v4602_v21 = vcombine.high %v9804_v15, %v9804_v15  ;;  %v11452_v15 = vld [vmem:[%s15633_s7 + $0x2c] ss:$20 sps:$4 sm:$0xff]  }
 0x308   : > { %v4617_v18 = vcombine.high %v4609_v16, %v4609_v16  ;;  %v4616_v19 = vrot.slane %v4602_v21, %v12483_v50  ;;  %v4631_v62 = vpack.c.bf16 %v4609_v16, %v4609_v16  ;;  %v11455_v16 = vld [vmem:[%s15633_s7 + $0x34] ss:$20 sps:$4 sm:$0xff]  }
 0x309   : > { %v11450_v21 = vld [vmem:[%s15633_s7 + $0x28] ss:$20 sps:$4 sm:$0xff]  }
 0x30a   : > { %v4632_v38 = vpack.c.bf16 %v4617_v18, %v4617_v18  ;;  %v4618_v20 = vcombine.high %v4616_v19, %v4616_v19  ;;  %v4633_v25 = vpack.c.bf16 %v4616_v19, %v4616_v19  ;;  %v11453_v18 = vld [vmem:[%s15633_s7 + $0x30] ss:$20 sps:$4 sm:$0xff]  }
 0x30b   : > { %v11460_v19 = vld [vmem:[%s15635_s9 + $0x4] ss:$28 sps:$4 sm:$0xff]  }
 0x30c   : > { %4967 = vmatprep.mubr.bf16.mxu1 %v4632_v38  ;;  %v4634_v23 = vpack.c.bf16 %v4618_v20, %v4618_v20  ;;  %v9806_v20 = vld [vmem:[%s15632_s6] ss:$0 sm:$0xff] }
 0x30d   : > { %4968 = vmatmul.mubr.bf16.vlgmr.msra.gmra.mrb[32].mxu1 %v4631_v62 }
 0x30e   : > { %5007 = vmatprep.mubr.bf16.mxu0 %v4634_v23  ;;  %10549 = vmatpush3.bf16.msra.mxu1 %v11440_v22 }
 0x30f   : > { %5008 = vmatmul.mubr.bf16.vlgmr.msra.gmra.mrb[12].mxu0 %v4633_v25  ;;  %10550 = vmatprep.subr.bf16.mxu1 %v12195_v27 }
 0x310   : > { %10556 = vmatprep.mubr.msk.bf16.mxu1 %vm12197_vm1, %v12195_v27  ;;  %5237 = vmatprep.mubr.bf16.mxu0 %v12196_v5 }
 0x311   : > { %5206 = vmatpush1.bf16.msra.mxu0 %v11447_v11  ;;  %v11479_v11 = vld [vmem:[%s15635_s9 + $0xb0] ss:$28 sps:$4 sm:$0xff]  }
 0x312   : > { %10551 = vmatpush3.bf16.msra.mxu1 %v11441_v26  ;;  %5207 = vmatprep.subr.bf16.mxu0 %v11455_v16  ;;  %v11496_v16 = vld [vmem:[%s15635_s9 + $0x154] ss:$28 sps:$4 sm:$0xff]  }
 0x313   : > { %10552 = vmatprep.subr.bf16.mxu1 %v12195_v27 }
 0x315   : > { %5208 = vmatpush1.bf16.msra.mxu0 %v11453_v18  ;;  %v11493_v18 = vld [vmem:[%s15635_s9 + $0x124] ss:$28 sps:$4 sm:$0xff]  }
 0x316   : > { %v10389_v12 = vpop.f32.mrb[16].mxu1  ;;  %10553 = vmatpush3.bf16.msra.mxu1 %v11442_v10  ;;  %7001 = vmatprep.subr.bf16.mxu0 %v11460_v19  ;;  %v11494_v19 = vld [vmem:[%s15635_s9 + $0x150] ss:$28 sps:$4 sm:$0xff]  }
 0x317   : > { %v10390_v29 = vpop.f32.mrb[17].mxu1  ;;  %10554 = vmatprep.subr.bf16.mxu1 %v12195_v27 }
 0x318   : > { %v10391_v30 = vadd.f32 %v10390_v29, %v10389_v12  ;;  %v10392_v31 = vpop.f32.mrb[18].mxu1 }
 0x319   : > { %v10393_v33 = vpop.f32.mrb[19].mxu1 }
 0x31a   : > { %10555 = vmatpush3.bf16.msra.mxu1 %v11443_v28  ;;  %v4419_v43 = vadd.f32 %v10391_v30, %v2772_v34  ;;  %v5055_v33 = vld [vmem:[#allocation4] sm:$0x3] }
 0x31b   : > { %5164 = vmatprep.subr.bf16.mxu1 %v11446_v8  ;;  %vm5056_vm8 = vcmp.gt.f32.partialorder %v5055_v33, 0.5  ;;  %v11482_v8 = vld [vmem:[%s15635_s9 + $0xe0] ss:$28 sps:$4 sm:$0xff]  }
 0x31c   : > { %v9844_v34 = vsel %vm5056_vm8, 1.0, %v12195_v27 }
 0x336   : > { %v10411_v61 = vpop.f32.mrb[20].mxu1 }
 0x337   : > { %v10412_v42 = vpop.f32.mrb[21].mxu1 }
 0x338   : > { %v10413_v35 = vadd.f32 %v10412_v42, %v10411_v61  ;;  %v10414_v17 = vpop.f32.mrb[22].mxu1  ;;  %v5059_v61 = vmul.f32 0.8187308, %v5055_v33  ;;  %v11509_v33 = vld [vmem:[%s15635_s9 + $0x1c8] ss:$28 sps:$4 sm:$0xff]  }
 0x339   : > { %v10415_v24 = vpop.f32.mrb[23].mxu1 }
 0x33a   : > { %v4459_v37 = vadd.f32 %v10413_v35, %v4419_v43  ;;  %v5061_v35 = vmul.f32 0.5, %v9844_v34  ;;  %v11517_v34 = vld [vmem:[%s15635_s9 + $0x204] ss:$28 sps:$4 sm:$0xff]  }
 0x356   : > { %v10433_v39 = vpop.f32.mrb[24].mxu1 }
 0x357   : > { %v10434_v63 = vpop.f32.mrb[25].mxu1 }
 0x358   : > { %v10435_v40 = vadd.f32 %v10434_v63, %v10433_v39  ;;  %v10436_v41 = vpop.f32.mrb[26].mxu1 }
 0x359   : > { %v10437_v46 = vpop.f32.mrb[27].mxu1  ;;  %v11456_v41 = vld [vmem:[%s15633_s7 + $0x10] ss:$20 sps:$4 sm:$0xff]  }
 0x35a   : > { %v4499_v47 = vadd.f32 %v10435_v40, %v4459_v37  ;;  %v11458_v46 = vld [vmem:[%s15635_s9] ss:$28 sps:$4 sm:$0xff]  }
 0x35e   : > { %v4538_v48 = vpop.f32.mrb[28].mxu1 }
 0x35f   : > { %v4539_v13 = vadd.f32 %v4538_v48, %v4499_v47  ;;  %v10546_v51 = vpop.f32.mrb[29].mxu1  ;;  %v11466_v47 = vld [vmem:[%s15635_s9 + $0x3c] ss:$28 sps:$4 sm:$0xff]  }
 0x360   : > { %v4541_v52 = vpop.f32.mrb[30].mxu1  ;;  %v11457_v48 = vld [vmem:[%s15633_s7 + $0x38] ss:$20 sps:$4 sm:$0xff]   ;;  %v11461_v51 = vld [vmem:[%s15635_s9 + $0x8] ss:$28 sps:$4 sm:$0xff]  }
 0x361   : > { %v4582_v54 = vrot.slane %v4539_v13, %v12483_v50  ;;  %v10547_v57 = vpop.f32.mrb[31].mxu1  ;;  %v11464_v13 = vld [vmem:[%s15635_s9 + $0x38] ss:$28 sps:$4 sm:$0xff]   ;;  %v11469_v52 = vld [vmem:[%s15635_s9 + $0x44] ss:$28 sps:$4 sm:$0xff]  }
 0x362   : > { %v11467_v57 = vld [vmem:[%s15635_s9 + $0x40] ss:$28 sps:$4 sm:$0xff]  }
 0x363   : > { %v4586_v58 = vadd.f32 %v4582_v54, %v4553_v53  ;;  %v11472_v53 = vld [vmem:[%s15635_s9 + $0x74] ss:$28 sps:$4 sm:$0xff]  }
 0x364   : > { %v11470_v54 = vld [vmem:[%s15635_s9 + $0x70] ss:$28 sps:$4 sm:$0xff]  }
 0x365   : > { %v4590_v60 = vsub.f32 %v4586_v58, %v4588_v55  ;;  %v11478_v55 = vld [vmem:[%s15635_s9 + $0xac] ss:$28 sps:$4 sm:$0xff]   ;;  %v11475_v58 = vld [vmem:[%s15635_s9 + $0x7c] ss:$28 sps:$4 sm:$0xff]  }
 0x367   : > { %4593 = vst.msk [vmem:[#allocation3 + $0x8] sm:$0x3] %vm4592_vm5, %v4590_v60  ;;  %vm4595_vm6 = vcmp.gt.f32.partialorder %v4590_v60, 0.5  ;;  %v11476_v60 = vld [vmem:[%s15635_s9 + $0xa8] ss:$28 sps:$4 sm:$0xff]  }
 0x368   : > { %v9805_v4 = vsel %vm4595_vm6, 1.0, %v12195_v27 }
 0x369   : > { %v4625_v6 = vrot.slane %v9805_v4, %v12483_v50  ;;  %v11484_v4 = vld [vmem:[%s15635_s9 + $0xe4] ss:$28 sps:$4 sm:$0xff]  }
 0x36b   : > { %v4635_v7 = vpack.c.bf16 %v4625_v6, %v4625_v6  ;;  %v11473_v6 = vld [vmem:[%s15635_s9 + $0x78] ss:$28 sps:$4 sm:$0xff]  }
 0x36d   : > { %10557 = vmatmul.mubr.msk.bf16.vlgmr.msra.gmra.mrb[36].mxu1 %vm4931_vm7, %v4635_v7  ;;  %v11481_v7 = vld [vmem:[%s15635_s9 + $0xb4] ss:$28 sps:$4 sm:$0xff]  }
 0x36e   : > { %5196 = vmatprep.mubr.bf16.mxu1 %v12196_v5  ;;  %5165 = vmatpush1.bf16.msra.mxu1 %v11444_v9  ;;  %v11490_v9 = vld [vmem:[%s15635_s9 + $0x11c] ss:$28 sps:$4 sm:$0xff]  }
 0x36f   : > { %5166 = vmatprep.subr.bf16.mxu1 %v11452_v15  ;;  %v11488_v15 = vld [vmem:[%s15635_s9 + $0x118] ss:$28 sps:$4 sm:$0xff]  }
 0x372   : > { %5167 = vmatpush1.bf16.msra.mxu1 %v11450_v21  ;;  %v11485_v21 = vld [vmem:[%s15635_s9 + $0xe8] ss:$28 sps:$4 sm:$0xff]  }
 0x373   : > { %10560 = vmatprep.subr.bf16.mxu1 %v12195_v27 }
 0x3e0   : > { %v10457_v38 = vpop.f32.mrb[32].mxu1 }
 0x3e1   : > { %v10458_v22 = vpop.f32.mrb[33].mxu1 }
 0x3e2   : > { %v10459_v62 = vadd.f32 %v10458_v22, %v10457_v38  ;;  %v10460_v23 = vpop.f32.mrb[34].mxu1  ;;  %v10479_v25 = vpop.f32.mrb[12].mxu0  ;;  %v11502_v38 = vld [vmem:[%s15635_s9 + $0x18c] ss:$28 sps:$4 sm:$0xff]   ;;  %v11499_v22 = vld [vmem:[%s15635_s9 + $0x15c] ss:$28 sps:$4 sm:$0xff]  }
 0x3e3   : > { %v10461_v26 = vpop.f32.mrb[35].mxu1  ;;  %v10480_v10 = vpop.f32.mrb[13].mxu0  ;;  %v11508_v23 = vld [vmem:[%s15635_s9 + $0x1c4] ss:$28 sps:$4 sm:$0xff]  }
 0x3e4   : > { %v4970_v12 = vadd.f32 %v10459_v62, %v9806_v20  ;;  %v10481_v28 = vadd.f32 %v10480_v10, %v10479_v25  ;;  %v10482_v29 = vpop.f32.mrb[14].mxu0  ;;  %v11491_v20 = vld [vmem:[%s15635_s9 + $0x120] ss:$28 sps:$4 sm:$0xff]   ;;  %v11500_v62 = vld [vmem:[%s15635_s9 + $0x188] ss:$28 sps:$4 sm:$0xff]  }
 0x3e5   : > { %v10483_v30 = vpop.f32.mrb[15].mxu0  ;;  %v11497_v25 = vld [vmem:[%s15635_s9 + $0x158] ss:$28 sps:$4 sm:$0xff]   ;;  %v11506_v10 = vld [vmem:[%s15635_s9 + $0x1c0] ss:$28 sps:$4 sm:$0xff]  }
 0x3e6   : > { %v5010_v31 = vadd.f32 %v10481_v28, %v4970_v12  ;;  %v11505_v26 = vld [vmem:[%s15635_s9 + $0x194] ss:$28 sps:$4 sm:$0xff]   ;;  %v11514_v12 = vld [vmem:[%s15635_s9 + $0x1fc] ss:$28 sps:$4 sm:$0xff]   ;;  %v11511_v29 = vld [vmem:[%s15635_s9 + $0x1cc] ss:$28 sps:$4 sm:$0xff]  }
 0x3e7   : > { %v11503_v28 = vld [vmem:[%s15635_s9 + $0x190] ss:$28 sps:$4 sm:$0xff]   ;;  %v11512_v30 = vld [vmem:[%s15635_s9 + $0x1f8] ss:$28 sps:$4 sm:$0xff]  }
 0x440   : > { %v5049_v42 = vpop.f32.mrb[36].mxu1 }
 0x441   : > { %v5050_v43 = vadd.f32 %v5049_v42, %v5010_v31  ;;  %v10558_v17 = vpop.f32.mrb[37].mxu1  ;;  %v11520_v31 = vld [vmem:[%s15635_s9 + $0x234] ss:$28 sps:$4 sm:$0xff]   ;;  %v11515_v42 = vld [vmem:[%s15635_s9 + $0x200] ss:$28 sps:$4 sm:$0xff]  }
 0x442   : > { %v5052_v24 = vpop.f32.mrb[38].mxu1  ;;  %v11526_v17 = vld [vmem:[%s15635_s9 + $0x26c] ss:$28 sps:$4 sm:$0xff]  }
 0x443   : > { %v5060_v37 = vadd.f32 %v5059_v61, %v5050_v43  ;;  %v10559_v39 = vpop.f32.mrb[39].mxu1  ;;  %v11518_v61 = vld [vmem:[%s15635_s9 + $0x230] ss:$28 sps:$4 sm:$0xff]   ;;  %v11523_v43 = vld [vmem:[%s15635_s9 + $0x23c] ss:$28 sps:$4 sm:$0xff]  }
 0x444   : > { %v11529_v24 = vld [vmem:[%s15635_s9 + $0x274] ss:$28 sps:$4 sm:$0xff]  }
 0x445   : > { %v5062_v63 = vsub.f32 %v5060_v37, %v5061_v35  ;;  %v11521_v35 = vld [vmem:[%s15635_s9 + $0x238] ss:$28 sps:$4 sm:$0xff]   ;;  %v11524_v37 = vld [vmem:[%s15635_s9 + $0x268] ss:$28 sps:$4 sm:$0xff]   ;;  %v11527_v39 = vld [vmem:[%s15635_s9 + $0x270] ss:$28 sps:$4 sm:$0xff]  }
 0x447   : > { %vm5065_vm10 = vcmp.gt.f32.partialorder %v5062_v63, 0.5  ;;  %5064 = vst.msk [vmem:[#allocation4] sm:$0x3] %vm5063_vm9, %v5062_v63  ;;  %v11532_v63 = vld [vmem:[%s15635_s9 + $0x2a4] ss:$28 sps:$4 sm:$0xff]  }
 0x448   : > { %v9845_v40 = vsel %vm5065_vm10, 1.0, %v12195_v27 }
 0x449   : > { %v5068_v45 = vpack.c.bf16 %v9845_v40, %v9845_v40  ;;  %9168 = vst.msk [vmem:[%s15663_s24] sm:$0x3] %vm5063_vm9, %v9845_v40  ;;  %v11535_v40 = vld [vmem:[%s15635_s9 + $0x2ac] ss:$28 sps:$4 sm:$0xff]  }
 0x44b   : > { %9856 = vmatmul.mubr.msk.bf16.vlgmr.msra.gmra.mrb[40].mxu1 %vm5160_vm11, %v5068_v45  ;;  %9857 = vmatmul.mubr.msk.bf16.vlgmr.msra.gmra.mrb[16].mxu0 %vm5160_vm11, %v5068_v45 }
 0x44c   : > { %10561 = vmatpush3.bf16.msra.mxu1 %v11456_v41  ;;  %10564 = vmatprep.mubr.msk.bf16.mxu1 %vm12197_vm1, %v12195_v27  ;;  %v11530_v41 = vld [vmem:[%s15635_s9 + $0x2a0] ss:$28 sps:$4 sm:$0xff]  }
 0x44d   : > { %10562 = vmatprep.subr.bf16.mxu1 %v12195_v27  ;;  %7002 = vmatpush1.bf16.msra.mxu0 %v11458_v46  ;;  %v11538_v46 = vld [vmem:[%s15635_s9 + $0x2dc] ss:$28 sps:$4 sm:$0xff]  }
 0x44e   : > { %7003 = vmatprep.subr.bf16.mxu0 %v11466_v47  ;;  %v11541_v47 = vld [vmem:[%s15635_s9 + $0x2e4] ss:$28 sps:$4 sm:$0xff]  }
 0x450   : > { %10563 = vmatpush3.bf16.msra.mxu1 %v11457_v48  ;;  %v11536_v48 = vld [vmem:[%s15635_s9 + $0x2d8] ss:$28 sps:$4 sm:$0xff]  }
 0x451   : > { %7124 = vmatprep.subr.bf16.mxu1 %v11463_v49  ;;  %7004 = vmatpush1.bf16.msra.mxu0 %v11464_v13  ;;  %v11539_v49 = vld [vmem:[%s15635_s9 + $0x2e0] ss:$28 sps:$4 sm:$0xff]   ;;  %v11544_v13 = vld [vmem:[%s15635_s9 + $0x314] ss:$28 sps:$4 sm:$0xff]  }
 0x452   : > { %7005 = vmatprep.subr.bf16.mxu0 %v11472_v53  ;;  %v11547_v53 = vld [vmem:[%s15635_s9 + $0x31c] ss:$28 sps:$4 sm:$0xff]  }
 0x453   : > { %10565 = vmatmul.mubr.msk.bf16.vlgmr.msra.gmra.mrb[44].mxu1 %vm5160_vm11, %v5068_v45  ;;  %v11533_v45 = vld [vmem:[%s15635_s9 + $0x2a8] ss:$28 sps:$4 sm:$0xff]  }
 0x454   : > { %7125 = vmatpush1.bf16.msra.mxu1 %v11461_v51  ;;  %v11542_v51 = vld [vmem:[%s15635_s9 + $0x310] ss:$28 sps:$4 sm:$0xff]  }
 0x455   : > { %7126 = vmatprep.subr.bf16.mxu1 %v11469_v52  ;;  %7006 = vmatpush1.bf16.msra.mxu0 %v11470_v54  ;;  %v11545_v52 = vld [vmem:[%s15635_s9 + $0x318] ss:$28 sps:$4 sm:$0xff]   ;;  %v11550_v54 = vld [vmem:[%s15635_s9 + $0x34c] ss:$28 sps:$4 sm:$0xff]  }
 0x456   : > { %7007 = vmatprep.subr.bf16.mxu0 %v11478_v55  ;;  %v11553_v55 = vld [vmem:[%s15635_s9 + $0x354] ss:$28 sps:$4 sm:$0xff]  }
 0x458   : > { %7127 = vmatpush1.bf16.msra.mxu1 %v11467_v57  ;;  %v11548_v57 = vld [vmem:[%s15635_s9 + $0x348] ss:$28 sps:$4 sm:$0xff]  }
 0x459   : > { %7128 = vmatprep.subr.bf16.mxu1 %v11475_v58  ;;  %7008 = vmatpush1.bf16.msra.mxu0 %v11476_v60  ;;  %v11551_v58 = vld [vmem:[%s15635_s9 + $0x350] ss:$28 sps:$4 sm:$0xff]   ;;  %v11556_v60 = vld [vmem:[%s15635_s9 + $0x384] ss:$28 sps:$4 sm:$0xff]  }
 0x45a   : > { %7009 = vmatprep.subr.bf16.mxu0 %v11484_v4  ;;  %v11559_v4 = vld [vmem:[%s15635_s9 + $0x38c] ss:$28 sps:$4 sm:$0xff]  }
 0x45c   : > { %7129 = vmatpush1.bf16.msra.mxu1 %v11473_v6  ;;  %v5081_v6 = vld [vmem:[%s15634_s8] sm:$0x1f] }
 0x45d   : > { %7130 = vmatprep.subr.bf16.mxu1 %v11481_v7  ;;  %7010 = vmatpush1.bf16.msra.mxu0 %v11482_v8  ;;  %v5086_v7 = vrot.slane %v5081_v6, %v13262_v0  ;;  %v5094_v8 = vrot.slane %v5081_v6, %v13265_v1 }
 0x45e   : > { %7011 = vmatprep.subr.bf16.mxu0 %v11490_v9  ;;  %v5090_v9 = vrot.slane %v5081_v6, %v13268_v2 }
 0x460   : > { %7131 = vmatpush1.bf16.msra.mxu1 %v11479_v11  ;;  %v5098_v11 = vrot.slane %v5081_v6, %v13271_v3 }
 0x461   : > { %7132 = vmatprep.subr.bf16.mxu1 %v11487_v14  ;;  %7012 = vmatpush1.bf16.msra.mxu0 %v11488_v15  ;;  %v5286_v14 = vld [vmem:[#allocation5] sm:$0xff] }
 0x462   : > { %7013 = vmatprep.subr.bf16.mxu0 %v11496_v16  ;;  %vm5288_vm12 = vcmp.gt.f32.partialorder %v5286_v14, 0.5 }
 0x464   : > { %7133 = vmatpush1.bf16.msra.mxu1 %v11485_v21 }
 0x465   : > { %7134 = vmatprep.subr.bf16.mxu1 %v11493_v18  ;;  %7014 = vmatpush1.bf16.msra.mxu0 %v11494_v19 }
 0x466   : > { %7015 = vmatprep.subr.bf16.mxu0 %v11502_v38 }
 0x468   : > { %7135 = vmatpush1.bf16.msra.mxu1 %v11491_v20 }
 0x469   : > { %7136 = vmatprep.subr.bf16.mxu1 %v11499_v22  ;;  %7016 = vmatpush1.bf16.msra.mxu0 %v11500_v62 }
 0x46a   : > { %7017 = vmatprep.subr.bf16.mxu0 %v11508_v23 }
 0x46c   : > { %7137 = vmatpush1.bf16.msra.mxu1 %v11497_v25  ;;  %v5287_v25 = vld [vmem:[#allocation5 + $0x8] sm:$0x3] }
 0x46d   : > { %7138 = vmatprep.subr.bf16.mxu1 %v11505_v26  ;;  %7018 = vmatpush1.bf16.msra.mxu0 %v11506_v10  ;;  %vm5289_vm13 = vcmp.gt.f32.partialorder %v5287_v25, 0.5 }
 0x46e   : > { %7019 = vmatprep.subr.bf16.mxu0 %v11514_v12 }
 0x470   : > { %7139 = vmatpush1.bf16.msra.mxu1 %v11503_v28 }
 0x471   : > { %7140 = vmatprep.subr.bf16.mxu1 %v11511_v29  ;;  %7020 = vmatpush1.bf16.msra.mxu0 %v11512_v30  ;;  %v9859_v29 = vsel %vm5288_vm12, 1.0, %v12195_v27  ;;  %v5102_v30 = vrot.slane %v5081_v6, %v13631_v56  ;;  %v11562_v6 = vld [vmem:[%s15635_s9 + $0x3bc] ss:$28 sps:$4 sm:$0xff]  }
 0x472   : > { %7021 = vmatprep.subr.bf16.mxu0 %v11520_v31 }
 0x474   : > { %7141 = vmatpush1.bf16.msra.mxu1 %v11509_v33  ;;  %v5294_v33 = vmul.f32 0.8187308, %v5286_v14  ;;  %v11571_v14 = vld [vmem:[%s15635_s9 + $0x3fc] ss:$28 sps:$4 sm:$0xff]  }
 0x475   : > { %7142 = vmatprep.subr.bf16.mxu1 %v11517_v34  ;;  %7022 = vmatpush1.bf16.msra.mxu0 %v11518_v61 }
 0x476   : > { %7023 = vmatprep.subr.bf16.mxu0 %v11526_v17 }
 0x478   : > { %7143 = vmatpush1.bf16.msra.mxu1 %v11515_v42  ;;  %v5329_v42 = vmul.f32 0.5, %v9859_v29  ;;  %v11595_v29 = vld [vmem:[%s15635_s9 + $0x4dc] ss:$28 sps:$4 sm:$0xff]  }
 0x479   : > { %7144 = vmatprep.subr.bf16.mxu1 %v11523_v43  ;;  %7024 = vmatpush1.bf16.msra.mxu0 %v11524_v37 }
 0x47a   : > { %7025 = vmatprep.subr.bf16.mxu0 %v11532_v63 }
 0x47c   : > { %7145 = vmatpush1.bf16.msra.mxu1 %v11521_v35  ;;  %v9860_v35 = vsel %vm5289_vm13, 1.0, %v12195_v27 }
 0x47d   : > { %7146 = vmatprep.subr.bf16.mxu1 %v11529_v24  ;;  %7026 = vmatpush1.bf16.msra.mxu0 %v11530_v41  ;;  %v5295_v24 = vmul.f32 0.8187308, %v5287_v25  ;;  %v5330_v41 = vmul.f32 0.5, %v9860_v35  ;;  %v11586_v25 = vld [vmem:[%s15635_s9 + $0x49c] ss:$28 sps:$4 sm:$0xff]  }
 0x47e   : > { %7027 = vmatprep.subr.bf16.mxu0 %v11538_v46  ;;  %v11607_v35 = vld [vmem:[%s15635_s9 + $0x54c] ss:$28 sps:$4 sm:$0xff]  }
 0x480   : > { %7147 = vmatpush1.bf16.msra.mxu1 %v11527_v39 }
 0x481   : > { %7148 = vmatprep.subr.bf16.mxu1 %v11535_v40  ;;  %7028 = vmatpush1.bf16.msra.mxu0 %v11536_v48 }
 0x482   : > { %7029 = vmatprep.subr.bf16.mxu0 %v11544_v13 }
 0x484   : > { %7149 = vmatpush1.bf16.msra.mxu1 %v11533_v45 }
 0x485   : > { %7150 = vmatprep.subr.bf16.mxu1 %v11541_v47  ;;  %7030 = vmatpush1.bf16.msra.mxu0 %v11542_v51 }
 0x486   : > { %7031 = vmatprep.subr.bf16.mxu0 %v11550_v54 }
 0x488   : > { %7151 = vmatpush1.bf16.msra.mxu1 %v11539_v49 }
 0x489   : > { %7152 = vmatprep.subr.bf16.mxu1 %v11547_v53  ;;  %7032 = vmatpush1.bf16.msra.mxu0 %v11548_v57  ;;  %v11557_v57 = vld [vmem:[%s15635_s9 + $0x388] ss:$28 sps:$4 sm:$0xff]  }
 0x48a   : > { %7042 = vmatprep.subr.bf16.mxu0 %v11556_v60 }
 0x48c   : > { %7153 = vmatpush1.bf16.msra.mxu1 %v11545_v52 }
 0x48d   : > { %7154 = vmatprep.subr.bf16.mxu1 %v11553_v55  ;;  %v11554_v55 = vld [vmem:[%s15635_s9 + $0x380] ss:$28 sps:$4 sm:$0xff]  }
 0x490   : > { %7155 = vmatpush1.bf16.msra.mxu1 %v11551_v58 }
 0x491   : > { %7165 = vmatprep.subr.bf16.mxu1 %v11559_v4 }
 0x51e   : > { %v5198_v15 = vpop.f32.mrb[40].mxu1  ;;  %v5239_v16 = vpop.f32.mrb[16].mxu0 }
 0x51f   : > { %v5199_v21 = vadd.f32 %v5198_v15, %v5086_v7  ;;  %v5240_v18 = vadd.f32 %v5239_v16, %v5094_v8  ;;  %v5200_v19 = vpop.f32.mrb[41].mxu1  ;;  %v5241_v38 = vpop.f32.mrb[17].mxu0  ;;  %v11565_v7 = vld [vmem:[%s15635_s9 + $0x3c4] ss:$28 sps:$4 sm:$0xff]   ;;  %v11560_v8 = vld [vmem:[%s15635_s9 + $0x3b8] ss:$28 sps:$4 sm:$0xff]  }
 0x520   : > { %v5201_v20 = vadd.f32 %v5200_v19, %v5090_v9  ;;  %v5242_v22 = vadd.f32 %v5241_v38, %v5098_v11  ;;  %v5202_v62 = vpop.f32.mrb[42].mxu1  ;;  %v5243_v23 = vpop.f32.mrb[18].mxu0  ;;  %v11563_v9 = vld [vmem:[%s15635_s9 + $0x3c0] ss:$28 sps:$4 sm:$0xff]   ;;  %v11568_v11 = vld [vmem:[%s15635_s9 + $0x3f4] ss:$28 sps:$4 sm:$0xff]  }
 0x521   : > { %v5203_v26 = vpop.f32.mrb[43].mxu1  ;;  %v5244_v10 = vpop.f32.mrb[19].mxu0  ;;  %v11566_v15 = vld [vmem:[%s15635_s9 + $0x3f0] ss:$28 sps:$4 sm:$0xff]   ;;  %v11569_v16 = vld [vmem:[%s15635_s9 + $0x3f8] ss:$28 sps:$4 sm:$0xff]  }
 0x522   : > { %v5301_v12 = vcombine.low %v5199_v21, %v5201_v20  ;;  %v5302_v28 = vcombine.low %v5240_v18, %v5242_v22  ;;  %v11574_v21 = vld [vmem:[%s15635_s9 + $0x42c] ss:$28 sps:$4 sm:$0xff]   ;;  %v11577_v18 = vld [vmem:[%s15635_s9 + $0x434] ss:$28 sps:$4 sm:$0xff]   ;;  %v11580_v20 = vld [vmem:[%s15635_s9 + $0x464] ss:$28 sps:$4 sm:$0xff]  }
 0x523   : > { %v11572_v19 = vld [vmem:[%s15635_s9 + $0x428] ss:$28 sps:$4 sm:$0xff]   ;;  %v11575_v38 = vld [vmem:[%s15635_s9 + $0x430] ss:$28 sps:$4 sm:$0xff]   ;;  %v11578_v62 = vld [vmem:[%s15635_s9 + $0x460] ss:$28 sps:$4 sm:$0xff]  }
 0x524   : > { %v5309_v31 = vrot.slane %v5301_v12, %v12483_v50  ;;  %v5316_v34 = vrot.slane %v5302_v28, %v12483_v50  ;;  %v11583_v22 = vld [vmem:[%s15635_s9 + $0x46c] ss:$28 sps:$4 sm:$0xff]   ;;  %v11589_v26 = vld [vmem:[%s15635_s9 + $0x4a4] ss:$28 sps:$4 sm:$0xff]   ;;  %v11584_v10 = vld [vmem:[%s15635_s9 + $0x498] ss:$28 sps:$4 sm:$0xff]  }
 0x525   : > { %v11581_v23 = vld [vmem:[%s15635_s9 + $0x468] ss:$28 sps:$4 sm:$0xff]   ;;  %v11587_v12 = vld [vmem:[%s15635_s9 + $0x4a0] ss:$28 sps:$4 sm:$0xff]   ;;  %v11592_v28 = vld [vmem:[%s15635_s9 + $0x4d4] ss:$28 sps:$4 sm:$0xff]  }
 0x526   : > { %v5317_v61 = vcombine.low %v5309_v31, %v5316_v34  ;;  %v5280_v43 = vpop.f32.mrb[44].mxu1  ;;  %v11593_v31 = vld [vmem:[%s15635_s9 + $0x4d8] ss:$28 sps:$4 sm:$0xff]  }
 0x527   : > { %v5281_v17 = vadd.f32 %v5280_v43, %v5102_v30  ;;  %v10566_v37 = vpop.f32.mrb[45].mxu1  ;;  %v11590_v30 = vld [vmem:[%s15635_s9 + $0x4d0] ss:$28 sps:$4 sm:$0xff]   ;;  %v11604_v43 = vld [vmem:[%s15635_s9 + $0x544] ss:$28 sps:$4 sm:$0xff]  }
 0x528   : > { %v5327_v39 = vadd.f32 %v5317_v61, %v5294_v33  ;;  %v5283_v63 = vpop.f32.mrb[46].mxu1  ;;  %v11598_v33 = vld [vmem:[%s15635_s9 + $0x50c] ss:$28 sps:$4 sm:$0xff]   ;;  %v11601_v34 = vld [vmem:[%s15635_s9 + $0x514] ss:$28 sps:$4 sm:$0xff]  }
 0x529   : > { %v5324_v40 = vrot.slane %v5281_v17, %v12483_v50  ;;  %v10567_v45 = vpop.f32.mrb[47].mxu1  ;;  %v11596_v61 = vld [vmem:[%s15635_s9 + $0x508] ss:$28 sps:$4 sm:$0xff]   ;;  %v11602_v17 = vld [vmem:[%s15635_s9 + $0x540] ss:$28 sps:$4 sm:$0xff]  }
 0x52a   : > { %v5331_v46 = vsub.f32 %v5327_v39, %v5329_v42  ;;  %v11599_v42 = vld [vmem:[%s15635_s9 + $0x510] ss:$28 sps:$4 sm:$0xff]   ;;  %v11610_v37 = vld [vmem:[%s15635_s9 + $0x57c] ss:$28 sps:$4 sm:$0xff]   ;;  %v11613_v39 = vld [vmem:[%s15635_s9 + $0x584] ss:$28 sps:$4 sm:$0xff]  }
 0x52b   : > { %v5328_v47 = vadd.f32 %v5324_v40, %v5295_v24  ;;  %v11605_v24 = vld [vmem:[%s15635_s9 + $0x548] ss:$28 sps:$4 sm:$0xff]   ;;  %v11608_v63 = vld [vmem:[%s15635_s9 + $0x578] ss:$28 sps:$4 sm:$0xff]   ;;  %v11611_v40 = vld [vmem:[%s15635_s9 + $0x580] ss:$28 sps:$4 sm:$0xff]  }
 0x52c   : > { %5333 = vst [vmem:[#allocation5] sm:$0xff] %v5331_v46  ;;  %vm5335_vm15 = vcmp.gt.f32.partialorder %v5331_v46, 0.5  ;;  %v11619_v45 = vld [vmem:[%s15635_s9 + $0x5bc] ss:$28 sps:$4 sm:$0xff]   ;;  %v11614_v46 = vld [vmem:[%s15635_s9 + $0x5b0] ss:$28 sps:$4 sm:$0xff]  }
 0x52d   : > { %v14309_v48 = vsub.f32 %v5328_v47, %v5330_v41  ;;  %v9861_v49 = vsel %vm5335_vm15, 1.0, %v12195_v27  ;;  %v11616_v41 = vld [vmem:[%s15635_s9 + $0x5b4] ss:$28 sps:$4 sm:$0xff]  }
 0x52e   : > { %v5350_v13 = vrot.slane %v9861_v49, %v12483_v50  ;;  %v5343_v53 = vcombine.high %v9861_v49, %v9861_v49  ;;  %v11617_v47 = vld [vmem:[%s15635_s9 + $0x5b8] ss:$28 sps:$4 sm:$0xff]   ;;  %v11622_v49 = vld [vmem:[%s15635_s9 + $0x5ec] ss:$28 sps:$4 sm:$0xff]  }
 0x52f   : > { %5334 = vst.msk [vmem:[#allocation5 + $0x8] sm:$0x3] %vm4592_vm5, %v14309_v48  ;;  %vm5336_vm2 = vcmp.gt.f32.partialorder %v14309_v48, 0.5  ;;  %v11673_v48 = vld [vmem:[%s15635_s9 + $0x7b4] ss:$28 sps:$4 sm:$0xff]  }
 0x530   : > { %v5358_v51 = vcombine.high %v5350_v13, %v5350_v13  ;;  %v14316_v52 = vrot.slane %v5343_v53, %v12483_v50  ;;  %v14328_v60 = vpack.c.bf16 %v5350_v13, %v5350_v13  ;;  %v11625_v13 = vld [vmem:[%s15635_s9 + $0x5f4] ss:$28 sps:$4 sm:$0xff]   ;;  %v11620_v53 = vld [vmem:[%s15635_s9 + $0x5e8] ss:$28 sps:$4 sm:$0xff]  }
 0x532   : > { %v14318_v54 = vpack.c.bf16 %v5358_v51, %v5358_v51  ;;  %v5359_v58 = vcombine.high %v14316_v52, %v14316_v52  ;;  %v11623_v51 = vld [vmem:[%s15635_s9 + $0x5f0] ss:$28 sps:$4 sm:$0xff]  }
 0x534   : > { %7033 = vmatprep.mubr.bf16.mxu0 %v14318_v54  ;;  %7156 = vmatprep.mubr.bf16.mxu1 %v14318_v54  ;;  %v14332_v4 = vpack.c.bf16 %v5359_v58, %v5359_v58  ;;  %v11626_v58 = vld [vmem:[%s15635_s9 + $0x620] ss:$28 sps:$4 sm:$0xff]  }
 0x535   : > { %7034 = vmatmul.mubr.bf16.vlgmr.msra.gmra.mrb[20].mxu0 %v14328_v60  ;;  %7157 = vmatmul.mubr.bf16.vlgmr.msra.gmra.mrb[48].mxu1 %v14328_v60 }
 0x536   : > { %7043 = vmatpush1.bf16.msra.mxu0 %v11554_v55  ;;  %7166 = vmatpush1.bf16.msra.mxu1 %v11557_v57  ;;  %v11628_v55 = vld [vmem:[%s15635_s9 + $0x624] ss:$28 sps:$4 sm:$0xff]   ;;  %v11631_v57 = vld [vmem:[%s15635_s9 + $0x62c] ss:$28 sps:$4 sm:$0xff]  }
 0x537   : > { %7074 = vmatprep.mubr.bf16.mxu0 %v14332_v4  ;;  %7197 = vmatprep.mubr.bf16.mxu1 %v14332_v4 }
 0x538   : > { %7044 = vmatprep.subr.bf16.mxu0 %v11562_v6  ;;  %7167 = vmatprep.subr.bf16.mxu1 %v11565_v7  ;;  %v11629_v6 = vld [vmem:[%s15635_s9 + $0x628] ss:$28 sps:$4 sm:$0xff]   ;;  %v11634_v7 = vld [vmem:[%s15635_s9 + $0x65c] ss:$28 sps:$4 sm:$0xff]  }
 0x53a   : > { %7045 = vmatpush1.bf16.msra.mxu0 %v11560_v8  ;;  %7168 = vmatpush1.bf16.msra.mxu1 %v11563_v9  ;;  %v11637_v8 = vld [vmem:[%s15635_s9 + $0x664] ss:$28 sps:$4 sm:$0xff]   ;;  %v11632_v9 = vld [vmem:[%s15635_s9 + $0x658] ss:$28 sps:$4 sm:$0xff]  }
 0x53b   : > { %7046 = vmatprep.subr.bf16.mxu0 %v11568_v11  ;;  %7169 = vmatprep.subr.bf16.mxu1 %v11571_v14  ;;  %v11635_v11 = vld [vmem:[%s15635_s9 + $0x660] ss:$28 sps:$4 sm:$0xff]   ;;  %v11640_v14 = vld [vmem:[%s15635_s9 + $0x694] ss:$28 sps:$4 sm:$0xff]  }
 0x53e   : > { %7047 = vmatpush1.bf16.msra.mxu0 %v11566_v15  ;;  %7170 = vmatpush1.bf16.msra.mxu1 %v11569_v16  ;;  %v11643_v15 = vld [vmem:[%s15635_s9 + $0x69c] ss:$28 sps:$4 sm:$0xff]   ;;  %v11638_v16 = vld [vmem:[%s15635_s9 + $0x690] ss:$28 sps:$4 sm:$0xff]  }
 0x53f   : > { %7048 = vmatprep.subr.bf16.mxu0 %v11574_v21  ;;  %7171 = vmatprep.subr.bf16.mxu1 %v11577_v18  ;;  %v11641_v21 = vld [vmem:[%s15635_s9 + $0x698] ss:$28 sps:$4 sm:$0xff]   ;;  %v11646_v18 = vld [vmem:[%s15635_s9 + $0x6cc] ss:$28 sps:$4 sm:$0xff]  }
 0x542   : > { %7049 = vmatpush1.bf16.msra.mxu0 %v11572_v19  ;;  %7172 = vmatpush1.bf16.msra.mxu1 %v11575_v38  ;;  %v11649_v19 = vld [vmem:[%s15635_s9 + $0x6d4] ss:$28 sps:$4 sm:$0xff]   ;;  %v11644_v38 = vld [vmem:[%s15635_s9 + $0x6c8] ss:$28 sps:$4 sm:$0xff]  }
 0x543   : > { %7050 = vmatprep.subr.bf16.mxu0 %v11580_v20  ;;  %7173 = vmatprep.subr.bf16.mxu1 %v11583_v22  ;;  %v11647_v20 = vld [vmem:[%s15635_s9 + $0x6d0] ss:$28 sps:$4 sm:$0xff]   ;;  %v11652_v22 = vld [vmem:[%s15635_s9 + $0x704] ss:$28 sps:$4 sm:$0xff]  }
 0x546   : > { %7051 = vmatpush1.bf16.msra.mxu0 %v11578_v62  ;;  %7174 = vmatpush1.bf16.msra.mxu1 %v11581_v23  ;;  %v11655_v62 = vld [vmem:[%s15635_s9 + $0x70c] ss:$28 sps:$4 sm:$0xff]   ;;  %v11650_v23 = vld [vmem:[%s15635_s9 + $0x700] ss:$28 sps:$4 sm:$0xff]  }
 0x547   : > { %7052 = vmatprep.subr.bf16.mxu0 %v11586_v25  ;;  %7175 = vmatprep.subr.bf16.mxu1 %v11589_v26  ;;  %v11653_v25 = vld [vmem:[%s15635_s9 + $0x708] ss:$28 sps:$4 sm:$0xff]   ;;  %v14532_v26 = vpack.c.bf16 %v14316_v52, %v14316_v52  ;;  %v11656_v52 = vld [vmem:[%s15635_s9 + $0x738] ss:$28 sps:$4 sm:$0xff]  }
 0x54a   : > { %7053 = vmatpush1.bf16.msra.mxu0 %v11584_v10  ;;  %7176 = vmatpush1.bf16.msra.mxu1 %v11587_v12  ;;  %v11658_v10 = vld [vmem:[%s15635_s9 + $0x73c] ss:$28 sps:$4 sm:$0xff]   ;;  %v11661_v12 = vld [vmem:[%s15635_s9 + $0x744] ss:$28 sps:$4 sm:$0xff]  }
 0x54b   : > { %7054 = vmatprep.subr.bf16.mxu0 %v11592_v28  ;;  %7177 = vmatprep.subr.bf16.mxu1 %v11595_v29  ;;  %v11659_v28 = vld [vmem:[%s15635_s9 + $0x740] ss:$28 sps:$4 sm:$0xff]   ;;  %v11664_v29 = vld [vmem:[%s15635_s9 + $0x774] ss:$28 sps:$4 sm:$0xff]  }
 0x54e   : > { %7055 = vmatpush1.bf16.msra.mxu0 %v11590_v30  ;;  %7178 = vmatpush1.bf16.msra.mxu1 %v11593_v31  ;;  %v11667_v30 = vld [vmem:[%s15635_s9 + $0x77c] ss:$28 sps:$4 sm:$0xff]   ;;  %v11662_v31 = vld [vmem:[%s15635_s9 + $0x770] ss:$28 sps:$4 sm:$0xff]  }
 0x54f   : > { %7056 = vmatprep.subr.bf16.mxu0 %v11598_v33  ;;  %7179 = vmatprep.subr.bf16.mxu1 %v11601_v34  ;;  %v11665_v33 = vld [vmem:[%s15635_s9 + $0x778] ss:$28 sps:$4 sm:$0xff]   ;;  %v11670_v34 = vld [vmem:[%s15635_s9 + $0x7ac] ss:$28 sps:$4 sm:$0xff]  }
 0x552   : > { %7057 = vmatpush1.bf16.msra.mxu0 %v11596_v61  ;;  %7180 = vmatpush1.bf16.msra.mxu1 %v11599_v42  ;;  %v9862_v61 = vsel %vm5336_vm2, 1.0, %v12195_v27  ;;  %v11668_v42 = vld [vmem:[%s15635_s9 + $0x7a8] ss:$28 sps:$4 sm:$0xff]  }
 0x553   : > { %7058 = vmatprep.subr.bf16.mxu0 %v11604_v43  ;;  %7181 = vmatprep.subr.bf16.mxu1 %v11607_v35  ;;  %v11671_v43 = vld [vmem:[%s15635_s9 + $0x7b0] ss:$28 sps:$4 sm:$0xff]   ;;  %v5366_v35 = vrot.slane %v9862_v61, %v12483_v50  ;;  %v11731_v61 = vld [vmem:[%s15635_s9 + $0x27c] ss:$28 sps:$4 sm:$0xff]  }
 0x556   : > { %7059 = vmatpush1.bf16.msra.mxu0 %v11602_v17  ;;  %7182 = vmatpush1.bf16.msra.mxu1 %v11605_v24  ;;  %v11676_v17 = vld [vmem:[%s15635_s9 + $0x14] ss:$28 sps:$4 sm:$0xff]  }
 0x557   : > { %7060 = vmatprep.subr.bf16.mxu0 %v11610_v37  ;;  %7183 = vmatprep.subr.bf16.mxu1 %v11613_v39  ;;  %v11677_v24 = vld [vmem:[%s15635_s9 + $0x1d8] ss:$28 sps:$4 sm:$0xff]   ;;  %v11674_v37 = vld [vmem:[%s15635_s9 + $0x10] ss:$28 sps:$4 sm:$0xff]   ;;  %v14586_v39 = vpack.c.bf16 %v5366_v35, %v5366_v35  ;;  %v11733_v35 = vld [vmem:[%s15635_s9 + $0x440] ss:$28 sps:$4 sm:$0xff]  }
 0x55a   : > { %7061 = vmatpush1.bf16.msra.mxu0 %v11608_v63  ;;  %7184 = vmatpush1.bf16.msra.mxu1 %v11611_v40  ;;  %v11678_v63 = vld [vmem:[%s15635_s9 + $0x18] ss:$28 sps:$4 sm:$0xff]   ;;  %v11681_v40 = vld [vmem:[%s15635_s9 + $0x4c] ss:$28 sps:$4 sm:$0xff]  }
 0x55b   : > { %7062 = vmatprep.subr.bf16.mxu0 %v11616_v41  ;;  %7185 = vmatprep.subr.bf16.mxu1 %v11619_v45  ;;  %v11682_v41 = vld [vmem:[%s15635_s9 + $0x210] ss:$28 sps:$4 sm:$0xff]   ;;  %v11679_v45 = vld [vmem:[%s15635_s9 + $0x48] ss:$28 sps:$4 sm:$0xff]  }
 0x55e   : > { %7063 = vmatpush1.bf16.msra.mxu0 %v11614_v46  ;;  %7186 = vmatpush1.bf16.msra.mxu1 %v11617_v47  ;;  %v11683_v46 = vld [vmem:[%s15635_s9 + $0x50] ss:$28 sps:$4 sm:$0xff]   ;;  %v11686_v47 = vld [vmem:[%s15635_s9 + $0x84] ss:$28 sps:$4 sm:$0xff]  }
 0x55f   : > { %7064 = vmatprep.subr.bf16.mxu0 %v11622_v49  ;;  %7187 = vmatprep.subr.bf16.mxu1 %v11625_v13  ;;  %v11687_v49 = vld [vmem:[%s15635_s9 + $0x248] ss:$28 sps:$4 sm:$0xff]   ;;  %v11684_v13 = vld [vmem:[%s15635_s9 + $0x80] ss:$28 sps:$4 sm:$0xff]  }
 0x562   : > { %7065 = vmatpush1.bf16.msra.mxu0 %v11620_v53  ;;  %7188 = vmatpush1.bf16.msra.mxu1 %v11623_v51  ;;  %v11691_v53 = vld [vmem:[%s15635_s9 + $0xbc] ss:$28 sps:$4 sm:$0xff]  }
 0x563   : > { %7066 = vmatprep.subr.bf16.mxu0 %v11628_v55  ;;  %7189 = vmatprep.subr.bf16.mxu1 %v11631_v57  ;;  %v11692_v51 = vld [vmem:[%s15635_s9 + $0x280] ss:$28 sps:$4 sm:$0xff]   ;;  %v11689_v55 = vld [vmem:[%s15635_s9 + $0xb8] ss:$28 sps:$4 sm:$0xff]  }
 0x564   : > { %v11693_v57 = vld [vmem:[%s15635_s9 + $0xc0] ss:$28 sps:$4 sm:$0xff]  }
 0x566   : > { %7067 = vmatpush1.bf16.msra.mxu0 %v11626_v58  ;;  %7190 = vmatpush1.bf16.msra.mxu1 %v11629_v6  ;;  %v11696_v58 = vld [vmem:[%s15635_s9 + $0xf4] ss:$28 sps:$4 sm:$0xff]  }
 0x567   : > { %7068 = vmatprep.subr.bf16.mxu0 %v11634_v7  ;;  %7191 = vmatprep.subr.bf16.mxu1 %v11637_v8  ;;  %v11697_v6 = vld [vmem:[%s15635_s9 + $0x2b8] ss:$28 sps:$4 sm:$0xff]   ;;  %v11694_v7 = vld [vmem:[%s15635_s9 + $0xf0] ss:$28 sps:$4 sm:$0xff]  }
 0x568   : > { %v11698_v8 = vld [vmem:[%s15635_s9 + $0xf8] ss:$28 sps:$4 sm:$0xff]  }
 0x56a   : > { %7069 = vmatpush1.bf16.msra.mxu0 %v11632_v9  ;;  %7192 = vmatpush1.bf16.msra.mxu1 %v11635_v11  ;;  %v11701_v9 = vld [vmem:[%s15635_s9 + $0x12c] ss:$28 sps:$4 sm:$0xff]  }
 0x56b   : > { %7070 = vmatprep.subr.bf16.mxu0 %v11640_v14  ;;  %7193 = vmatprep.subr.bf16.mxu1 %v11643_v15  ;;  %v11702_v11 = vld [vmem:[%s15635_s9 + $0x2f0] ss:$28 sps:$4 sm:$0xff]   ;;  %v11699_v14 = vld [vmem:[%s15635_s9 + $0x128] ss:$28 sps:$4 sm:$0xff]  }
 0x56c   : > { %v11703_v15 = vld [vmem:[%s15635_s9 + $0x130] ss:$28 sps:$4 sm:$0xff]  }
 0x56e   : > { %7071 = vmatpush1.bf16.msra.mxu0 %v11638_v16  ;;  %7194 = vmatpush1.bf16.msra.mxu1 %v11641_v21  ;;  %v11706_v16 = vld [vmem:[%s15635_s9 + $0x164] ss:$28 sps:$4 sm:$0xff]  }
 0x56f   : > { %7072 = vmatprep.subr.bf16.mxu0 %v11646_v18  ;;  %7195 = vmatprep.subr.bf16.mxu1 %v11649_v19  ;;  %v11707_v21 = vld [vmem:[%s15635_s9 + $0x328] ss:$28 sps:$4 sm:$0xff]   ;;  %v11704_v18 = vld [vmem:[%s15635_s9 + $0x160] ss:$28 sps:$4 sm:$0xff]  }
 0x570   : > { %v11708_v19 = vld [vmem:[%s15635_s9 + $0x168] ss:$28 sps:$4 sm:$0xff]  }
 0x572   : > { %7073 = vmatpush1.bf16.msra.mxu0 %v11644_v38  ;;  %7196 = vmatpush1.bf16.msra.mxu1 %v11647_v20  ;;  %v11711_v38 = vld [vmem:[%s15635_s9 + $0x19c] ss:$28 sps:$4 sm:$0xff]  }
 0x573   : > { %7083 = vmatprep.subr.bf16.mxu0 %v11652_v22  ;;  %7206 = vmatprep.subr.bf16.mxu1 %v11655_v62  ;;  %v11712_v20 = vld [vmem:[%s15635_s9 + $0x360] ss:$28 sps:$4 sm:$0xff]   ;;  %v11709_v22 = vld [vmem:[%s15635_s9 + $0x198] ss:$28 sps:$4 sm:$0xff]  }
 0x574   : > { %v11713_v62 = vld [vmem:[%s15635_s9 + $0x1a0] ss:$28 sps:$4 sm:$0xff]  }
 0x575   : > { %7075 = vmatmul.mubr.bf16.vlgmr.msra.gmra.mrb[20].mxu0 %v14532_v26  ;;  %7198 = vmatmul.mubr.bf16.vlgmr.msra.gmra.mrb[48].mxu1 %v14532_v26 }
 0x576   : > { %7084 = vmatpush1.bf16.msra.mxu0 %v11650_v23  ;;  %7207 = vmatpush1.bf16.msra.mxu1 %v11653_v25  ;;  %v11716_v23 = vld [vmem:[%s15635_s9 + $0x1d4] ss:$28 sps:$4 sm:$0xff]  }
 0x577   : > { %7085 = vmatprep.subr.bf16.mxu0 %v11658_v10  ;;  %7208 = vmatprep.subr.bf16.mxu1 %v11661_v12  ;;  %v11717_v25 = vld [vmem:[%s15635_s9 + $0x558] ss:$28 sps:$4 sm:$0xff]   ;;  %v11714_v10 = vld [vmem:[%s15635_s9 + $0x1d0] ss:$28 sps:$4 sm:$0xff]  }
 0x578   : > { %7115 = vmatprep.mubr.bf16.mxu0 %v12196_v5  ;;  %7238 = vmatprep.mubr.bf16.mxu1 %v12196_v5  ;;  %v11718_v12 = vld [vmem:[%s15635_s9 + $0x398] ss:$28 sps:$4 sm:$0xff]  }
 0x57a   : > { %7086 = vmatpush1.bf16.msra.mxu0 %v11656_v52  ;;  %7209 = vmatpush1.bf16.msra.mxu1 %v11659_v28  ;;  %v11721_v52 = vld [vmem:[%s15635_s9 + $0x20c] ss:$28 sps:$4 sm:$0xff]  }
 0x57b   : > { %7087 = vmatprep.subr.bf16.mxu0 %v11664_v29  ;;  %7210 = vmatprep.subr.bf16.mxu1 %v11667_v30  ;;  %v11722_v28 = vld [vmem:[%s15635_s9 + $0x590] ss:$28 sps:$4 sm:$0xff]   ;;  %v11719_v29 = vld [vmem:[%s15635_s9 + $0x208] ss:$28 sps:$4 sm:$0xff]  }
 0x57c   : > { %v11723_v30 = vld [vmem:[%s15635_s9 + $0x3d0] ss:$28 sps:$4 sm:$0xff]  }
 0x57e   : > { %7088 = vmatpush1.bf16.msra.mxu0 %v11662_v31  ;;  %7211 = vmatpush1.bf16.msra.mxu1 %v11665_v33  ;;  %v11726_v31 = vld [vmem:[%s15635_s9 + $0x244] ss:$28 sps:$4 sm:$0xff]  }
 0x57f   : > { %7089 = vmatprep.subr.bf16.mxu0 %v11670_v34  ;;  %7212 = vmatprep.subr.bf16.mxu1 %v11673_v48  ;;  %v11727_v33 = vld [vmem:[%s15635_s9 + $0x5c8] ss:$28 sps:$4 sm:$0xff]   ;;  %v11724_v34 = vld [vmem:[%s15635_s9 + $0x240] ss:$28 sps:$4 sm:$0xff]  }
 0x580   : > { %v11728_v48 = vld [vmem:[%s15635_s9 + $0x408] ss:$28 sps:$4 sm:$0xff]  }
 0x582   : > { %7090 = vmatpush1.bf16.msra.mxu0 %v11668_v42  ;;  %7213 = vmatpush1.bf16.msra.mxu1 %v11671_v43  ;;  %v11732_v42 = vld [vmem:[%s15635_s9 + $0x600] ss:$28 sps:$4 sm:$0xff]   ;;  %v11729_v43 = vld [vmem:[%s15635_s9 + $0x278] ss:$28 sps:$4 sm:$0xff]  }
 0x583   : > { %7247 = vmatprep.subr.bf16.mxu0 %v11676_v17  ;;  %10493 = vmatprep.subr.bf16.mxu1 %v11677_v24  ;;  %v11736_v17 = vld [vmem:[%s15635_s9 + $0x2b4] ss:$28 sps:$4 sm:$0xff]  }
 0x584   : > { %v11737_v24 = vld [vmem:[%s15635_s9 + $0x638] ss:$28 sps:$4 sm:$0xff]  }
 0x585   : > { %10115 = vmatmul.mubr.msk.bf16.vlgmr.msra.gmra.mrb[20].mxu0 %vm4931_vm7, %v14586_v39  ;;  %10116 = vmatmul.mubr.msk.bf16.vlgmr.msra.gmra.mrb[48].mxu1 %vm4931_vm7, %v14586_v39 }
 0x586   : > { %7248 = vmatpush1.bf16.msra.mxu0 %v11674_v37  ;;  %7279 = vmatprep.mubr.bf16.mxu0 %v14318_v54  ;;  %v11734_v37 = vld [vmem:[%s15635_s9 + $0x2b0] ss:$28 sps:$4 sm:$0xff]  }
 0x587   : > { %10494 = vmatpush3.bf16.msra.mxu1 %v11678_v63  ;;  %7402 = vmatprep.mubr.bf16.mxu1 %v14318_v54  ;;  %v11688_v54 = vld [vmem:[%s15635_s9 + $0x88] ss:$28 sps:$4 sm:$0xff]   ;;  %v11738_v63 = vld [vmem:[%s15635_s9 + $0x478] ss:$28 sps:$4 sm:$0xff]  }
 0x588   : > { %7249 = vmatprep.subr.bf16.mxu0 %v11681_v40  ;;  %10495 = vmatprep.subr.bf16.mxu1 %v11682_v41  ;;  %v11741_v40 = vld [vmem:[%s15635_s9 + $0x2ec] ss:$28 sps:$4 sm:$0xff]  }
 0x589   : > { %v11742_v41 = vld [vmem:[%s15635_s9 + $0x670] ss:$28 sps:$4 sm:$0xff]  }
 0x58a   : > { %7250 = vmatpush1.bf16.msra.mxu0 %v11679_v45  ;;  %v11739_v45 = vld [vmem:[%s15635_s9 + $0x2e8] ss:$28 sps:$4 sm:$0xff]  }
 0x58b   : > { %10496 = vmatpush3.bf16.msra.mxu1 %v11683_v46  ;;  %7251 = vmatprep.subr.bf16.mxu0 %v11686_v47  ;;  %v11743_v46 = vld [vmem:[%s15635_s9 + $0x4b0] ss:$28 sps:$4 sm:$0xff]   ;;  %v11746_v47 = vld [vmem:[%s15635_s9 + $0x324] ss:$28 sps:$4 sm:$0xff]  }
 0x58c   : > { %10497 = vmatprep.subr.bf16.mxu1 %v11687_v49  ;;  %v11747_v49 = vld [vmem:[%s15635_s9 + $0x6a8] ss:$28 sps:$4 sm:$0xff]  }
 0x58e   : > { %7252 = vmatpush1.bf16.msra.mxu0 %v11684_v13  ;;  %v11744_v13 = vld [vmem:[%s15635_s9 + $0x320] ss:$28 sps:$4 sm:$0xff]  }
 0x58f   : > { %10498 = vmatpush3.bf16.msra.mxu1 %v11688_v54  ;;  %7253 = vmatprep.subr.bf16.mxu0 %v11691_v53  ;;  %v11748_v54 = vld [vmem:[%s15635_s9 + $0x4e8] ss:$28 sps:$4 sm:$0xff]   ;;  %v11751_v53 = vld [vmem:[%s15635_s9 + $0x35c] ss:$28 sps:$4 sm:$0xff]  }
 0x590   : > { %10499 = vmatprep.subr.bf16.mxu1 %v11692_v51  ;;  %v11752_v51 = vld [vmem:[%s15635_s9 + $0x6e0] ss:$28 sps:$4 sm:$0xff]  }
 0x592   : > { %7254 = vmatpush1.bf16.msra.mxu0 %v11689_v55  ;;  %v11749_v55 = vld [vmem:[%s15635_s9 + $0x358] ss:$28 sps:$4 sm:$0xff]  }
 0x593   : > { %10500 = vmatpush3.bf16.msra.mxu1 %v11693_v57  ;;  %7255 = vmatprep.subr.bf16.mxu0 %v11696_v58  ;;  %v11753_v57 = vld [vmem:[%s15635_s9 + $0x520] ss:$28 sps:$4 sm:$0xff]   ;;  %v11756_v58 = vld [vmem:[%s15635_s9 + $0x394] ss:$28 sps:$4 sm:$0xff]  }
 0x594   : > { %10501 = vmatprep.subr.bf16.mxu1 %v11697_v6  ;;  %v11754_v6 = vld [vmem:[%s15635_s9 + $0x390] ss:$28 sps:$4 sm:$0xff]  }
 0x596   : > { %7256 = vmatpush1.bf16.msra.mxu0 %v11694_v7  ;;  %v11757_v7 = vld [vmem:[%s15635_s9 + $0x718] ss:$28 sps:$4 sm:$0xff]  }
 0x597   : > { %10502 = vmatpush3.bf16.msra.mxu1 %v11698_v8  ;;  %7257 = vmatprep.subr.bf16.mxu0 %v11701_v9  ;;  %v11760_v8 = vld [vmem:[%s15635_s9 + $0x3cc] ss:$28 sps:$4 sm:$0xff]  }
 0x598   : > { %10503 = vmatprep.subr.bf16.mxu1 %v11702_v11  ;;  %v11758_v9 = vld [vmem:[%s15635_s9 + $0x3c8] ss:$28 sps:$4 sm:$0xff]   ;;  %v11761_v11 = vld [vmem:[%s15635_s9 + $0x750] ss:$28 sps:$4 sm:$0xff]  }
 0x59a   : > { %7258 = vmatpush1.bf16.msra.mxu0 %v11699_v14  ;;  %v11764_v14 = vld [vmem:[%s15635_s9 + $0x404] ss:$28 sps:$4 sm:$0xff]  }
 0x59b   : > { %10504 = vmatpush3.bf16.msra.mxu1 %v11703_v15  ;;  %7259 = vmatprep.subr.bf16.mxu0 %v11706_v16  ;;  %v11768_v15 = vld [vmem:[%s15635_s9 + $0x43c] ss:$28 sps:$4 sm:$0xff]  }
 0x59c   : > { %10505 = vmatprep.subr.bf16.mxu1 %v11707_v21  ;;  %v11766_v16 = vld [vmem:[%s15635_s9 + $0x438] ss:$28 sps:$4 sm:$0xff]   ;;  %v11769_v21 = vld [vmem:[%s15635_s9 + $0x7c0] ss:$28 sps:$4 sm:$0xff]  }
 0x59e   : > { %7260 = vmatpush1.bf16.msra.mxu0 %v11704_v18  ;;  %v11772_v18 = vld [vmem:[%s15635_s9 + $0x474] ss:$28 sps:$4 sm:$0xff]  }
 0x59f   : > { %10506 = vmatpush3.bf16.msra.mxu1 %v11708_v19  ;;  %7261 = vmatprep.subr.bf16.mxu0 %v11711_v38  ;;  %v11820_v19 = vld [vmem:[%s15637_s11 + $0x4] ss:$16 sps:$4 sm:$0xff]   ;;  %v11770_v38 = vld [vmem:[%s15635_s9 + $0x470] ss:$28 sps:$4 sm:$0xff]  }
 0x5a0   : > { %10507 = vmatprep.subr.bf16.mxu1 %v11712_v20  ;;  %v11775_v20 = vld [vmem:[%s15635_s9 + $0x4ac] ss:$28 sps:$4 sm:$0xff]  }
 0x5a2   : > { %7262 = vmatpush1.bf16.msra.mxu0 %v11709_v22  ;;  %v11818_v22 = vld [vmem:[%s15637_s11] ss:$16 sps:$4 sm:$0xff]  }
 0x5a3   : > { %10508 = vmatpush3.bf16.msra.mxu1 %v11713_v62  ;;  %7263 = vmatprep.subr.bf16.mxu0 %v11716_v23  ;;  %v11826_v62 = vld [vmem:[%s15637_s11 + $0x24] ss:$16 sps:$4 sm:$0xff]  }
 0x5a4   : > { %10515 = vmatprep.subr.bf16.mxu1 %v11717_v25  ;;  %v11773_v23 = vld [vmem:[%s15635_s9 + $0x4a8] ss:$28 sps:$4 sm:$0xff]  }
 0x5a5   : > { %v11778_v25 = vld [vmem:[%s15635_s9 + $0x4e4] ss:$28 sps:$4 sm:$0xff]  }
 0x5a6   : > { %7403 = vmatmul.mubr.bf16.vlgmr.msra.gmra.mrb[52].mxu1 %v14328_v60  ;;  %7264 = vmatpush1.bf16.msra.mxu0 %v11714_v10  ;;  %v11824_v10 = vld [vmem:[%s15637_s11 + $0x20] ss:$16 sps:$4 sm:$0xff]  }
 0x5a7   : > { %10516 = vmatpush3.bf16.msra.mxu1 %v11718_v12  ;;  %7442 = vmatprep.mubr.bf16.mxu1 %v14332_v4  ;;  %v11832_v12 = vld [vmem:[%s15637_s11 + $0x44] ss:$16 sps:$4 sm:$0xff]  }
 0x5a8   : > { %7265 = vmatprep.subr.bf16.mxu0 %v11721_v52  ;;  %10517 = vmatprep.subr.bf16.mxu1 %v11722_v28  ;;  %v11776_v52 = vld [vmem:[%s15635_s9 + $0x4e0] ss:$28 sps:$4 sm:$0xff]  }
 0x5a9   : > { %v11781_v28 = vld [vmem:[%s15635_s9 + $0x51c] ss:$28 sps:$4 sm:$0xff]  }
 0x5aa   : > { %7266 = vmatpush1.bf16.msra.mxu0 %v11719_v29  ;;  %v11830_v29 = vld [vmem:[%s15637_s11 + $0x40] ss:$16 sps:$4 sm:$0xff]  }
 0x5ab   : > { %10518 = vmatpush3.bf16.msra.mxu1 %v11723_v30  ;;  %7267 = vmatprep.subr.bf16.mxu0 %v11726_v31  ;;  %v11838_v30 = vld [vmem:[%s15637_s11 + $0x64] ss:$16 sps:$4 sm:$0xff]  }
 0x5ac   : > { %10519 = vmatprep.subr.bf16.mxu1 %v11727_v33  ;;  %v11779_v31 = vld [vmem:[%s15635_s9 + $0x518] ss:$28 sps:$4 sm:$0xff]  }
 0x5ad   : > { %v11784_v33 = vld [vmem:[%s15635_s9 + $0x554] ss:$28 sps:$4 sm:$0xff]  }
 0x5ae   : > { %7268 = vmatpush1.bf16.msra.mxu0 %v11724_v34  ;;  %v11836_v34 = vld [vmem:[%s15637_s11 + $0x60] ss:$16 sps:$4 sm:$0xff]  }
 0x5af   : > { %10520 = vmatpush3.bf16.msra.mxu1 %v11728_v48  ;;  %7269 = vmatprep.subr.bf16.mxu0 %v11731_v61  ;;  %v11844_v48 = vld [vmem:[%s15637_s11 + $0x84] ss:$16 sps:$4 sm:$0xff]   ;;  %v11782_v61 = vld [vmem:[%s15635_s9 + $0x550] ss:$28 sps:$4 sm:$0xff]  }
 0x5b0   : > { %10521 = vmatprep.subr.bf16.mxu1 %v11732_v42  ;;  %v11787_v42 = vld [vmem:[%s15635_s9 + $0x58c] ss:$28 sps:$4 sm:$0xff]  }
 0x5b2   : > { %7270 = vmatpush1.bf16.msra.mxu0 %v11729_v43  ;;  %v11842_v43 = vld [vmem:[%s15637_s11 + $0x80] ss:$16 sps:$4 sm:$0xff]  }
 0x5b3   : > { %10522 = vmatpush3.bf16.msra.mxu1 %v11733_v35  ;;  %7271 = vmatprep.subr.bf16.mxu0 %v11736_v17  ;;  %v11850_v35 = vld [vmem:[%s15637_s11 + $0xa4] ss:$16 sps:$4 sm:$0xff]  }
 0x5b4   : > { %10523 = vmatprep.subr.bf16.mxu1 %v11737_v24  ;;  %v11785_v17 = vld [vmem:[%s15635_s9 + $0x588] ss:$28 sps:$4 sm:$0xff]  }
 0x5b5   : > { %v11790_v24 = vld [vmem:[%s15635_s9 + $0x5c4] ss:$28 sps:$4 sm:$0xff]  }
 0x5b6   : > { %7272 = vmatpush1.bf16.msra.mxu0 %v11734_v37  ;;  %v11848_v37 = vld [vmem:[%s15637_s11 + $0xa0] ss:$16 sps:$4 sm:$0xff]  }
 0x5b7   : > { %10524 = vmatpush3.bf16.msra.mxu1 %v11738_v63  ;;  %7273 = vmatprep.subr.bf16.mxu0 %v11741_v40  ;;  %v11856_v63 = vld [vmem:[%s15637_s11 + $0xc4] ss:$16 sps:$4 sm:$0xff]   ;;  %v11788_v40 = vld [vmem:[%s15635_s9 + $0x5c0] ss:$28 sps:$4 sm:$0xff]  }
 0x5b8   : > { %10525 = vmatprep.subr.bf16.mxu1 %v11742_v41  ;;  %v11793_v41 = vld [vmem:[%s15635_s9 + $0x5fc] ss:$28 sps:$4 sm:$0xff]  }
 0x5ba   : > { %7274 = vmatpush1.bf16.msra.mxu0 %v11739_v45  ;;  %v11854_v45 = vld [vmem:[%s15637_s11 + $0xc0] ss:$16 sps:$4 sm:$0xff]  }
 0x5bb   : > { %10526 = vmatpush3.bf16.msra.mxu1 %v11743_v46  ;;  %7275 = vmatprep.subr.bf16.mxu0 %v11746_v47  ;;  %v11862_v46 = vld [vmem:[%s15637_s11 + $0xe4] ss:$16 sps:$4 sm:$0xff]  }
 0x5bc   : > { %10527 = vmatprep.subr.bf16.mxu1 %v11747_v49  ;;  %v11791_v47 = vld [vmem:[%s15635_s9 + $0x5f8] ss:$28 sps:$4 sm:$0xff]  }
 0x5bd   : > { %v11796_v49 = vld [vmem:[%s15635_s9 + $0x634] ss:$28 sps:$4 sm:$0xff]  }
 0x5be   : > { %7276 = vmatpush1.bf16.msra.mxu0 %v11744_v13  ;;  %v11860_v13 = vld [vmem:[%s15637_s11 + $0xe0] ss:$16 sps:$4 sm:$0xff]  }
 0x5bf   : > { %10528 = vmatpush3.bf16.msra.mxu1 %v11748_v54  ;;  %7277 = vmatprep.subr.bf16.mxu0 %v11751_v53  ;;  %v11868_v54 = vld [vmem:[%s15637_s11 + $0x104] ss:$16 sps:$4 sm:$0xff]   ;;  %v11794_v53 = vld [vmem:[%s15635_s9 + $0x630] ss:$28 sps:$4 sm:$0xff]  }
 0x5c0   : > { %10529 = vmatprep.subr.bf16.mxu1 %v11752_v51  ;;  %v11799_v51 = vld [vmem:[%s15635_s9 + $0x66c] ss:$28 sps:$4 sm:$0xff]  }
 0x5c2   : > { %7278 = vmatpush1.bf16.msra.mxu0 %v11749_v55  ;;  %v11866_v55 = vld [vmem:[%s15637_s11 + $0x100] ss:$16 sps:$4 sm:$0xff]  }
 0x5c3   : > { %10530 = vmatpush3.bf16.msra.mxu1 %v11753_v57  ;;  %7288 = vmatprep.subr.bf16.mxu0 %v11756_v58  ;;  %v11874_v57 = vld [vmem:[%s15637_s11 + $0x124] ss:$16 sps:$4 sm:$0xff]  }
 0x5c4   : > { %10568 = vmatprep.subr.bf16.mxu1 %v12195_v27  ;;  %v11797_v58 = vld [vmem:[%s15635_s9 + $0x668] ss:$28 sps:$4 sm:$0xff]  }
 0x5c5   : > { %7280 = vmatmul.mubr.bf16.vlgmr.msra.gmra.mrb[24].mxu0 %v14328_v60  ;;  %v11762_v60 = vld [vmem:[%s15635_s9 + $0x400] ss:$28 sps:$4 sm:$0xff]  }
 0x5c6   : > { %7443 = vmatmul.mubr.bf16.vlgmr.msra.gmra.mrb[56].mxu1 %v14532_v26  ;;  %7289 = vmatpush1.bf16.msra.mxu0 %v11754_v6  ;;  %v11802_v6 = vld [vmem:[%s15635_s9 + $0x6a4] ss:$28 sps:$4 sm:$0xff]  }
 0x5c7   : > { %7320 = vmatprep.mubr.bf16.mxu0 %v14332_v4  ;;  %10569 = vmatpush3.bf16.msra.mxu1 %v11757_v7  ;;  %v11765_v4 = vld [vmem:[%s15635_s9 + $0x788] ss:$28 sps:$4 sm:$0xff]   ;;  %v11872_v7 = vld [vmem:[%s15637_s11 + $0x120] ss:$16 sps:$4 sm:$0xff]  }
 0x5c8   : > { %7290 = vmatprep.subr.bf16.mxu0 %v11760_v8  ;;  %10570 = vmatprep.subr.bf16.mxu1 %v12195_v27  ;;  %v11880_v8 = vld [vmem:[%s15637_s11 + $0x144] ss:$16 sps:$4 sm:$0xff]  }
 0x5c9   : > { %10576 = vmatprep.mubr.msk.bf16.mxu1 %vm12197_vm1, %v12195_v27 }
 0x5ca   : > { %7291 = vmatpush1.bf16.msra.mxu0 %v11758_v9  ;;  %v11800_v9 = vld [vmem:[%s15635_s9 + $0x6a0] ss:$28 sps:$4 sm:$0xff]  }
 0x5cb   : > { %10571 = vmatpush3.bf16.msra.mxu1 %v11761_v11  ;;  %7292 = vmatprep.subr.bf16.mxu0 %v11764_v14  ;;  %v11805_v11 = vld [vmem:[%s15635_s9 + $0x6dc] ss:$28 sps:$4 sm:$0xff]   ;;  %v11878_v14 = vld [vmem:[%s15637_s11 + $0x140] ss:$16 sps:$4 sm:$0xff]  }
 0x5cc   : > { %10572 = vmatprep.subr.bf16.mxu1 %v12195_v27 }
 0x5ce   : > { %7293 = vmatpush1.bf16.msra.mxu0 %v11762_v60  ;;  %v11886_v60 = vld [vmem:[%s15637_s11 + $0x164] ss:$16 sps:$4 sm:$0xff]  }
 0x5cf   : > { %10573 = vmatpush3.bf16.msra.mxu1 %v11765_v4  ;;  %7294 = vmatprep.subr.bf16.mxu0 %v11768_v15  ;;  %v11803_v4 = vld [vmem:[%s15635_s9 + $0x6d8] ss:$28 sps:$4 sm:$0xff]  }
 0x5d0   : > { %10574 = vmatprep.subr.bf16.mxu1 %v12195_v27  ;;  %v11808_v15 = vld [vmem:[%s15635_s9 + $0x714] ss:$28 sps:$4 sm:$0xff]  }
 0x5d2   : > { %7295 = vmatpush1.bf16.msra.mxu0 %v11766_v16  ;;  %v11884_v16 = vld [vmem:[%s15637_s11 + $0x160] ss:$16 sps:$4 sm:$0xff]  }
 0x5d3   : > { %10575 = vmatpush3.bf16.msra.mxu1 %v11769_v21  ;;  %7296 = vmatprep.subr.bf16.mxu0 %v11772_v18  ;;  %v11892_v21 = vld [vmem:[%s15637_s11 + $0x184] ss:$16 sps:$4 sm:$0xff]   ;;  %v11806_v18 = vld [vmem:[%s15635_s9 + $0x710] ss:$28 sps:$4 sm:$0xff]  }
 0x5d4   : > { %8806 = vmatprep.subr.bf16.mxu1 %v11820_v19  ;;  %v11811_v19 = vld [vmem:[%s15635_s9 + $0x74c] ss:$28 sps:$4 sm:$0xff]  }
 0x5d6   : > { %10577 = vmatmul.mubr.msk.bf16.vlgmr.msra.gmra.mrb[60].mxu1 %vm4931_vm7, %v14586_v39  ;;  %7297 = vmatpush1.bf16.msra.mxu0 %v11770_v38  ;;  %v11890_v38 = vld [vmem:[%s15637_s11 + $0x180] ss:$16 sps:$4 sm:$0xff]  }
 0x5d7   : > { %7298 = vmatprep.subr.bf16.mxu0 %v11775_v20  ;;  %8807 = vmatpush1.bf16.msra.mxu1 %v11818_v22  ;;  %v11898_v20 = vld [vmem:[%s15637_s11 + $0x1a4] ss:$16 sps:$4 sm:$0xff]  }
 0x5d8   : > { %8808 = vmatprep.subr.bf16.mxu1 %v11826_v62  ;;  %v11809_v22 = vld [vmem:[%s15635_s9 + $0x748] ss:$28 sps:$4 sm:$0xff]  }
 0x5d9   : > { %v11814_v62 = vld [vmem:[%s15635_s9 + $0x784] ss:$28 sps:$4 sm:$0xff]  }
 0x5da   : > { %7299 = vmatpush1.bf16.msra.mxu0 %v11773_v23  ;;  %v11896_v23 = vld [vmem:[%s15637_s11 + $0x1a0] ss:$16 sps:$4 sm:$0xff]  }
 0x5db   : > { %7300 = vmatprep.subr.bf16.mxu0 %v11778_v25  ;;  %8809 = vmatpush1.bf16.msra.mxu1 %v11824_v10  ;;  %v11812_v25 = vld [vmem:[%s15635_s9 + $0x780] ss:$28 sps:$4 sm:$0xff]  }
 0x5dc   : > { %8810 = vmatprep.subr.bf16.mxu1 %v11832_v12  ;;  %v11817_v10 = vld [vmem:[%s15635_s9 + $0x7bc] ss:$28 sps:$4 sm:$0xff]   ;;  %v11902_v12 = vld [vmem:[%s15637_s11 + $0x1c0] ss:$16 sps:$4 sm:$0xff]  }
 0x5de   : > { %7301 = vmatpush1.bf16.msra.mxu0 %v11776_v52  ;;  %v11910_v52 = vld [vmem:[%s15637_s11 + $0x1e4] ss:$16 sps:$4 sm:$0xff]  }
 0x5df   : > { %7302 = vmatprep.subr.bf16.mxu0 %v11781_v28  ;;  %8811 = vmatpush1.bf16.msra.mxu1 %v11830_v29  ;;  %v11815_v28 = vld [vmem:[%s15635_s9 + $0x7b8] ss:$28 sps:$4 sm:$0xff]   ;;  %v11823_v29 = vld [vmem:[%s15637_s11 + $0xc] ss:$16 sps:$4 sm:$0xff]  }
 0x5e0   : > { %8812 = vmatprep.subr.bf16.mxu1 %v11838_v30  ;;  %v11908_v30 = vld [vmem:[%s15637_s11 + $0x1e0] ss:$16 sps:$4 sm:$0xff]  }
 0x5e2   : > { %7303 = vmatpush1.bf16.msra.mxu0 %v11779_v31  ;;  %v11916_v31 = vld [vmem:[%s15637_s11 + $0x204] ss:$16 sps:$4 sm:$0xff]  }
 0x5e3   : > { %7304 = vmatprep.subr.bf16.mxu0 %v11784_v33  ;;  %8813 = vmatpush1.bf16.msra.mxu1 %v11836_v34  ;;  %v11821_v33 = vld [vmem:[%s15637_s11 + $0x8] ss:$16 sps:$4 sm:$0xff]   ;;  %v11829_v34 = vld [vmem:[%s15637_s11 + $0x2c] ss:$16 sps:$4 sm:$0xff]  }
 0x5e4   : > { %8814 = vmatprep.subr.bf16.mxu1 %v11844_v48  ;;  %v11827_v48 = vld [vmem:[%s15637_s11 + $0x28] ss:$16 sps:$4 sm:$0xff]  }
 0x5e6   : > { %7305 = vmatpush1.bf16.msra.mxu0 %v11782_v61  ;;  %v11835_v61 = vld [vmem:[%s15637_s11 + $0x4c] ss:$16 sps:$4 sm:$0xff]  }
 0x5e7   : > { %7306 = vmatprep.subr.bf16.mxu0 %v11787_v42  ;;  %8815 = vmatpush1.bf16.msra.mxu1 %v11842_v43  ;;  %v11833_v42 = vld [vmem:[%s15637_s11 + $0x48] ss:$16 sps:$4 sm:$0xff]  }
 0x5e8   : > { %8816 = vmatprep.subr.bf16.mxu1 %v11850_v35  ;;  %v11839_v43 = vld [vmem:[%s15637_s11 + $0x68] ss:$16 sps:$4 sm:$0xff]   ;;  %v11847_v35 = vld [vmem:[%s15637_s11 + $0x8c] ss:$16 sps:$4 sm:$0xff]  }
 0x5ea   : > { %7307 = vmatpush1.bf16.msra.mxu0 %v11785_v17  ;;  %v11845_v17 = vld [vmem:[%s15637_s11 + $0x88] ss:$16 sps:$4 sm:$0xff]  }
 0x5eb   : > { %7308 = vmatprep.subr.bf16.mxu0 %v11790_v24  ;;  %8817 = vmatpush1.bf16.msra.mxu1 %v11848_v37  ;;  %v11853_v24 = vld [vmem:[%s15637_s11 + $0xac] ss:$16 sps:$4 sm:$0xff]   ;;  %v11851_v37 = vld [vmem:[%s15637_s11 + $0xa8] ss:$16 sps:$4 sm:$0xff]  }
 0x5ec   : > { %8818 = vmatprep.subr.bf16.mxu1 %v11856_v63  ;;  %v11859_v63 = vld [vmem:[%s15637_s11 + $0xcc] ss:$16 sps:$4 sm:$0xff]  }
 0x5ee   : > { %7309 = vmatpush1.bf16.msra.mxu0 %v11788_v40  ;;  %v11857_v40 = vld [vmem:[%s15637_s11 + $0xc8] ss:$16 sps:$4 sm:$0xff]  }
 0x5ef   : > { %7310 = vmatprep.subr.bf16.mxu0 %v11793_v41  ;;  %8819 = vmatpush1.bf16.msra.mxu1 %v11854_v45  ;;  %v11865_v41 = vld [vmem:[%s15637_s11 + $0xec] ss:$16 sps:$4 sm:$0xff]   ;;  %v11863_v45 = vld [vmem:[%s15637_s11 + $0xe8] ss:$16 sps:$4 sm:$0xff]  }
 0x5f0   : > { %8820 = vmatprep.subr.bf16.mxu1 %v11862_v46  ;;  %v11871_v46 = vld [vmem:[%s15637_s11 + $0x10c] ss:$16 sps:$4 sm:$0xff]  }
 0x5f2   : > { %7311 = vmatpush1.bf16.msra.mxu0 %v11791_v47  ;;  %v11869_v47 = vld [vmem:[%s15637_s11 + $0x108] ss:$16 sps:$4 sm:$0xff]  }
 0x5f3   : > { %7312 = vmatprep.subr.bf16.mxu0 %v11796_v49  ;;  %8821 = vmatpush1.bf16.msra.mxu1 %v11860_v13  ;;  %v11877_v49 = vld [vmem:[%s15637_s11 + $0x12c] ss:$16 sps:$4 sm:$0xff]   ;;  %v11875_v13 = vld [vmem:[%s15637_s11 + $0x128] ss:$16 sps:$4 sm:$0xff]  }
 0x5f4   : > { %8822 = vmatprep.subr.bf16.mxu1 %v11868_v54  ;;  %v11883_v54 = vld [vmem:[%s15637_s11 + $0x14c] ss:$16 sps:$4 sm:$0xff]  }
 0x5f6   : > { %7313 = vmatpush1.bf16.msra.mxu0 %v11794_v53  ;;  %v11881_v53 = vld [vmem:[%s15637_s11 + $0x148] ss:$16 sps:$4 sm:$0xff]  }
 0x5f7   : > { %7314 = vmatprep.subr.bf16.mxu0 %v11799_v51  ;;  %8823 = vmatpush1.bf16.msra.mxu1 %v11866_v55  ;;  %v11889_v51 = vld [vmem:[%s15637_s11 + $0x16c] ss:$16 sps:$4 sm:$0xff]   ;;  %v11887_v55 = vld [vmem:[%s15637_s11 + $0x168] ss:$16 sps:$4 sm:$0xff]  }
 0x5f8   : > { %8824 = vmatprep.subr.bf16.mxu1 %v11874_v57  ;;  %v11895_v57 = vld [vmem:[%s15637_s11 + $0x18c] ss:$16 sps:$4 sm:$0xff]  }
 0x5fa   : > { %7315 = vmatpush1.bf16.msra.mxu0 %v11797_v58  ;;  %v11893_v58 = vld [vmem:[%s15637_s11 + $0x188] ss:$16 sps:$4 sm:$0xff]  }
 0x5fb   : > { %7316 = vmatprep.subr.bf16.mxu0 %v11802_v6  ;;  %8825 = vmatpush1.bf16.msra.mxu1 %v11872_v7  ;;  %v11901_v6 = vld [vmem:[%s15637_s11 + $0x1ac] ss:$16 sps:$4 sm:$0xff]   ;;  %v11899_v7 = vld [vmem:[%s15637_s11 + $0x1a8] ss:$16 sps:$4 sm:$0xff]  }
 0x5fc   : > { %8826 = vmatprep.subr.bf16.mxu1 %v11880_v8  ;;  %v11907_v8 = vld [vmem:[%s15637_s11 + $0x1cc] ss:$16 sps:$4 sm:$0xff]  }
 0x5fe   : > { %7317 = vmatpush1.bf16.msra.mxu0 %v11800_v9  ;;  %v11905_v9 = vld [vmem:[%s15637_s11 + $0x1c8] ss:$16 sps:$4 sm:$0xff]  }
 0x5ff   : > { %7318 = vmatprep.subr.bf16.mxu0 %v11805_v11  ;;  %8827 = vmatpush1.bf16.msra.mxu1 %v11878_v14  ;;  %v11913_v11 = vld [vmem:[%s15637_s11 + $0x1ec] ss:$16 sps:$4 sm:$0xff]   ;;  %v11911_v14 = vld [vmem:[%s15637_s11 + $0x1e8] ss:$16 sps:$4 sm:$0xff]  }
 0x600   : > { %8828 = vmatprep.subr.bf16.mxu1 %v11886_v60  ;;  %v11919_v60 = vld [vmem:[%s15637_s11 + $0x20c] ss:$16 sps:$4 sm:$0xff]  }
 0x602   : > { %7319 = vmatpush1.bf16.msra.mxu0 %v11803_v4  ;;  %v15127_v4 = vld [vmem:[%s15636_s10] sm:$0x7f] }
 0x603   : > { %7329 = vmatprep.subr.bf16.mxu0 %v11808_v15  ;;  %8829 = vmatpush1.bf16.msra.mxu1 %v11884_v16  ;;  %v5670_v15 = vrot.slane %v15127_v4, %v13262_v0  ;;  %v5678_v16 = vrot.slane %v15127_v4, %v13265_v1 }
 0x604   : > { %8830 = vmatprep.subr.bf16.mxu1 %v11892_v21  ;;  %v5674_v21 = vrot.slane %v15127_v4, %v13268_v2 }
 0x605   : > { %7321 = vmatmul.mubr.bf16.vlgmr.msra.gmra.mrb[24].mxu0 %v14532_v26  ;;  %v11904_v26 = vld [vmem:[%s15637_s11 + $0x1c4] ss:$16 sps:$4 sm:$0xff]  }
 0x606   : > { %7330 = vmatpush1.bf16.msra.mxu0 %v11806_v18  ;;  %7361 = vmatprep.mubr.bf16.mxu0 %v12196_v5  ;;  %v5682_v18 = vrot.slane %v15127_v4, %v13271_v3 }
 0x607   : > { %7331 = vmatprep.subr.bf16.mxu0 %v11811_v19  ;;  %8831 = vmatpush1.bf16.msra.mxu1 %v11890_v38  ;;  %v7490_v19 = vld [vmem:[#allocation6] sm:$0xff] }
 0x608   : > { %8832 = vmatprep.subr.bf16.mxu1 %v11898_v20  ;;  %vm7492_vm1 = vcmp.gt.f32.partialorder %v7490_v19, 0.5 }
 0x60a   : > { %7332 = vmatpush1.bf16.msra.mxu0 %v11809_v22 }
 0x60b   : > { %7333 = vmatprep.subr.bf16.mxu0 %v11814_v62  ;;  %8833 = vmatpush1.bf16.msra.mxu1 %v11896_v23 }
 0x60c   : > { %8834 = vmatprep.subr.bf16.mxu1 %v11904_v26 }
 0x60e   : > { %7334 = vmatpush1.bf16.msra.mxu0 %v11812_v25 }
 0x60f   : > { %7335 = vmatprep.subr.bf16.mxu0 %v11817_v10  ;;  %8835 = vmatpush1.bf16.msra.mxu1 %v11902_v12 }
 0x610   : > { %8836 = vmatprep.subr.bf16.mxu1 %v11910_v52 }
 0x612   : > { %7336 = vmatpush1.bf16.msra.mxu0 %v11815_v28 }
 0x613   : > { %8970 = vmatprep.subr.bf16.mxu0 %v11823_v29  ;;  %8837 = vmatpush1.bf16.msra.mxu1 %v11908_v30 }
 0x614   : > { %8847 = vmatprep.subr.bf16.mxu1 %v11916_v31 }
 0x615   : > { %10117 = vmatmul.mubr.msk.bf16.vlgmr.msra.gmra.mrb[24].mxu0 %vm4931_vm7, %v14586_v39  ;;  %v11841_v39 = vld [vmem:[%s15637_s11 + $0x6c] ss:$16 sps:$4 sm:$0xff]  }
 0x616   : > { %8971 = vmatpush1.bf16.msra.mxu0 %v11821_v33  ;;  %v10119_v33 = vsel %vm7492_vm1, 1.0, %v12195_v27 }
 0x617   : > { %8972 = vmatprep.subr.bf16.mxu0 %v11829_v34 }
 0x61a   : > { %8973 = vmatpush1.bf16.msra.mxu0 %v11827_v48  ;;  %v7498_v48 = vmul.f32 0.8187308, %v7490_v19 }
 0x61b   : > { %8974 = vmatprep.subr.bf16.mxu0 %v11835_v61 }
 0x61e   : > { %8975 = vmatpush1.bf16.msra.mxu0 %v11833_v42 }
 0x61f   : > { %8976 = vmatprep.subr.bf16.mxu0 %v11841_v39  ;;  %v7544_v39 = vmul.f32 0.5, %v10119_v33  ;;  %v11959_v33 = vld [vmem:[%s15637_s11 + $0x2e8] ss:$16 sps:$4 sm:$0xff]  }
 0x622   : > { %8977 = vmatpush1.bf16.msra.mxu0 %v11839_v43 }
 0x623   : > { %8978 = vmatprep.subr.bf16.mxu0 %v11847_v35 }
 0x626   : > { %8979 = vmatpush1.bf16.msra.mxu0 %v11845_v17 }
 0x627   : > { %8980 = vmatprep.subr.bf16.mxu0 %v11853_v24 }
 0x62a   : > { %8981 = vmatpush1.bf16.msra.mxu0 %v11851_v37 }
 0x62b   : > { %8982 = vmatprep.subr.bf16.mxu0 %v11859_v63 }
 0x62e   : > { %8983 = vmatpush1.bf16.msra.mxu0 %v11857_v40 }
 0x62f   : > { %8984 = vmatprep.subr.bf16.mxu0 %v11865_v41 }
 0x632   : > { %8985 = vmatpush1.bf16.msra.mxu0 %v11863_v45  ;;  %v11914_v45 = vld [vmem:[%s15637_s11 + $0x200] ss:$16 sps:$4 sm:$0xff]  }
 0x633   : > { %8986 = vmatprep.subr.bf16.mxu0 %v11871_v46  ;;  %v11917_v46 = vld [vmem:[%s15637_s11 + $0x208] ss:$16 sps:$4 sm:$0xff]  }
 0x636   : > { %8987 = vmatpush1.bf16.msra.mxu0 %v11869_v47 }
 0x637   : > { %8988 = vmatprep.subr.bf16.mxu0 %v11877_v49 }
 0x63a   : > { %8989 = vmatpush1.bf16.msra.mxu0 %v11875_v13 }
 0x63b   : > { %8990 = vmatprep.subr.bf16.mxu0 %v11883_v54  ;;  %v11922_v54 = vld [vmem:[%s15637_s11 + $0x224] ss:$16 sps:$4 sm:$0xff]  }
 0x63e   : > { %8991 = vmatpush1.bf16.msra.mxu0 %v11881_v53  ;;  %v11925_v53 = vld [vmem:[%s15637_s11 + $0x22c] ss:$16 sps:$4 sm:$0xff]  }
 0x63f   : > { %8992 = vmatprep.subr.bf16.mxu0 %v11889_v51  ;;  %v11920_v51 = vld [vmem:[%s15637_s11 + $0x220] ss:$16 sps:$4 sm:$0xff]  }
 0x642   : > { %8993 = vmatpush1.bf16.msra.mxu0 %v11887_v55  ;;  %v11923_v55 = vld [vmem:[%s15637_s11 + $0x228] ss:$16 sps:$4 sm:$0xff]  }
 0x643   : > { %8994 = vmatprep.subr.bf16.mxu0 %v11895_v57  ;;  %v11928_v57 = vld [vmem:[%s15637_s11 + $0x244] ss:$16 sps:$4 sm:$0xff]  }
 0x646   : > { %8995 = vmatpush1.bf16.msra.mxu0 %v11893_v58  ;;  %v11931_v58 = vld [vmem:[%s15637_s11 + $0x24c] ss:$16 sps:$4 sm:$0xff]  }
 0x647   : > { %8996 = vmatprep.subr.bf16.mxu0 %v11901_v6  ;;  %v11926_v6 = vld [vmem:[%s15637_s11 + $0x240] ss:$16 sps:$4 sm:$0xff]  }
 0x64a   : > { %8997 = vmatpush1.bf16.msra.mxu0 %v11899_v7  ;;  %v11929_v7 = vld [vmem:[%s15637_s11 + $0x248] ss:$16 sps:$4 sm:$0xff]  }
 0x64b   : > { %8998 = vmatprep.subr.bf16.mxu0 %v11907_v8  ;;  %v11934_v8 = vld [vmem:[%s15637_s11 + $0x264] ss:$16 sps:$4 sm:$0xff]  }
 0x64e   : > { %8999 = vmatpush1.bf16.msra.mxu0 %v11905_v9  ;;  %v11937_v9 = vld [vmem:[%s15637_s11 + $0x26c] ss:$16 sps:$4 sm:$0xff]  }
 0x64f   : > { %9000 = vmatprep.subr.bf16.mxu0 %v11913_v11  ;;  %v11932_v11 = vld [vmem:[%s15637_s11 + $0x260] ss:$16 sps:$4 sm:$0xff]  }
 0x652   : > { %9001 = vmatpush1.bf16.msra.mxu0 %v11911_v14  ;;  %v11935_v14 = vld [vmem:[%s15637_s11 + $0x268] ss:$16 sps:$4 sm:$0xff]  }
 0x653   : > { %9011 = vmatprep.subr.bf16.mxu0 %v11919_v60 }
 0x658   : > { %v7117_v38 = vpop.f32.mrb[20].mxu0  ;;  %v7240_v20 = vpop.f32.mrb[48].mxu1 }
 0x659   : > { %v10590_v22 = vadd.f32 %v7117_v38, %v5670_v15  ;;  %v10592_v62 = vadd.f32 %v7240_v20, %v5678_v16  ;;  %v7119_v23 = vpop.f32.mrb[21].mxu0  ;;  %v7242_v26 = vpop.f32.mrb[49].mxu1  ;;  %v11940_v15 = vld [vmem:[%s15637_s11 + $0x284] ss:$16 sps:$4 sm:$0xff]   ;;  %v11943_v16 = vld [vmem:[%s15637_s11 + $0x28c] ss:$16 sps:$4 sm:$0xff]  }
 0x65a   : > { %v10591_v25 = vadd.f32 %v7119_v23, %v5674_v21  ;;  %v10593_v10 = vadd.f32 %v7242_v26, %v5682_v18  ;;  %v7121_v12 = vpop.f32.mrb[22].mxu0  ;;  %v7244_v52 = vpop.f32.mrb[50].mxu1  ;;  %v11938_v20 = vld [vmem:[%s15637_s11 + $0x280] ss:$16 sps:$4 sm:$0xff]   ;;  %v11949_v23 = vld [vmem:[%s15637_s11 + $0x2ac] ss:$16 sps:$4 sm:$0xff]  }
 0x65b   : > { %v7122_v28 = vpop.f32.mrb[23].mxu0  ;;  %v7245_v29 = vpop.f32.mrb[51].mxu1  ;;  %v11944_v26 = vld [vmem:[%s15637_s11 + $0x2a0] ss:$16 sps:$4 sm:$0xff]   ;;  %v11955_v12 = vld [vmem:[%s15637_s11 + $0x2cc] ss:$16 sps:$4 sm:$0xff]  }
 0x65c   : > { %v7507_v30 = vcombine.low %v10590_v22, %v10591_v25  ;;  %v7508_v31 = vcombine.low %v10592_v62, %v10593_v10  ;;  %v11941_v22 = vld [vmem:[%s15637_s11 + $0x288] ss:$16 sps:$4 sm:$0xff]   ;;  %v11946_v62 = vld [vmem:[%s15637_s11 + $0x2a4] ss:$16 sps:$4 sm:$0xff]   ;;  %v11950_v52 = vld [vmem:[%s15637_s11 + $0x2c0] ss:$16 sps:$4 sm:$0xff]  }
 0x65d   : > { %v11947_v25 = vld [vmem:[%s15637_s11 + $0x2a8] ss:$16 sps:$4 sm:$0xff]   ;;  %v11952_v10 = vld [vmem:[%s15637_s11 + $0x2c4] ss:$16 sps:$4 sm:$0xff]  }
 0x65e   : > { %v7515_v34 = vrot.slane %v7507_v30, %v12483_v50  ;;  %v7522_v61 = vrot.slane %v7508_v31, %v12483_v50  ;;  %v11953_v28 = vld [vmem:[%s15637_s11 + $0x2c8] ss:$16 sps:$4 sm:$0xff]   ;;  %v11958_v29 = vld [vmem:[%s15637_s11 + $0x2e4] ss:$16 sps:$4 sm:$0xff]   ;;  %v11961_v30 = vld [vmem:[%s15637_s11 + $0x2ec] ss:$16 sps:$4 sm:$0xff]  }
 0x65f   : > { %v11956_v31 = vld [vmem:[%s15637_s11 + $0x2e0] ss:$16 sps:$4 sm:$0xff]  }
 0x660   : > { %v7523_v42 = vcombine.low %v7515_v34, %v7522_v61  ;;  %v11964_v34 = vld [vmem:[%s15637_s11 + $0x304] ss:$16 sps:$4 sm:$0xff]   ;;  %v11962_v61 = vld [vmem:[%s15637_s11 + $0x300] ss:$16 sps:$4 sm:$0xff]  }
 0x662   : > { %v7542_v43 = vadd.f32 %v7523_v42, %v7498_v48  ;;  %v11967_v48 = vld [vmem:[%s15637_s11 + $0x30c] ss:$16 sps:$4 sm:$0xff]   ;;  %v11965_v42 = vld [vmem:[%s15637_s11 + $0x308] ss:$16 sps:$4 sm:$0xff]  }
 0x664   : > { %v7546_v35 = vsub.f32 %v7542_v43, %v7544_v39  ;;  %v11970_v39 = vld [vmem:[%s15637_s11 + $0x324] ss:$16 sps:$4 sm:$0xff]   ;;  %v11973_v43 = vld [vmem:[%s15637_s11 + $0x32c] ss:$16 sps:$4 sm:$0xff]  }
 0x666   : > { %7548 = vst [vmem:[#allocation6] sm:$0xff] %v7546_v35  ;;  %vm7550_vm3 = vcmp.gt.f32.partialorder %v7546_v35, 0.5  ;;  %v11968_v35 = vld [vmem:[%s15637_s11 + $0x320] ss:$16 sps:$4 sm:$0xff]  }
 0x667   : > { %v10121_v17 = vsel %vm7550_vm3, 1.0, %v12195_v27 }
 0x668   : > { %v7565_v24 = vrot.slane %v10121_v17, %v12483_v50  ;;  %v7558_v37 = vcombine.high %v10121_v17, %v10121_v17  ;;  %v11971_v17 = vld [vmem:[%s15637_s11 + $0x328] ss:$16 sps:$4 sm:$0xff]  }
 0x66a   : > { %v7573_v63 = vcombine.high %v7565_v24, %v7565_v24  ;;  %v15143_v40 = vrot.slane %v7558_v37, %v12483_v50  ;;  %v7598_v49 = vpack.c.bf16 %v7565_v24, %v7565_v24  ;;  %v11976_v24 = vld [vmem:[%s15637_s11 + $0x344] ss:$16 sps:$4 sm:$0xff]   ;;  %v11979_v37 = vld [vmem:[%s15637_s11 + $0x34c] ss:$16 sps:$4 sm:$0xff]  }
 0x66c   : > { %v7599_v41 = vpack.c.bf16 %v7573_v63, %v7573_v63  ;;  %v7574_v47 = vcombine.high %v15143_v40, %v15143_v40  ;;  %v11974_v63 = vld [vmem:[%s15637_s11 + $0x340] ss:$16 sps:$4 sm:$0xff]  }
 0x66e   : > { %8838 = vmatprep.mubr.bf16.mxu1 %v7599_v41  ;;  %9002 = vmatprep.mubr.bf16.mxu0 %v7599_v41  ;;  %v7601_v13 = vpack.c.bf16 %v7574_v47, %v7574_v47  ;;  %v11977_v41 = vld [vmem:[%s15637_s11 + $0x348] ss:$16 sps:$4 sm:$0xff]   ;;  %v5694_v47 = vrot.slane %v15127_v4, %v850_v32  ;;  %v11991_v32 = vld [vmem:[%s15637_s11 + $0x38c] ss:$16 sps:$4 sm:$0xff]  }
 0x66f   : > { %8839 = vmatmul.mubr.bf16.vlgmr.msra.gmra.mrb[64].mxu1 %v7598_v49  ;;  %9003 = vmatmul.mubr.bf16.vlgmr.msra.gmra.mrb[28].mxu0 %v7598_v49  ;;  %v11980_v49 = vld [vmem:[%s15637_s11 + $0x360] ss:$16 sps:$4 sm:$0xff]  }
 0x670   : > { %8848 = vmatpush1.bf16.msra.mxu1 %v11914_v45  ;;  %9012 = vmatpush1.bf16.msra.mxu0 %v11917_v46  ;;  %v11982_v45 = vld [vmem:[%s15637_s11 + $0x364] ss:$16 sps:$4 sm:$0xff]   ;;  %v11985_v46 = vld [vmem:[%s15637_s11 + $0x36c] ss:$16 sps:$4 sm:$0xff]  }
 0x671   : > { %8879 = vmatprep.mubr.bf16.mxu1 %v7601_v13  ;;  %9043 = vmatprep.mubr.bf16.mxu0 %v7601_v13  ;;  %v11983_v13 = vld [vmem:[%s15637_s11 + $0x368] ss:$16 sps:$4 sm:$0xff]  }
 0x672   : > { %8849 = vmatprep.subr.bf16.mxu1 %v11922_v54  ;;  %9013 = vmatprep.subr.bf16.mxu0 %v11925_v53  ;;  %v11988_v53 = vld [vmem:[%s15637_s11 + $0x384] ss:$16 sps:$4 sm:$0xff]  }
 0x674   : > { %8850 = vmatpush1.bf16.msra.mxu1 %v11920_v51  ;;  %9014 = vmatpush1.bf16.msra.mxu0 %v11923_v55 }
 0x675   : > { %8851 = vmatprep.subr.bf16.mxu1 %v11928_v57  ;;  %9015 = vmatprep.subr.bf16.mxu0 %v11931_v58 }
 0x678   : > { %8852 = vmatpush1.bf16.msra.mxu1 %v11926_v6  ;;  %9016 = vmatpush1.bf16.msra.mxu0 %v11929_v7  ;;  %v11986_v7 = vld [vmem:[%s15637_s11 + $0x380] ss:$16 sps:$4 sm:$0xff]  }
 0x679   : > { %v10509_v60 = vpop.f32.mrb[52].mxu1  ;;  %8853 = vmatprep.subr.bf16.mxu1 %v11934_v8  ;;  %9017 = vmatprep.subr.bf16.mxu0 %v11937_v9  ;;  %v11989_v8 = vld [vmem:[%s15637_s11 + $0x388] ss:$16 sps:$4 sm:$0xff]   ;;  %v11994_v9 = vld [vmem:[%s15637_s11 + $0x3a4] ss:$16 sps:$4 sm:$0xff]  }
 0x67a   : > { %v10510_v21 = vpop.f32.mrb[53].mxu1 }
 0x67b   : > { %v15195_v18 = vadd.f32 %v10510_v21, %v10509_v60  ;;  %v10512_v19 = vpop.f32.mrb[54].mxu1  ;;  %v11992_v60 = vld [vmem:[%s15637_s11 + $0x3a0] ss:$16 sps:$4 sm:$0xff]   ;;  %v12003_v21 = vld [vmem:[%s15637_s11 + $0x3cc] ss:$16 sps:$4 sm:$0xff]  }
 0x67c   : > { %v10513_v38 = vpop.f32.mrb[55].mxu1  ;;  %8854 = vmatpush1.bf16.msra.mxu1 %v11932_v11  ;;  %9018 = vmatpush1.bf16.msra.mxu0 %v11935_v14  ;;  %v11997_v11 = vld [vmem:[%s15637_s11 + $0x3ac] ss:$16 sps:$4 sm:$0xff]   ;;  %v12001_v19 = vld [vmem:[%s15637_s11 + $0x3c8] ss:$16 sps:$4 sm:$0xff]  }
 0x67d   : > { %8855 = vmatprep.subr.bf16.mxu1 %v11940_v15  ;;  %9019 = vmatprep.subr.bf16.mxu0 %v11943_v16  ;;  %v7405_v55 = vadd.f32 %v15195_v18, %v5694_v47  ;;  %v11995_v15 = vld [vmem:[%s15637_s11 + $0x3a8] ss:$16 sps:$4 sm:$0xff]   ;;  %v12000_v16 = vld [vmem:[%s15637_s11 + $0x3c4] ss:$16 sps:$4 sm:$0xff]   ;;  %v11998_v18 = vld [vmem:[%s15637_s11 + $0x3c0] ss:$16 sps:$4 sm:$0xff]  }
 0x67e   : > { %v12006_v38 = vld [vmem:[%s15637_s11 + $0x3e4] ss:$16 sps:$4 sm:$0xff]  }
 0x67f   : > { %v12042_v47 = vld [vmem:[%s15637_s11 + $0x4a4] ss:$16 sps:$4 sm:$0xff]  }
 0x680   : > { %8856 = vmatpush1.bf16.msra.mxu1 %v11938_v20  ;;  %9020 = vmatpush1.bf16.msra.mxu0 %v11941_v22  ;;  %v12009_v20 = vld [vmem:[%s15637_s11 + $0x3ec] ss:$16 sps:$4 sm:$0xff]   ;;  %v12004_v22 = vld [vmem:[%s15637_s11 + $0x3e0] ss:$16 sps:$4 sm:$0xff]  }
 0x681   : > { %8857 = vmatprep.subr.bf16.mxu1 %v11946_v62  ;;  %9021 = vmatprep.subr.bf16.mxu0 %v11949_v23  ;;  %v12007_v62 = vld [vmem:[%s15637_s11 + $0x3e8] ss:$16 sps:$4 sm:$0xff]  }
 0x684   : > { %8858 = vmatpush1.bf16.msra.mxu1 %v11944_v26  ;;  %9022 = vmatpush1.bf16.msra.mxu0 %v11947_v25  ;;  %v12012_v26 = vld [vmem:[%s15637_s11 + $0x404] ss:$16 sps:$4 sm:$0xff]   ;;  %v12015_v25 = vld [vmem:[%s15637_s11 + $0x40c] ss:$16 sps:$4 sm:$0xff]  }
 0x685   : > { %8859 = vmatprep.subr.bf16.mxu1 %v11952_v10  ;;  %9023 = vmatprep.subr.bf16.mxu0 %v11955_v12 }
 0x688   : > { %8860 = vmatpush1.bf16.msra.mxu1 %v11950_v52  ;;  %9024 = vmatpush1.bf16.msra.mxu0 %v11953_v28 }
 0x689   : > { %8861 = vmatprep.subr.bf16.mxu1 %v11958_v29  ;;  %9025 = vmatprep.subr.bf16.mxu0 %v11961_v30  ;;  %v12010_v29 = vld [vmem:[%s15637_s11 + $0x400] ss:$16 sps:$4 sm:$0xff]   ;;  %v12013_v30 = vld [vmem:[%s15637_s11 + $0x408] ss:$16 sps:$4 sm:$0xff]  }
 0x68c   : > { %8862 = vmatpush1.bf16.msra.mxu1 %v11956_v31  ;;  %9026 = vmatpush1.bf16.msra.mxu0 %v11959_v33  ;;  %v7600_v31 = vpack.c.bf16 %v15143_v40, %v15143_v40  ;;  %v12018_v33 = vld [vmem:[%s15637_s11 + $0x424] ss:$16 sps:$4 sm:$0xff]   ;;  %v12019_v40 = vld [vmem:[%s15637_s11 + $0x428] ss:$16 sps:$4 sm:$0xff]  }
 0x68d   : > { %8863 = vmatprep.subr.bf16.mxu1 %v11964_v34  ;;  %9027 = vmatprep.subr.bf16.mxu0 %v11967_v48  ;;  %v12021_v34 = vld [vmem:[%s15637_s11 + $0x42c] ss:$16 sps:$4 sm:$0xff]   ;;  %v12016_v48 = vld [vmem:[%s15637_s11 + $0x420] ss:$16 sps:$4 sm:$0xff]  }
 0x690   : > { %8864 = vmatpush1.bf16.msra.mxu1 %v11962_v61  ;;  %9028 = vmatpush1.bf16.msra.mxu0 %v11965_v42  ;;  %v12024_v61 = vld [vmem:[%s15637_s11 + $0x444] ss:$16 sps:$4 sm:$0xff]   ;;  %v12027_v42 = vld [vmem:[%s15637_s11 + $0x44c] ss:$16 sps:$4 sm:$0xff]  }
 0x691   : > { %8865 = vmatprep.subr.bf16.mxu1 %v11970_v39  ;;  %9029 = vmatprep.subr.bf16.mxu0 %v11973_v43  ;;  %v12022_v39 = vld [vmem:[%s15637_s11 + $0x440] ss:$16 sps:$4 sm:$0xff]   ;;  %v12025_v43 = vld [vmem:[%s15637_s11 + $0x448] ss:$16 sps:$4 sm:$0xff]  }
 0x694   : > { %8866 = vmatpush1.bf16.msra.mxu1 %v11968_v35  ;;  %9030 = vmatpush1.bf16.msra.mxu0 %v11971_v17  ;;  %v12030_v35 = vld [vmem:[%s15637_s11 + $0x464] ss:$16 sps:$4 sm:$0xff]   ;;  %v12033_v17 = vld [vmem:[%s15637_s11 + $0x46c] ss:$16 sps:$4 sm:$0xff]  }
 0x695   : > { %8867 = vmatprep.subr.bf16.mxu1 %v11976_v24  ;;  %9031 = vmatprep.subr.bf16.mxu0 %v11979_v37  ;;  %v12028_v24 = vld [vmem:[%s15637_s11 + $0x460] ss:$16 sps:$4 sm:$0xff]   ;;  %v12031_v37 = vld [vmem:[%s15637_s11 + $0x468] ss:$16 sps:$4 sm:$0xff]  }
 0x698   : > { %8868 = vmatpush1.bf16.msra.mxu1 %v11974_v63  ;;  %9032 = vmatpush1.bf16.msra.mxu0 %v11977_v41  ;;  %v12036_v63 = vld [vmem:[%s15637_s11 + $0x484] ss:$16 sps:$4 sm:$0xff]   ;;  %v12039_v41 = vld [vmem:[%s15637_s11 + $0x48c] ss:$16 sps:$4 sm:$0xff]  }
 0x699   : > { %v10531_v54 = vpop.f32.mrb[56].mxu1  ;;  %8869 = vmatprep.subr.bf16.mxu1 %v11982_v45  ;;  %9033 = vmatprep.subr.bf16.mxu0 %v11985_v46  ;;  %v12034_v45 = vld [vmem:[%s15637_s11 + $0x480] ss:$16 sps:$4 sm:$0xff]   ;;  %v12037_v46 = vld [vmem:[%s15637_s11 + $0x488] ss:$16 sps:$4 sm:$0xff]  }
 0x69a   : > { %v10532_v51 = vpop.f32.mrb[57].mxu1 }
 0x69b   : > { %v10533_v57 = vadd.f32 %v10532_v51, %v10531_v54  ;;  %v10534_v58 = vpop.f32.mrb[58].mxu1  ;;  %v12043_v54 = vld [vmem:[%s15637_s11 + $0x4a8] ss:$16 sps:$4 sm:$0xff]   ;;  %v12046_v51 = vld [vmem:[%s15637_s11 + $0x4c0] ss:$16 sps:$4 sm:$0xff]  }
 0x69c   : > { %v10535_v6 = vpop.f32.mrb[59].mxu1  ;;  %8870 = vmatpush1.bf16.msra.mxu1 %v11980_v49  ;;  %9034 = vmatpush1.bf16.msra.mxu0 %v11983_v13  ;;  %v12045_v49 = vld [vmem:[%s15637_s11 + $0x4ac] ss:$16 sps:$4 sm:$0xff]   ;;  %v12040_v13 = vld [vmem:[%s15637_s11 + $0x4a0] ss:$16 sps:$4 sm:$0xff]  }
 0x69d   : > { %8871 = vmatprep.subr.bf16.mxu1 %v11988_v53  ;;  %9035 = vmatprep.subr.bf16.mxu0 %v11991_v32  ;;  %v7445_v14 = vadd.f32 %v10533_v57, %v7405_v55  ;;  %v12048_v53 = vld [vmem:[%s15637_s11 + $0x4c4] ss:$16 sps:$4 sm:$0xff]   ;;  %v12051_v32 = vld [vmem:[%s15637_s11 + $0x4cc] ss:$16 sps:$4 sm:$0xff]   ;;  %v12049_v55 = vld [vmem:[%s15637_s11 + $0x4c8] ss:$16 sps:$4 sm:$0xff]  }
 0x69e   : > { %v12054_v57 = vld [vmem:[%s15637_s11 + $0x4e4] ss:$16 sps:$4 sm:$0xff]   ;;  %v12057_v58 = vld [vmem:[%s15637_s11 + $0x4ec] ss:$16 sps:$4 sm:$0xff]   ;;  %v12052_v6 = vld [vmem:[%s15637_s11 + $0x4e0] ss:$16 sps:$4 sm:$0xff]  }
 0x6a0   : > { %8872 = vmatpush1.bf16.msra.mxu1 %v11986_v7  ;;  %9036 = vmatpush1.bf16.msra.mxu0 %v11989_v8  ;;  %v12055_v7 = vld [vmem:[%s15637_s11 + $0x4e8] ss:$16 sps:$4 sm:$0xff]   ;;  %v12060_v8 = vld [vmem:[%s15637_s11 + $0x504] ss:$16 sps:$4 sm:$0xff]  }
 0x6a1   : > { %8873 = vmatprep.subr.bf16.mxu1 %v11994_v9  ;;  %9037 = vmatprep.subr.bf16.mxu0 %v11997_v11  ;;  %v12063_v9 = vld [vmem:[%s15637_s11 + $0x50c] ss:$16 sps:$4 sm:$0xff]   ;;  %v12058_v11 = vld [vmem:[%s15637_s11 + $0x500] ss:$16 sps:$4 sm:$0xff]  }
 0x6a4   : > { %8874 = vmatpush1.bf16.msra.mxu1 %v11992_v60  ;;  %9038 = vmatpush1.bf16.msra.mxu0 %v11995_v15  ;;  %v12066_v60 = vld [vmem:[%s15637_s11 + $0x524] ss:$16 sps:$4 sm:$0xff]   ;;  %v12069_v15 = vld [vmem:[%s15637_s11 + $0x52c] ss:$16 sps:$4 sm:$0xff]  }
 0x6a5   : > { %8875 = vmatprep.subr.bf16.mxu1 %v12000_v16  ;;  %9039 = vmatprep.subr.bf16.mxu0 %v12003_v21  ;;  %v12064_v16 = vld [vmem:[%s15637_s11 + $0x520] ss:$16 sps:$4 sm:$0xff]   ;;  %v12067_v21 = vld [vmem:[%s15637_s11 + $0x528] ss:$16 sps:$4 sm:$0xff]  }
 0x6a8   : > { %8876 = vmatpush1.bf16.msra.mxu1 %v11998_v18  ;;  %9040 = vmatpush1.bf16.msra.mxu0 %v12001_v19  ;;  %v12072_v18 = vld [vmem:[%s15637_s11 + $0x544] ss:$16 sps:$4 sm:$0xff]   ;;  %v12075_v19 = vld [vmem:[%s15637_s11 + $0x54c] ss:$16 sps:$4 sm:$0xff]  }
 0x6a9   : > { %v7484_v23 = vpop.f32.mrb[60].mxu1  ;;  %8877 = vmatprep.subr.bf16.mxu1 %v12006_v38  ;;  %9041 = vmatprep.subr.bf16.mxu0 %v12009_v20  ;;  %v12070_v38 = vld [vmem:[%s15637_s11 + $0x540] ss:$16 sps:$4 sm:$0xff]   ;;  %v12073_v20 = vld [vmem:[%s15637_s11 + $0x548] ss:$16 sps:$4 sm:$0xff]  }
 0x6aa   : > { %v15345_v10 = vadd.f32 %v7484_v23, %v7445_v14  ;;  %v10578_v12 = vpop.f32.mrb[61].mxu1  ;;  %v12061_v14 = vld [vmem:[%s15637_s11 + $0x508] ss:$16 sps:$4 sm:$0xff]   ;;  %v12076_v23 = vld [vmem:[%s15637_s11 + $0x560] ss:$16 sps:$4 sm:$0xff]  }
 0x6ab   : > { %v7487_v52 = vpop.f32.mrb[62].mxu1  ;;  %v12087_v12 = vld [vmem:[%s15637_s11 + $0x58c] ss:$16 sps:$4 sm:$0xff]  }
 0x6ac   : > { %v10579_v28 = vpop.f32.mrb[63].mxu1  ;;  %8878 = vmatpush1.bf16.msra.mxu1 %v12004_v22  ;;  %9042 = vmatpush1.bf16.msra.mxu0 %v12007_v62  ;;  %v12078_v22 = vld [vmem:[%s15637_s11 + $0x564] ss:$16 sps:$4 sm:$0xff]   ;;  %v12081_v62 = vld [vmem:[%s15637_s11 + $0x56c] ss:$16 sps:$4 sm:$0xff]  }
 0x6ad   : > { %8888 = vmatprep.subr.bf16.mxu1 %v12012_v26  ;;  %9052 = vmatprep.subr.bf16.mxu0 %v12015_v25  ;;  %v12079_v26 = vld [vmem:[%s15637_s11 + $0x568] ss:$16 sps:$4 sm:$0xff]   ;;  %v12084_v25 = vld [vmem:[%s15637_s11 + $0x584] ss:$16 sps:$4 sm:$0xff]   ;;  %v12082_v52 = vld [vmem:[%s15637_s11 + $0x580] ss:$16 sps:$4 sm:$0xff]  }
 0x6ae   : > { %v12085_v28 = vld [vmem:[%s15637_s11 + $0x588] ss:$16 sps:$4 sm:$0xff]  }
 0x6af   : > { %8880 = vmatmul.mubr.bf16.vlgmr.msra.gmra.mrb[64].mxu1 %v7600_v31  ;;  %9044 = vmatmul.mubr.bf16.vlgmr.msra.gmra.mrb[28].mxu0 %v7600_v31  ;;  %v12088_v31 = vld [vmem:[%s15637_s11 + $0x5a0] ss:$16 sps:$4 sm:$0xff]  }
 0x6b0   : > { %8889 = vmatpush1.bf16.msra.mxu1 %v12010_v29  ;;  %9053 = vmatpush1.bf16.msra.mxu0 %v12013_v30  ;;  %v12090_v29 = vld [vmem:[%s15637_s11 + $0x5a4] ss:$16 sps:$4 sm:$0xff]   ;;  %v12093_v30 = vld [vmem:[%s15637_s11 + $0x5ac] ss:$16 sps:$4 sm:$0xff]  }
 0x6b1   : > { %8890 = vmatprep.subr.bf16.mxu1 %v12018_v33  ;;  %9054 = vmatprep.subr.bf16.mxu0 %v12021_v34  ;;  %v12091_v33 = vld [vmem:[%s15637_s11 + $0x5a8] ss:$16 sps:$4 sm:$0xff]   ;;  %v12096_v34 = vld [vmem:[%s15637_s11 + $0x5c4] ss:$16 sps:$4 sm:$0xff]  }
 0x6b4   : > { %8891 = vmatpush1.bf16.msra.mxu1 %v12016_v48  ;;  %9055 = vmatpush1.bf16.msra.mxu0 %v12019_v40  ;;  %v12099_v48 = vld [vmem:[%s15637_s11 + $0x5cc] ss:$16 sps:$4 sm:$0xff]   ;;  %v12094_v40 = vld [vmem:[%s15637_s11 + $0x5c0] ss:$16 sps:$4 sm:$0xff]  }
 0x6b5   : > { %8892 = vmatprep.subr.bf16.mxu1 %v12024_v61  ;;  %9056 = vmatprep.subr.bf16.mxu0 %v12027_v42  ;;  %v12097_v61 = vld [vmem:[%s15637_s11 + $0x5c8] ss:$16 sps:$4 sm:$0xff]   ;;  %v5686_v42 = vrot.slane %v15127_v4, %v13631_v56  ;;  %v12100_v56 = vld [vmem:[%s15637_s11 + $0x5e0] ss:$16 sps:$4 sm:$0xff]  }
 0x6b8   : > { %8893 = vmatpush1.bf16.msra.mxu1 %v12022_v39  ;;  %9057 = vmatpush1.bf16.msra.mxu0 %v12025_v43  ;;  %v12102_v39 = vld [vmem:[%s15637_s11 + $0x5e4] ss:$16 sps:$4 sm:$0xff]   ;;  %v12105_v43 = vld [vmem:[%s15637_s11 + $0x5ec] ss:$16 sps:$4 sm:$0xff]  }
 0x6b9   : > { %8894 = vmatprep.subr.bf16.mxu1 %v12030_v35  ;;  %9058 = vmatprep.subr.bf16.mxu0 %v12033_v17  ;;  %v5690_v35 = vrot.slane %v15127_v4, %v846_v59  ;;  %v7491_v17 = vld [vmem:[#allocation6 + $0x8] sm:$0x3f] }
 0x6ba   : > { %v12111_v59 = vld [vmem:[%s15637_s11 + $0x60c] ss:$16 sps:$4 sm:$0xff]   ;;  %vm7493_vm4 = vcmp.gt.f32.partialorder %v7491_v17, 0.5 }
 0x6bc   : > { %8895 = vmatpush1.bf16.msra.mxu1 %v12028_v24  ;;  %9059 = vmatpush1.bf16.msra.mxu0 %v12031_v37  ;;  %v12103_v37 = vld [vmem:[%s15637_s11 + $0x5e8] ss:$16 sps:$4 sm:$0xff]  }
 0x6bd   : > { %8896 = vmatprep.subr.bf16.mxu1 %v12036_v63  ;;  %9060 = vmatprep.subr.bf16.mxu0 %v12039_v41 }
 0x6c0   : > { %8897 = vmatpush1.bf16.msra.mxu1 %v12034_v45  ;;  %9061 = vmatpush1.bf16.msra.mxu0 %v12037_v46 }
 0x6c1   : > { %8898 = vmatprep.subr.bf16.mxu1 %v12042_v47  ;;  %9062 = vmatprep.subr.bf16.mxu0 %v12045_v49  ;;  %v10120_v49 = vsel %vm7493_vm4, 1.0, %v12195_v27 }
 0x6c4   : > { %8899 = vmatpush1.bf16.msra.mxu1 %v12040_v13  ;;  %9063 = vmatpush1.bf16.msra.mxu0 %v12043_v54  ;;  %v7538_v13 = vrot.slane %v15345_v10, %v12483_v50  ;;  %v7499_v54 = vmul.f32 0.8187308, %v7491_v17  ;;  %v12106_v10 = vld [vmem:[%s15637_s11 + $0x600] ss:$16 sps:$4 sm:$0xff]  }
 0x6c5   : > { %8900 = vmatprep.subr.bf16.mxu1 %v12048_v53  ;;  %9064 = vmatprep.subr.bf16.mxu0 %v12051_v32 }
 0x6c8   : > { %8901 = vmatpush1.bf16.msra.mxu1 %v12046_v51  ;;  %9065 = vmatpush1.bf16.msra.mxu0 %v12049_v55  ;;  %v7545_v51 = vmul.f32 0.5, %v10120_v49 }
 0x6c9   : > { %8902 = vmatprep.subr.bf16.mxu1 %v12054_v57  ;;  %9066 = vmatprep.subr.bf16.mxu0 %v12057_v58 }
 0x6cc   : > { %8903 = vmatpush1.bf16.msra.mxu1 %v12052_v6  ;;  %9067 = vmatpush1.bf16.msra.mxu0 %v12055_v7 }
 0x6cd   : > { %8904 = vmatprep.subr.bf16.mxu1 %v12060_v8  ;;  %9068 = vmatprep.subr.bf16.mxu0 %v12063_v9  ;;  %v12109_v9 = vld [vmem:[%s15637_s11 + $0x608] ss:$16 sps:$4 sm:$0xff]  }
 0x6d0   : > { %8905 = vmatpush1.bf16.msra.mxu1 %v12058_v11  ;;  %9069 = vmatpush1.bf16.msra.mxu0 %v12061_v14 }
 0x6d1   : > { %8906 = vmatprep.subr.bf16.mxu1 %v12066_v60  ;;  %9070 = vmatprep.subr.bf16.mxu0 %v12069_v15 }
 0x6d4   : > { %8907 = vmatpush1.bf16.msra.mxu1 %v12064_v16  ;;  %9071 = vmatpush1.bf16.msra.mxu0 %v12067_v21 }
 0x6d5   : > { %8908 = vmatprep.subr.bf16.mxu1 %v12072_v18  ;;  %9072 = vmatprep.subr.bf16.mxu0 %v12075_v19 }
 0x6d8   : > { %8909 = vmatpush1.bf16.msra.mxu1 %v12070_v38  ;;  %9073 = vmatpush1.bf16.msra.mxu0 %v12073_v20 }
 0x6d9   : > { %8910 = vmatprep.subr.bf16.mxu1 %v12078_v22  ;;  %9074 = vmatprep.subr.bf16.mxu0 %v12081_v62 }
 0x6dc   : > { %8911 = vmatpush1.bf16.msra.mxu1 %v12076_v23  ;;  %9075 = vmatpush1.bf16.msra.mxu0 %v12079_v26 }
 0x6dd   : > { %8912 = vmatprep.subr.bf16.mxu1 %v12084_v25  ;;  %9076 = vmatprep.subr.bf16.mxu0 %v12087_v12 }
 0x6e0   : > { %8913 = vmatpush1.bf16.msra.mxu1 %v12082_v52  ;;  %9077 = vmatpush1.bf16.msra.mxu0 %v12085_v28 }
 0x6e1   : > { %8914 = vmatprep.subr.bf16.mxu1 %v12090_v29  ;;  %9078 = vmatprep.subr.bf16.mxu0 %v12093_v30 }
 0x6e4   : > { %8915 = vmatpush1.bf16.msra.mxu1 %v12088_v31  ;;  %9079 = vmatpush1.bf16.msra.mxu0 %v12091_v33 }
 0x6e5   : > { %8916 = vmatprep.subr.bf16.mxu1 %v12096_v34  ;;  %9080 = vmatprep.subr.bf16.mxu0 %v12099_v48 }
 0x6e8   : > { %v7363_v24 = vpop.f32.mrb[24].mxu0  ;;  %8917 = vmatpush1.bf16.msra.mxu1 %v12094_v40  ;;  %9081 = vmatpush1.bf16.msra.mxu0 %v12097_v61 }
 0x6e9   : > { %v10594_v63 = vadd.f32 %v7363_v24, %v5686_v42  ;;  %v7365_v41 = vpop.f32.mrb[25].mxu0  ;;  %8918 = vmatprep.subr.bf16.mxu1 %v12102_v39  ;;  %9082 = vmatprep.subr.bf16.mxu0 %v12105_v43 }
 0x6ea   : > { %v10595_v4 = vadd.f32 %v7365_v41, %v5690_v35  ;;  %v7367_v45 = vpop.f32.mrb[26].mxu0 }
 0x6eb   : > { %v7368_v46 = vpop.f32.mrb[27].mxu0 }
 0x6ec   : > { %v7524_v47 = vcombine.low %v10594_v63, %v10595_v4  ;;  %8919 = vmatpush1.bf16.msra.mxu1 %v12100_v56  ;;  %9083 = vmatpush1.bf16.msra.mxu0 %v12103_v37 }
 0x6ed   : > { %8929 = vmatprep.subr.bf16.mxu1 %v12108_v44  ;;  %9093 = vmatprep.subr.bf16.mxu0 %v12111_v59 }
 0x6ee   : > { %v7531_v53 = vrot.slane %v7524_v47, %v12483_v50 }
 0x6f0   : > { %v7539_v32 = vcombine.low %v7531_v53, %v7538_v13 }
 0x6f2   : > { %v7543_v55 = vadd.f32 %v7539_v32, %v7499_v54 }
 0x6f4   : > { %v7547_v57 = vsub.f32 %v7543_v55, %v7545_v51 }
 0x6f6   : > { %7549 = vst.msk [vmem:[#allocation6 + $0x8] sm:$0x3f] %vm13698_vm14, %v7547_v57  ;;  %vm7551_vm5 = vcmp.gt.f32.partialorder %v7547_v57, 0.5 }
 0x6f7   : > { %v10122_v58 = vsel %vm7551_vm5, 1.0, %v12195_v27 }
 0x6f8   : > { %v7582_v6 = vrot.slane %v10122_v58, %v12483_v50  ;;  %v7575_v36 = vcombine.high %v10122_v58, %v10122_v58 }
 0x6fa   : > { %v7590_v7 = vcombine.high %v7582_v6, %v7582_v6  ;;  %v7602_v11 = vpack.c.bf16 %v7582_v6, %v7582_v6  ;;  %v7589_v14 = vrot.slane %v7575_v36, %v12483_v50 }
 0x6fc   : > { %v7603_v8 = vpack.c.bf16 %v7590_v7, %v7590_v7  ;;  %v7604_v60 = vpack.c.bf16 %v7589_v14, %v7589_v14 }
 0x6fe   : > { %8920 = vmatprep.mubr.bf16.mxu1 %v7603_v8  ;;  %9084 = vmatprep.mubr.bf16.mxu0 %v7603_v8 }
 0x6ff   : > { %8921 = vmatmul.mubr.bf16.vlgmr.msra.gmra.mrb[64].mxu1 %v7602_v11  ;;  %9085 = vmatmul.mubr.bf16.vlgmr.msra.gmra.mrb[28].mxu0 %v7602_v11 }
 0x700   : > { %8930 = vmatpush1.bf16.msra.mxu1 %v12106_v10  ;;  %9094 = vmatpush1.bf16.msra.mxu0 %v12109_v9 }
 0x701   : > { %8961 = vmatprep.mubr.bf16.mxu1 %v12196_v5  ;;  %9125 = vmatprep.mubr.bf16.mxu0 %v12196_v5 }
 0x70b   : > { %10319 = vmatmul.mubr.msk.bf16.vlgmr.msra.gmra.mrb[64].mxu1 %vm4052_vm0, %v7604_v60  ;;  %10320 = vmatmul.mubr.msk.bf16.vlgmr.msra.gmra.mrb[28].mxu0 %vm4052_vm0, %v7604_v60 }
 0x70c   : > { %12126 = shalt.err (!%p12123_p6)
}
 0x70d   : > { %s12127_s16 = scalar_lea.hbm %s15571_s25, 32  ;;  %s12131_s19 = scalar_lea.hbm %s15639_s13, 256 }
 0x70e   : > { %p12128_p7 = scmp.ne.s32.totalorder %s15571_s25, %s12127_s16  ;;  %p12132_p11 = scmp.lt.u32.totalorder %s15571_s25, %s15639_s13 }
 0x70f   : > { %p12133_p12 = scmp.lt.u32.totalorder %s12131_s19, %s12127_s16  ;;  %p12135_p0 = scmp.lt.u32.totalorder %s12127_s16, %s15571_s25 }
 0x710   : > { %p12129_p9 = pnand %p12128_p7, %p12314_p4 }
 0x711   : > { %p12134_p13 = por %p12133_p12, %p12132_p11 }
 0x712   : > { %p12130_p10 = pneg %p12129_p9 }
 0x713   : > { %p12136_p1 = por %p12135_p0, %p12134_p13 }
 0x715   : > { %p12137_p2 = pnand %p12136_p1, %p12130_p10 }
 0x717   : > { %12140 = shalt.err (!%p12137_p2)
}
 0x718   : > { %10684 = dma.vmem_to_hbm [thread:$0]  (%p12314_p4), %s9195_s20, 32, %s15571_s25, %s9171_s0   ;;  %v7801_v5 = vld [vmem:[%s15638_s12] sm:$0xf]  ;;  %v9134_v19 = vld [vmem:[#allocation7] sm:$0xff] }
 0x719   : > { %v7806_v15 = vrot.slane %v7801_v5, %v13262_v0  ;;  %v7814_v16 = vrot.slane %v7801_v5, %v13265_v1  ;;  %v7810_v21 = vrot.slane %v7801_v5, %v13268_v2  ;;  %v7818_v18 = vrot.slane %v7801_v5, %v13271_v3 }
 0x71a   : > { %vm9135_vm14 = vcmp.gt.f32.partialorder %v9134_v19, 0.5  ;;  %v9138_v31 = vmul.f32 0.8187308, %v9134_v19 }
 0x71b   : > { %v10321_v2 = vsel %vm9135_vm14, 1.0, %v12195_v27 }
 0x71c   : > { %v9162_v48 = vmul.f32 0.5, %v10321_v2 }
 0x7de   : > { %v8963_v38 = vpop.f32.mrb[64].mxu1  ;;  %v9127_v20 = vpop.f32.mrb[28].mxu0 }
 0x7df   : > { %v10596_v22 = vadd.f32 %v8963_v38, %v7806_v15  ;;  %v10598_v62 = vadd.f32 %v9127_v20, %v7814_v16  ;;  %v8965_v23 = vpop.f32.mrb[65].mxu1  ;;  %v9129_v26 = vpop.f32.mrb[29].mxu0 }
 0x7e0   : > { %v10597_v25 = vadd.f32 %v8965_v23, %v7810_v21  ;;  %v10599_v12 = vadd.f32 %v9129_v26, %v7818_v18  ;;  %v8967_v52 = vpop.f32.mrb[66].mxu1  ;;  %v9131_v28 = vpop.f32.mrb[30].mxu0 }
 0x7e1   : > { %v8968_v0 = vpop.f32.mrb[67].mxu1  ;;  %v9132_v29 = vpop.f32.mrb[31].mxu0 }
 0x7e2   : > { %v9143_v1 = vcombine.low %v10596_v22, %v10597_v25  ;;  %v9144_v30 = vcombine.low %v10598_v62, %v10599_v12 }
 0x7e4   : > { %v9151_v3 = vrot.slane %v9143_v1, %v12483_v50  ;;  %v9158_v33 = vrot.slane %v9144_v30, %v12483_v50 }
 0x7e6   : > { %v9159_v34 = vcombine.low %v9151_v3, %v9158_v33 }
 0x7e8   : > { %v9161_v40 = vadd.f32 %v9159_v34, %v9138_v31 }
 0x7ea   : > { %v9163_v61 = vsub.f32 %v9161_v40, %v9162_v48 }
 0x7ec   : > { %9164 = vst [vmem:[#allocation7] sm:$0xff] %v9163_v61  ;;  %vm9165_vm0 = vcmp.gt.f32.partialorder %v9163_v61, 0.5 }
 0x7ed   : > { %v10322_v42 = vsel %vm9165_vm0, 1.0, %v12195_v27 }
 0x7ee   : > { %9169 = vst [vmem:[%s12344_s15] sm:$0xff] %v10322_v42 }
 0x7ef PF: > { %p10690_p4 = scmp.ge.s32.totalorder %s12191_s18, 2  ;;  %s9209_s20 = sand.u32 1, %s12171_s29  }
 0x7f0   : > { %s9210_s25 = scalar_lea.sflag [#allocation9], %s9209_s20 }
 0x7f1   : > { %p10687_p3 = pnand %p10690_p4, %p12321_p8 }
 0x7f3   : > { %12166 = dma.done.wait (!%p10687_p3), %s9210_s25, 32  }
 0x7f4   : > { %12168 = vsyncadd (!%p10687_p3), %s9210_s25, 4294967264  ;;  %s28_s18 = sadd.s32 1, %s12191_s18   ;;  %s15667_s0 = sld [smem:[#allocation11_spill]] }
 0x7f5   : > { %p25_p5 = scmp.ge.s32.totalorder %s28_s18, 10   ;;  %s15668_s15 = sld [smem:[#allocation15_spill]] }
 0x7f6   : > { %s15669_s16 = sld [smem:[#allocation12_spill]]  ;;  %s15670_s17 = sld [smem:[#allocation13_spill]] }
 0x7f7   : > { %s15671_s29 = smov %s12175_s30  ;;  %27 = sbr.rel (!%p25_p5) target bundleno = 8 (0x8), region = 123 }
 0x7fa   : > { %s15672_s30 = smov %s15667_s0 }
 0x7fe   :  { %9227 = vsyncpa [#allocation9], 1 }
 0x7ff   :  { %9229 = vsyncpa [#allocation9 + $0x1], 1 }

</bundles_post_ra>
